<compile_context>
chip_gen: v7x
topology: tpu7x:2x2x1
jax: 0.10.0
libtpu: 0.0.40
codegen_flags: <defaults>
</compile_context>

<pallas_src>
import functools

import jax
import jax.numpy as jnp
import numpy as np
from jax.experimental import pallas as pl
from jax.experimental.pallas import tpu as pltpu


# ----------------------------------------------------------------------------
# Small helpers.
# ----------------------------------------------------------------------------
def _round_up(v, m):
    return (v + m - 1) // m * m


def _vmem_cap_bytes():
    try:
        return int(pltpu.get_tpu_info().vmem_capacity_bytes)
    except Exception:
        return 64 << 20          # conservative (v7x-sized) fallback


def _vmem_limit(block_bytes):
    cap = _vmem_cap_bytes()
    want = 2 * int(block_bytes) + (8 << 20)      # double-buffered blocks + headroom
    return int(max(32 << 20, min(want, cap - (8 << 20))))


def _pick_row_tile(ho, wo, requested=None, target_rows=512):
    # TODO(synk): when Ho has no divisor near the target this degrades toward
    #             th=1; mask the ragged last row block instead.
    if requested is None:
        requested = max(1, target_rows // max(wo, 1))
    requested = max(1, min(int(requested), ho))
    for t in range(requested, 0, -1):
        if ho % t == 0:
            return t
    return 1


def _prep_w(w_hwio, cin_p, cout_p):
    kh, kw, cin, cout = w_hwio.shape
    wp = jnp.pad(w_hwio, ((0, 0), (0, 0), (0, cin_p - cin), (0, cout_p - cout)))
    return wp.reshape(kh * kw * cin_p, cout_p).astype(jnp.bfloat16)


# ----------------------------------------------------------------------------
# Pass A1 / shortcut: conv (per-tap MXU matmuls) + per-step BN partial stats.
# ----------------------------------------------------------------------------
def _conv_stats_kernel(x_ref, w_ref, acc_ref, stat_ref, *, kh, kw, stride, th, wo):
    """x_ref   : [1, Hp, Wp, Cin]   (bf16) spatially padded activation, resident per image
       w_ref   : [kh*kw*Cin, Cout]  (bf16) merged conv weight, resident
       acc_ref : [1, th, wo, Cout]  (bf16) conv output tile
       stat_ref: [1, 1, 2, Cout]    (f32)  row0 = sum, row1 = sum of squares (this step)
    """
    rb = pl.program_id(1)
    row0 = rb * th * stride
    cin = x_ref.shape[-1]

    acc = None
    for dy in range(kh):
        for dx in range(kw):
            tap = dy * kw + dx
            if stride == 1:
                win = x_ref[0, pl.ds(row0 + dy, th), pl.ds(dx, wo), :]
            else:
                # TODO(synk): strided taps (downsampling blocks) unexercised by the
                #             demo config; validate / restructure before relying on it.
                win = x_ref[0, pl.ds(row0 + dy, th, stride), pl.ds(dx, wo, stride), :]
            a = win.reshape(th * wo, cin)
            p = jnp.dot(a, w_ref[tap * cin:(tap + 1) * cin, :],
                        preferred_element_type=jnp.float32)
            acc = p if acc is None else acc + p

    cout = acc.shape[-1]
    acc_ref[...] = acc.reshape(1, th, wo, cout).astype(acc_ref.dtype)
    s1 = jnp.sum(acc, axis=0, keepdims=True)
    s2 = jnp.sum(acc * acc, axis=0, keepdims=True)
    stat_ref[...] = jnp.concatenate([s1, s2], axis=0).reshape(1, 1, 2, cout)


def conv_stats(x, w2d, *, kh, kw, stride, ho, wo, th):
    """x: [N, Hp, Wp, Cin] bf16 (spatially padded for 3x3), w2d: [kh*kw*Cin, Cout] bf16."""
    N, Hp, Wp, Cin = x.shape
    Kdim, Cout = w2d.shape
    nrb = ho // th
    kernel = functools.partial(_conv_stats_kernel, kh=kh, kw=kw, stride=stride,
                               th=th, wo=wo)
    in_specs = [
        # TODO(synk): v7x — halo row-blocking instead of full-image residency for
        #             large spatial/channel configs (64 MiB VMEM).
        pl.BlockSpec((1, Hp, Wp, Cin), lambda n, rb: (n, 0, 0, 0)),
        pl.BlockSpec((Kdim, Cout), lambda n, rb: (0, 0)),
    ]
    out_specs = [
        pl.BlockSpec((1, th, wo, Cout), lambda n, rb: (n, rb, 0, 0)),
        pl.BlockSpec((1, 1, 2, Cout), lambda n, rb: (n, rb, 0, 0)),
    ]
    out_shape = (jax.ShapeDtypeStruct((N, ho, wo, Cout), jnp.bfloat16),
                 jax.ShapeDtypeStruct((N, nrb, 2, Cout), jnp.float32))

    block_bytes = (Hp * Wp * Cin * 2 + Kdim * Cout * 2
                   + th * wo * Cout * 2 + 2 * Cout * 4)
    flops = 2 * N * ho * wo * Kdim * Cout
    bytes_accessed = (x.size * 2 + w2d.size * 2
                      + N * ho * wo * Cout * 2 + N * nrb * 2 * Cout * 4)

    return pl.pallas_call(
        kernel,
        out_shape=out_shape,
        grid=(N, nrb),
        in_specs=in_specs,
        out_specs=out_specs,
        compiler_params=pltpu.CompilerParams(
            dimension_semantics=("parallel", "parallel"),
            vmem_limit_bytes=_vmem_limit(block_bytes)),
        cost_estimate=pl.CostEstimate(flops=flops, transcendentals=0,
                                      bytes_accessed=bytes_accessed),
    )(x, w2d)


# ----------------------------------------------------------------------------
# Pass A2: bn1 + relu fused into conv2 (+ BN2 partial stats).
# ----------------------------------------------------------------------------
def _bn_relu_conv_stats_kernel(acc1_ref, scale_ref, shift_ref, w_ref,
                               acc_ref, stat_ref, pad_ref, *, th, wo):
    """acc1_ref : [1, Ho, Wo, C]   (bf16) conv1 accumulator, resident per image
       scale/shift : [1, C]        (f32)  folded bn1 affine
       w_ref    : [9*C, Cout]      (bf16) merged conv2 weight, resident
       acc_ref  : [1, th, wo, Cout](bf16) conv2 output tile
       stat_ref : [1, 1, 2, Cout]  (f32)  partial stats for bn2
       pad_ref  : [Ho+2, Wo+2, C]  (bf16) VMEM scratch: zero-haloed relu(bn1(acc1))
    """
    rb = pl.program_id(1)
    ho = acc1_ref.shape[1]
    cin = acc1_ref.shape[-1]

    @pl.when(rb == 0)
    def _fill():
        pad_ref[...] = jnp.zeros(pad_ref.shape, pad_ref.dtype)
        a1 = acc1_ref[0].astype(jnp.float32)
        norm = jnp.maximum(a1 * scale_ref[...] + shift_ref[...], 0.0)
        pad_ref[1:1 + ho, 1:1 + wo, :] = norm.astype(pad_ref.dtype)

    row0 = rb * th
    acc = None
    for dy in range(3):
        for dx in range(3):
            tap = dy * 3 + dx
            win = pad_ref[pl.ds(row0 + dy, th), pl.ds(dx, wo), :]
            a = win.reshape(th * wo, cin)
            p = jnp.dot(a, w_ref[tap * cin:(tap + 1) * cin, :],
                        preferred_element_type=jnp.float32)
            acc = p if acc is None else acc + p

    cout = acc.shape[-1]
    acc_ref[...] = acc.reshape(1, th, wo, cout).astype(acc_ref.dtype)
    s1 = jnp.sum(acc, axis=0, keepdims=True)
    s2 = jnp.sum(acc * acc, axis=0, keepdims=True)
    stat_ref[...] = jnp.concatenate([s1, s2], axis=0).reshape(1, 1, 2, cout)


def bn_relu_conv_stats(acc1, scale1, shift1, w2d, *, th):
    N, Ho, Wo, C = acc1.shape
    Kdim, Cout = w2d.shape
    nrb = Ho // th
    kernel = functools.partial(_bn_relu_conv_stats_kernel, th=th, wo=Wo)
    in_specs = [
        pl.BlockSpec((1, Ho, Wo, C), lambda n, rb: (n, 0, 0, 0)),
        pl.BlockSpec((1, C), lambda n, rb: (0, 0)),
        pl.BlockSpec((1, C), lambda n, rb: (0, 0)),
        pl.BlockSpec((Kdim, Cout), lambda n, rb: (0, 0)),
    ]
    out_specs = [
        pl.BlockSpec((1, th, Wo, Cout), lambda n, rb: (n, rb, 0, 0)),
        pl.BlockSpec((1, 1, 2, Cout), lambda n, rb: (n, rb, 0, 0)),
    ]
    out_shape = (jax.ShapeDtypeStruct((N, Ho, Wo, Cout), jnp.bfloat16),
                 jax.ShapeDtypeStruct((N, nrb, 2, Cout), jnp.float32))

    block_bytes = (Ho * Wo * C * 2 + 2 * C * 4 + Kdim * Cout * 2
                   + th * Wo * Cout * 2 + 2 * Cout * 4
                   + (Ho + 2) * (Wo + 2) * C * 2)
    flops = 2 * N * Ho * Wo * Kdim * Cout
    bytes_accessed = (acc1.size * 2 + 2 * C * 4 + w2d.size * 2
                      + N * Ho * Wo * Cout * 2 + N * nrb * 2 * Cout * 4)

    return pl.pallas_call(
        kernel,
        out_shape=out_shape,
        grid=(N, nrb),
        in_specs=in_specs,
        out_specs=out_specs,
        scratch_shapes=[pltpu.VMEM((Ho + 2, Wo + 2, C), jnp.bfloat16)],
        compiler_params=pltpu.CompilerParams(
            # rb carries the per-image scratch fill -> "arbitrary"; batch parallel.
            dimension_semantics=("parallel", "arbitrary"),
            vmem_limit_bytes=_vmem_limit(block_bytes)),
        cost_estimate=pl.CostEstimate(flops=flops, transcendentals=0,
                                      bytes_accessed=bytes_accessed),
    )(acc1, scale1, shift1, w2d)


# ----------------------------------------------------------------------------
# Pass B: y = acc*scale + shift + residual(;affine) ; relu   (lane-dense tiles)
# ----------------------------------------------------------------------------
def _bn_add_relu_kernel(acc_ref, scale_ref, shift_ref, res_ref, out_ref):
    y = acc_ref[...].astype(jnp.float32) * scale_ref[...] + shift_ref[...]
    r = res_ref[...].astype(jnp.float32)
    out_ref[...] = jnp.maximum(y + r, 0.0).astype(out_ref.dtype)


def _bn_affine_add_relu_kernel(acc_ref, scale_ref, shift_ref,
                               res_ref, rscale_ref, rshift_ref, out_ref):
    y = acc_ref[...].astype(jnp.float32) * scale_ref[...] + shift_ref[...]
    r = res_ref[...].astype(jnp.float32) * rscale_ref[...] + rshift_ref[...]
    out_ref[...] = jnp.maximum(y + r, 0.0).astype(out_ref.dtype)


def bn_act(acc, scale, shift, residual, rscale=None, rshift=None,
           out_dtype=jnp.float32, row_tile=None):
    N, Ho, Wo, C = acc.shape
    # Pure mem-bound pass: aim for large lane-dense tiles (whole image at demo size).
    th = _pick_row_tile(Ho, Wo, row_tile, target_rows=2048)
    nrb = Ho // th
    tile = lambda: pl.BlockSpec((1, th, Wo, C), lambda n, rb: (n, rb, 0, 0))
    vec = lambda: pl.BlockSpec((1, C), lambda n, rb: (0, 0))

    if rscale is None:
        kernel = _bn_add_relu_kernel
        in_specs = [tile(), vec(), vec(), tile()]
        args = (acc, scale, shift, residual)
    else:
        kernel = _bn_affine_add_relu_kernel
        in_specs = [tile(), vec(), vec(), tile(), vec(), vec()]
        args = (acc, scale, shift, residual, rscale, rshift)

    block_bytes = th * Wo * C * (2 + 2 + 4) + 4 * C * 4
    return pl.pallas_call(
        kernel,
        out_shape=jax.ShapeDtypeStruct((N, Ho, Wo, C), out_dtype),
        grid=(N, nrb),
        in_specs=in_specs,
        out_specs=tile(),
        compiler_params=pltpu.CompilerParams(
            dimension_semantics=("parallel", "parallel"),
            vmem_limit_bytes=_vmem_limit(block_bytes)),
    )(*args)


# ----------------------------------------------------------------------------
# Host-side glue (layout, BN finalize).
# ----------------------------------------------------------------------------
def _finalize_bn(stats, count, gamma, beta, cout_p, eps):
    """stats: [N, nrb, 2, C] with row0 = sum, row1 = sum of squares."""
    # TODO(synk): single-pass E[x^2]-mean^2 in f32; use centered/Welford
    #             accumulation if real-size batches show drift.
    total = jnp.sum(stats[:, :, 0, :], axis=(0, 1))
    total_sq = jnp.sum(stats[:, :, 1, :], axis=(0, 1))
    mean = total / count
    var = jnp.maximum(total_sq / count - mean * mean, 0.0)
    g = jnp.pad(gamma.reshape(-1).astype(jnp.float32), (0, cout_p - gamma.size))
    b = jnp.pad(beta.reshape(-1).astype(jnp.float32), (0, cout_p - beta.size))
    scale = g * jax.lax.rsqrt(var + eps)
    shift = b - mean * scale
    return scale.reshape(1, -1), shift.reshape(1, -1)


def basic_block_forward(x_nchw, params, stride=1, eps=1e-5, row_tile=None):
    """BasicBlock.forward: relu(bn2(conv2(relu(bn1(conv1(x))))) + shortcut(x))."""
    # Single layout hop: NCHW -> NHWC + bf16.  Cin stays at its natural value.
    x_bf = jnp.transpose(x_nchw, (0, 2, 3, 1)).astype(jnp.bfloat16)
    N, H, W, Cin = x_bf.shape
    planes = params["w1"].shape[-1]
    cpl_p = _round_up(planes, 128)              # conv outputs kept lane-dense

    xpad = jnp.pad(x_bf, ((0, 0), (1, 1), (1, 1), (0, 0)))       # 3x3 conv, pad=1

    Ho = (H - 1) // stride + 1
    Wo = (W - 1) // stride + 1
    th = _pick_row_tile(Ho, Wo, row_tile)
    count = N * Ho * Wo

    # Pass A1: conv1 (+ BN1 partial stats), bf16 accumulator out.
    w1 = _prep_w(params["w1"], Cin, cpl_p)
    acc1, st1 = conv_stats(xpad, w1, kh=3, kw=3, stride=stride, ho=Ho, wo=Wo, th=th)
    scale1, shift1 = _finalize_bn(st1, count, params["g1"], params["b1"], cpl_p, eps)

    # Pass A2: bn1 + relu fused into conv2 (no HBM round trip of the intermediate).
    # TODO(synk): conv2's K keeps the lane-padded cpl_p channels (exact zeros);
    #             slice to the natural `planes` to halve K work when planes == 64.
    w2 = _prep_w(params["w2"], cpl_p, cpl_p)
    acc2, st2 = bn_relu_conv_stats(acc1, scale1, shift1, w2, th=th)
    scale2, shift2 = _finalize_bn(st2, count, params["g2"], params["b2"], cpl_p, eps)

    # Shortcut branch.
    if stride != 1 or Cin != planes:
        xs = x_bf[:, ::stride, ::stride, :]                      # 1x1 conv: pre-decimate
        wsc = _prep_w(params["w_sc"], Cin, cpl_p)
        acc_sc, st_sc = conv_stats(xs, wsc, kh=1, kw=1, stride=1, ho=Ho, wo=Wo, th=th)
        rscale, rshift = _finalize_bn(st_sc, count, params["g_sc"], params["b_sc"],
                                      cpl_p, eps)
        out = bn_act(acc2, scale2, shift2, acc_sc, rscale, rshift)
    else:
        # Identity shortcut: bf16 residual (channel-pad only), no-affine epilogue.
        res = jnp.pad(x_bf, ((0, 0), (0, 0), (0, 0), (0, cpl_p - Cin)))
        out = bn_act(acc2, scale2, shift2, res)

    out = out[..., :planes]
    return jnp.transpose(out, (0, 3, 1, 2))                      # NHWC -> NCHW


# ----------------------------------------------------------------------------
# Pure-JAX reference (training-mode BN; mirrors the kernel path's bf16
# quantization points so the comparison is tight).
# ----------------------------------------------------------------------------
def reference_forward(x_nchw, params, stride=1, eps=1e-5):
    f32 = jnp.float32
    q = lambda a: a.astype(jnp.bfloat16).astype(f32)
    x = q(jnp.transpose(x_nchw, (0, 2, 3, 1)))

    def conv(v, w, s, p):
        return jax.lax.conv_general_dilated(
            v, w, (s, s), [(p, p), (p, p)],
            dimension_numbers=("NHWC", "HWIO", "NHWC"),
            precision=jax.lax.Precision.HIGHEST)

    def bn(v, g, b):
        mu = jnp.mean(v, axis=(0, 1, 2), keepdims=True)
        var = jnp.mean((v - mu) ** 2, axis=(0, 1, 2), keepdims=True)
        return ((v - mu) * jax.lax.rsqrt(var + eps)
                * g.reshape(1, 1, 1, -1) + b.reshape(1, 1, 1, -1))

    planes = params["w1"].shape[-1]
    a1 = q(conv(x, q(params["w1"]), stride, 1))          # kernel stores conv acc as bf16
    out1 = q(jax.nn.relu(bn(a1, params["g1"], params["b1"])))
    a2 = q(conv(out1, q(params["w2"]), 1, 1))
    out = bn(a2, params["g2"], params["b2"])
    if stride != 1 or x.shape[-1] != planes:
        asc = q(conv(x, q(params["w_sc"]), stride, 0))
        sc = bn(asc, params["g_sc"], params["b_sc"])
    else:
        sc = x
    return jnp.transpose(jax.nn.relu(out + sc), (0, 3, 1, 2))


if __name__ == "__main__":
    key = jax.random.PRNGKey(0)
    N, Cin, H, W = 2, 4, 16, 16
    planes, stride = 4, 1            # default BasicBlock config -> identity shortcut

    ks = jax.random.split(key, 7)
    x_nchw = jax.random.normal(ks[0], (N, Cin, H, W), dtype=jnp.float32)
    params = {
        "w1": jax.random.normal(ks[1], (3, 3, Cin, planes), jnp.float32) * 0.3,
        "g1": 1.0 + 0.1 * jax.random.normal(ks[2], (planes,), jnp.float32),
        "b1": 0.1 * jax.random.normal(ks[3], (planes,), jnp.float32),
        "w2": jax.random.normal(ks[4], (3, 3, planes, planes), jnp.float32) * 0.3,
        "g2": 1.0 + 0.1 * jax.random.normal(ks[5], (planes,), jnp.float32),
        "b2": 0.1 * jax.random.normal(ks[6], (planes,), jnp.float32),
    }

    # row_tile=8 -> 2 row blocks per image: exercises the per-(n,rb) stats blocks
    # and the scratch fill/reuse path of the fused bn1+relu+conv2 kernel.
    fwd = jax.jit(functools.partial(basic_block_forward, stride=stride, row_tile=8))
    out = jax.block_until_ready(fwd(x_nchw, params))

    ref = reference_forward(x_nchw, params, stride=stride)
    np.testing.assert_allclose(np.asarray(out), np.asarray(ref), atol=1e-2, rtol=1e-2)
    print("KERNEL_OK")
</pallas_src>

<mosaic_0001>
module attributes {stable_mosaic.version = 11 : i64} {
  func.func @_conv_stats_kernel(%arg0: i32, %arg1: i32, %arg2: memref<1x18x18x4xbf16, #tpu.memory_space<vmem>>, %arg3: memref<36x128xbf16, #tpu.memory_space<vmem>>, %arg4: memref<1x8x16x128xbf16, #tpu.memory_space<vmem>>, %arg5: memref<1x1x2x128xf32, #tpu.memory_space<vmem>>) attributes {dimension_semantics = [#tpu.dimension_semantics<parallel>, #tpu.dimension_semantics<parallel>], iteration_bounds = array<i64: 2, 2>, scalar_prefetch = 0 : i64, scratch_operands = 0 : i64, tpu.core_type = #tpu.core_type<tc>, window_params = [{transform_indices = @transform_0, window_bounds = array<i64: 1, 18, 18, 4>}, {pipeline_mode = #tpu.pipeline_mode<synchronous>, transform_indices = @transform_1, window_bounds = array<i64: 36, 128>}, {transform_indices = @transform_2, window_bounds = array<i64: 1, 8, 16, 128>}, {transform_indices = @transform_3, window_bounds = array<i64: 1, 1, 2, 128>}]} {
    %c8_i32 = arith.constant 8 : i32
    %0 = arith.muli %arg1, %c8_i32 : i32
    %c1_i32 = arith.constant 1 : i32
    %1 = arith.muli %0, %c1_i32 : i32
    %c0_i32 = arith.constant 0 : i32
    %2 = arith.addi %1, %c0_i32 : i32
    %c0 = arith.constant 0 : index
    %3 = arith.index_cast %2 : i32 to index
    %c0_0 = arith.constant 0 : index
    %c0_1 = arith.constant 0 : index
    %4 = vector.load %arg2[%c0, %3, %c0_0, %c0_1] : memref<1x18x18x4xbf16, #tpu.memory_space<vmem>>, vector<1x8x16x4xbf16>
    %5 = vector.shape_cast %4 : vector<1x8x16x4xbf16> to vector<8x16x4xbf16>
    %6 = vector.shape_cast %5 : vector<8x16x4xbf16> to vector<128x4xbf16>
    %c0_2 = arith.constant 0 : index
    %c0_3 = arith.constant 0 : index
    %7 = vector.load %arg3[%c0_2, %c0_3] : memref<36x128xbf16, #tpu.memory_space<vmem>>, vector<4x128xbf16>
    %cst = arith.constant dense<0.000000e+00> : vector<128x128xf32>
    %8 = tpu.matmul %6, %7, %cst {dimension_numbers = #tpu.dot_dimension_numbers<[1], [0], [0], [1], [0, 0, 1, 1], [], []>} : vector<128x4xbf16>, vector<4x128xbf16>, vector<128x128xf32> -> vector<128x128xf32>
    %c0_i32_4 = arith.constant 0 : i32
    %9 = arith.addi %1, %c0_i32_4 : i32
    %c0_5 = arith.constant 0 : index
    %10 = arith.index_cast %9 : i32 to index
    %c1 = arith.constant 1 : index
    %c0_6 = arith.constant 0 : index
    %11 = vector.load %arg2[%c0_5, %10, %c1, %c0_6] : memref<1x18x18x4xbf16, #tpu.memory_space<vmem>>, vector<1x8x16x4xbf16>
    %12 = vector.shape_cast %11 : vector<1x8x16x4xbf16> to vector<8x16x4xbf16>
    %13 = vector.shape_cast %12 : vector<8x16x4xbf16> to vector<128x4xbf16>
    %c4 = arith.constant 4 : index
    %c0_7 = arith.constant 0 : index
    %14 = vector.load %arg3[%c4, %c0_7] : memref<36x128xbf16, #tpu.memory_space<vmem>>, vector<4x128xbf16>
    %cst_8 = arith.constant dense<0.000000e+00> : vector<128x128xf32>
    %15 = tpu.matmul %13, %14, %cst_8 {dimension_numbers = #tpu.dot_dimension_numbers<[1], [0], [0], [1], [0, 0, 1, 1], [], []>} : vector<128x4xbf16>, vector<4x128xbf16>, vector<128x128xf32> -> vector<128x128xf32>
    %16 = arith.addf %8, %15 : vector<128x128xf32>
    %c0_i32_9 = arith.constant 0 : i32
    %17 = arith.addi %1, %c0_i32_9 : i32
    %c0_10 = arith.constant 0 : index
    %18 = arith.index_cast %17 : i32 to index
    %c2 = arith.constant 2 : index
    %c0_11 = arith.constant 0 : index
    %19 = vector.load %arg2[%c0_10, %18, %c2, %c0_11] : memref<1x18x18x4xbf16, #tpu.memory_space<vmem>>, vector<1x8x16x4xbf16>
    %20 = vector.shape_cast %19 : vector<1x8x16x4xbf16> to vector<8x16x4xbf16>
    %21 = vector.shape_cast %20 : vector<8x16x4xbf16> to vector<128x4xbf16>
    %c8 = arith.constant 8 : index
    %c0_12 = arith.constant 0 : index
    %22 = vector.load %arg3[%c8, %c0_12] : memref<36x128xbf16, #tpu.memory_space<vmem>>, vector<4x128xbf16>
    %cst_13 = arith.constant dense<0.000000e+00> : vector<128x128xf32>
    %23 = tpu.matmul %21, %22, %cst_13 {dimension_numbers = #tpu.dot_dimension_numbers<[1], [0], [0], [1], [0, 0, 1, 1], [], []>} : vector<128x4xbf16>, vector<4x128xbf16>, vector<128x128xf32> -> vector<128x128xf32>
    %24 = arith.addf %16, %23 : vector<128x128xf32>
    %c1_i32_14 = arith.constant 1 : i32
    %25 = arith.addi %1, %c1_i32_14 : i32
    %c0_15 = arith.constant 0 : index
    %26 = arith.index_cast %25 : i32 to index
    %c0_16 = arith.constant 0 : index
    %c0_17 = arith.constant 0 : index
    %27 = vector.load %arg2[%c0_15, %26, %c0_16, %c0_17] : memref<1x18x18x4xbf16, #tpu.memory_space<vmem>>, vector<1x8x16x4xbf16>
    %28 = vector.shape_cast %27 : vector<1x8x16x4xbf16> to vector<8x16x4xbf16>
    %29 = vector.shape_cast %28 : vector<8x16x4xbf16> to vector<128x4xbf16>
    %c12 = arith.constant 12 : index
    %c0_18 = arith.constant 0 : index
    %30 = vector.load %arg3[%c12, %c0_18] : memref<36x128xbf16, #tpu.memory_space<vmem>>, vector<4x128xbf16>
    %cst_19 = arith.constant dense<0.000000e+00> : vector<128x128xf32>
    %31 = tpu.matmul %29, %30, %cst_19 {dimension_numbers = #tpu.dot_dimension_numbers<[1], [0], [0], [1], [0, 0, 1, 1], [], []>} : vector<128x4xbf16>, vector<4x128xbf16>, vector<128x128xf32> -> vector<128x128xf32>
    %32 = arith.addf %24, %31 : vector<128x128xf32>
    %c1_i32_20 = arith.constant 1 : i32
    %33 = arith.addi %1, %c1_i32_20 : i32
    %c0_21 = arith.constant 0 : index
    %34 = arith.index_cast %33 : i32 to index
    %c1_22 = arith.constant 1 : index
    %c0_23 = arith.constant 0 : index
    %35 = vector.load %arg2[%c0_21, %34, %c1_22, %c0_23] : memref<1x18x18x4xbf16, #tpu.memory_space<vmem>>, vector<1x8x16x4xbf16>
    %36 = vector.shape_cast %35 : vector<1x8x16x4xbf16> to vector<8x16x4xbf16>
    %37 = vector.shape_cast %36 : vector<8x16x4xbf16> to vector<128x4xbf16>
    %c16 = arith.constant 16 : index
    %c0_24 = arith.constant 0 : index
    %38 = vector.load %arg3[%c16, %c0_24] : memref<36x128xbf16, #tpu.memory_space<vmem>>, vector<4x128xbf16>
    %cst_25 = arith.constant dense<0.000000e+00> : vector<128x128xf32>
    %39 = tpu.matmul %37, %38, %cst_25 {dimension_numbers = #tpu.dot_dimension_numbers<[1], [0], [0], [1], [0, 0, 1, 1], [], []>} : vector<128x4xbf16>, vector<4x128xbf16>, vector<128x128xf32> -> vector<128x128xf32>
    %40 = arith.addf %32, %39 : vector<128x128xf32>
    %c1_i32_26 = arith.constant 1 : i32
    %41 = arith.addi %1, %c1_i32_26 : i32
    %c0_27 = arith.constant 0 : index
    %42 = arith.index_cast %41 : i32 to index
    %c2_28 = arith.constant 2 : index
    %c0_29 = arith.constant 0 : index
    %43 = vector.load %arg2[%c0_27, %42, %c2_28, %c0_29] : memref<1x18x18x4xbf16, #tpu.memory_space<vmem>>, vector<1x8x16x4xbf16>
    %44 = vector.shape_cast %43 : vector<1x8x16x4xbf16> to vector<8x16x4xbf16>
    %45 = vector.shape_cast %44 : vector<8x16x4xbf16> to vector<128x4xbf16>
    %c20 = arith.constant 20 : index
    %c0_30 = arith.constant 0 : index
    %46 = vector.load %arg3[%c20, %c0_30] : memref<36x128xbf16, #tpu.memory_space<vmem>>, vector<4x128xbf16>
    %cst_31 = arith.constant dense<0.000000e+00> : vector<128x128xf32>
    %47 = tpu.matmul %45, %46, %cst_31 {dimension_numbers = #tpu.dot_dimension_numbers<[1], [0], [0], [1], [0, 0, 1, 1], [], []>} : vector<128x4xbf16>, vector<4x128xbf16>, vector<128x128xf32> -> vector<128x128xf32>
    %48 = arith.addf %40, %47 : vector<128x128xf32>
    %c2_i32 = arith.constant 2 : i32
    %49 = arith.addi %1, %c2_i32 : i32
    %c0_32 = arith.constant 0 : index
    %50 = arith.index_cast %49 : i32 to index
    %c0_33 = arith.constant 0 : index
    %c0_34 = arith.constant 0 : index
    %51 = vector.load %arg2[%c0_32, %50, %c0_33, %c0_34] : memref<1x18x18x4xbf16, #tpu.memory_space<vmem>>, vector<1x8x16x4xbf16>
    %52 = vector.shape_cast %51 : vector<1x8x16x4xbf16> to vector<8x16x4xbf16>
    %53 = vector.shape_cast %52 : vector<8x16x4xbf16> to vector<128x4xbf16>
    %c24 = arith.constant 24 : index
    %c0_35 = arith.constant 0 : index
    %54 = vector.load %arg3[%c24, %c0_35] : memref<36x128xbf16, #tpu.memory_space<vmem>>, vector<4x128xbf16>
    %cst_36 = arith.constant dense<0.000000e+00> : vector<128x128xf32>
    %55 = tpu.matmul %53, %54, %cst_36 {dimension_numbers = #tpu.dot_dimension_numbers<[1], [0], [0], [1], [0, 0, 1, 1], [], []>} : vector<128x4xbf16>, vector<4x128xbf16>, vector<128x128xf32> -> vector<128x128xf32>
    %56 = arith.addf %48, %55 : vector<128x128xf32>
    %c2_i32_37 = arith.constant 2 : i32
    %57 = arith.addi %1, %c2_i32_37 : i32
    %c0_38 = arith.constant 0 : index
    %58 = arith.index_cast %57 : i32 to index
    %c1_39 = arith.constant 1 : index
    %c0_40 = arith.constant 0 : index
    %59 = vector.load %arg2[%c0_38, %58, %c1_39, %c0_40] : memref<1x18x18x4xbf16, #tpu.memory_space<vmem>>, vector<1x8x16x4xbf16>
    %60 = vector.shape_cast %59 : vector<1x8x16x4xbf16> to vector<8x16x4xbf16>
    %61 = vector.shape_cast %60 : vector<8x16x4xbf16> to vector<128x4xbf16>
    %c28 = arith.constant 28 : index
    %c0_41 = arith.constant 0 : index
    %62 = vector.load %arg3[%c28, %c0_41] : memref<36x128xbf16, #tpu.memory_space<vmem>>, vector<4x128xbf16>
    %cst_42 = arith.constant dense<0.000000e+00> : vector<128x128xf32>
    %63 = tpu.matmul %61, %62, %cst_42 {dimension_numbers = #tpu.dot_dimension_numbers<[1], [0], [0], [1], [0, 0, 1, 1], [], []>} : vector<128x4xbf16>, vector<4x128xbf16>, vector<128x128xf32> -> vector<128x128xf32>
    %64 = arith.addf %56, %63 : vector<128x128xf32>
    %c2_i32_43 = arith.constant 2 : i32
    %65 = arith.addi %1, %c2_i32_43 : i32
    %c0_44 = arith.constant 0 : index
    %66 = arith.index_cast %65 : i32 to index
    %c2_45 = arith.constant 2 : index
    %c0_46 = arith.constant 0 : index
    %67 = vector.load %arg2[%c0_44, %66, %c2_45, %c0_46] : memref<1x18x18x4xbf16, #tpu.memory_space<vmem>>, vector<1x8x16x4xbf16>
    %68 = vector.shape_cast %67 : vector<1x8x16x4xbf16> to vector<8x16x4xbf16>
    %69 = vector.shape_cast %68 : vector<8x16x4xbf16> to vector<128x4xbf16>
    %c32 = arith.constant 32 : index
    %c0_47 = arith.constant 0 : index
    %70 = vector.load %arg3[%c32, %c0_47] : memref<36x128xbf16, #tpu.memory_space<vmem>>, vector<4x128xbf16>
    %cst_48 = arith.constant dense<0.000000e+00> : vector<128x128xf32>
    %71 = tpu.matmul %69, %70, %cst_48 {dimension_numbers = #tpu.dot_dimension_numbers<[1], [0], [0], [1], [0, 0, 1, 1], [], []>} : vector<128x4xbf16>, vector<4x128xbf16>, vector<128x128xf32> -> vector<128x128xf32>
    %72 = arith.addf %64, %71 : vector<128x128xf32>
    %73 = vector.shape_cast %72 : vector<128x128xf32> to vector<1x8x16x128xf32>
    %74 = arith.truncf %73 : vector<1x8x16x128xf32> to vector<1x8x16x128xbf16>
    %c0_49 = arith.constant 0 : index
    %c0_50 = arith.constant 0 : index
    %c0_51 = arith.constant 0 : index
    %c0_52 = arith.constant 0 : index
    %75 = vector.load %arg4[%c0_49, %c0_50, %c0_51, %c0_52] : memref<1x8x16x128xbf16, #tpu.memory_space<vmem>>, vector<1x8x16x128xbf16>
    tpu.vector_store %arg4[%c0_49, %c0_50, %c0_51, %c0_52], %74 {strides = array<i32>} : memref<1x8x16x128xbf16, #tpu.memory_space<vmem>>, vector<1x8x16x128xbf16>,
    %cst_53 = arith.constant dense<0.000000e+00> : vector<128xf32>
    %76 = vector.multi_reduction <add>, %72, %cst_53 [0] : vector<128x128xf32> to vector<128xf32>
    %77 = vector.shape_cast %76 : vector<128xf32> to vector<1x128xf32>
    %78 = arith.mulf %72, %72 : vector<128x128xf32>
    %cst_54 = arith.constant dense<0.000000e+00> : vector<128xf32>
    %79 = vector.multi_reduction <add>, %78, %cst_54 [0] : vector<128x128xf32> to vector<128xf32>
    %80 = vector.shape_cast %79 : vector<128xf32> to vector<1x128xf32>
    %81 = tpu.concatenate %77, %80 in 0 : vector<1x128xf32>, vector<1x128xf32> -> vector<2x128xf32>
    %82 = vector.shape_cast %81 : vector<2x128xf32> to vector<1x1x2x128xf32>
    %c0_55 = arith.constant 0 : index
    %c0_56 = arith.constant 0 : index
    %c0_57 = arith.constant 0 : index
    %c0_58 = arith.constant 0 : index
    %83 = vector.load %arg5[%c0_55, %c0_56, %c0_57, %c0_58] : memref<1x1x2x128xf32, #tpu.memory_space<vmem>>, vector<1x1x2x128xf32>
    tpu.vector_store %arg5[%c0_55, %c0_56, %c0_57, %c0_58], %82 {strides = array<i32>} : memref<1x1x2x128xf32, #tpu.memory_space<vmem>>, vector<1x1x2x128xf32>,
    return
  }
  func.func @transform_0(%arg0: i32, %arg1: i32) -> (i32, i32, i32, i32) {
    %c0_i32 = arith.constant 0 : i32
    %c0_i32_0 = arith.constant 0 : i32
    %c0_i32_1 = arith.constant 0 : i32
    %c0_i32_2 = arith.constant 0 : i32
    return %arg0, %c0_i32, %c0_i32_0, %c0_i32_1 : i32, i32, i32, i32
  }
  func.func @transform_1(%arg0: i32, %arg1: i32) -> (i32, i32) {
    %c0_i32 = arith.constant 0 : i32
    %c0_i32_0 = arith.constant 0 : i32
    %c0_i32_1 = arith.constant 0 : i32
    return %c0_i32, %c0_i32_0 : i32, i32
  }
  func.func @transform_2(%arg0: i32, %arg1: i32) -> (i32, i32, i32, i32) {
    %c0_i32 = arith.constant 0 : i32
    %c0_i32_0 = arith.constant 0 : i32
    %c0_i32_1 = arith.constant 0 : i32
    return %arg0, %arg1, %c0_i32, %c0_i32_0 : i32, i32, i32, i32
  }
  func.func @transform_3(%arg0: i32, %arg1: i32) -> (i32, i32, i32, i32) {
    %c0_i32 = arith.constant 0 : i32
    %c0_i32_0 = arith.constant 0 : i32
    %c0_i32_1 = arith.constant 0 : i32
    return %arg0, %arg1, %c0_i32, %c0_i32_0 : i32, i32, i32, i32
  }
}

module attributes {stable_mosaic.version = 11 : i64} {
  func.func @_bn_add_relu_kernel(%arg0: i32, %arg1: i32, %arg2: memref<1x16x16x128xbf16, #tpu.memory_space<vmem>>, %arg3: memref<1x128xf32, #tpu.memory_space<vmem>>, %arg4: memref<1x128xf32, #tpu.memory_space<vmem>>, %arg5: memref<1x16x16x128xbf16, #tpu.memory_space<vmem>>, %arg6: memref<1x16x16x128xf32, #tpu.memory_space<vmem>>) attributes {dimension_semantics = [#tpu.dimension_semantics<parallel>, #tpu.dimension_semantics<parallel>], iteration_bounds = array<i64: 2, 1>, scalar_prefetch = 0 : i64, scratch_operands = 0 : i64, tpu.core_type = #tpu.core_type<tc>, window_params = [{transform_indices = @transform_0, window_bounds = array<i64: 1, 16, 16, 128>}, {pipeline_mode = #tpu.pipeline_mode<synchronous>, transform_indices = @transform_1, window_bounds = array<i64: 1, 128>}, {pipeline_mode = #tpu.pipeline_mode<synchronous>, transform_indices = @transform_2, window_bounds = array<i64: 1, 128>}, {transform_indices = @transform_3, window_bounds = array<i64: 1, 16, 16, 128>}, {transform_indices = @transform_4, window_bounds = array<i64: 1, 16, 16, 128>}]} {
    %c0 = arith.constant 0 : index
    %c0_0 = arith.constant 0 : index
    %c0_1 = arith.constant 0 : index
    %c0_2 = arith.constant 0 : index
    %0 = vector.load %arg2[%c0, %c0_0, %c0_1, %c0_2] : memref<1x16x16x128xbf16, #tpu.memory_space<vmem>>, vector<1x16x16x128xbf16>
    %1 = arith.extf %0 : vector<1x16x16x128xbf16> to vector<1x16x16x128xf32>
    %c0_3 = arith.constant 0 : index
    %c0_4 = arith.constant 0 : index
    %2 = vector.load %arg3[%c0_3, %c0_4] : memref<1x128xf32, #tpu.memory_space<vmem>>, vector<1x128xf32>
    %3 = vector.shape_cast %2 : vector<1x128xf32> to vector<1x1x1x128xf32>
    %4 = vector.broadcast %3 : vector<1x1x1x128xf32> to vector<1x16x16x128xf32>
    %5 = arith.mulf %1, %4 : vector<1x16x16x128xf32>
    %c0_5 = arith.constant 0 : index
    %c0_6 = arith.constant 0 : index
    %6 = vector.load %arg4[%c0_5, %c0_6] : memref<1x128xf32, #tpu.memory_space<vmem>>, vector<1x128xf32>
    %7 = vector.shape_cast %6 : vector<1x128xf32> to vector<1x1x1x128xf32>
    %8 = vector.broadcast %7 : vector<1x1x1x128xf32> to vector<1x16x16x128xf32>
    %9 = arith.addf %5, %8 : vector<1x16x16x128xf32>
    %c0_7 = arith.constant 0 : index
    %c0_8 = arith.constant 0 : index
    %c0_9 = arith.constant 0 : index
    %c0_10 = arith.constant 0 : index
    %10 = vector.load %arg5[%c0_7, %c0_8, %c0_9, %c0_10] : memref<1x16x16x128xbf16, #tpu.memory_space<vmem>>, vector<1x16x16x128xbf16>
    %11 = arith.extf %10 : vector<1x16x16x128xbf16> to vector<1x16x16x128xf32>
    %12 = arith.addf %9, %11 : vector<1x16x16x128xf32>
    %cst = arith.constant 0.000000e+00 : f32
    %13 = vector.broadcast %cst : f32 to vector<1x16x16x128xf32>
    %14 = arith.maximumf %12, %13 : vector<1x16x16x128xf32>
    %c0_11 = arith.constant 0 : index
    %c0_12 = arith.constant 0 : index
    %c0_13 = arith.constant 0 : index
    %c0_14 = arith.constant 0 : index
    %15 = vector.load %arg6[%c0_11, %c0_12, %c0_13, %c0_14] : memref<1x16x16x128xf32, #tpu.memory_space<vmem>>, vector<1x16x16x128xf32>
    tpu.vector_store %arg6[%c0_11, %c0_12, %c0_13, %c0_14], %14 {strides = array<i32>} : memref<1x16x16x128xf32, #tpu.memory_space<vmem>>, vector<1x16x16x128xf32>,
    return
  }
  func.func @transform_0(%arg0: i32, %arg1: i32) -> (i32, i32, i32, i32) {
    %c0_i32 = arith.constant 0 : i32
    %c0_i32_0 = arith.constant 0 : i32
    %c0_i32_1 = arith.constant 0 : i32
    return %arg0, %arg1, %c0_i32, %c0_i32_0 : i32, i32, i32, i32
  }
  func.func @transform_1(%arg0: i32, %arg1: i32) -> (i32, i32) {
    %c0_i32 = arith.constant 0 : i32
    %c0_i32_0 = arith.constant 0 : i32
    %c0_i32_1 = arith.constant 0 : i32
    return %c0_i32, %c0_i32_0 : i32, i32
  }
  func.func @transform_2(%arg0: i32, %arg1: i32) -> (i32, i32) {
    %c0_i32 = arith.constant 0 : i32
    %c0_i32_0 = arith.constant 0 : i32
    %c0_i32_1 = arith.constant 0 : i32
    return %c0_i32, %c0_i32_0 : i32, i32
  }
  func.func @transform_3(%arg0: i32, %arg1: i32) -> (i32, i32, i32, i32) {
    %c0_i32 = arith.constant 0 : i32
    %c0_i32_0 = arith.constant 0 : i32
    %c0_i32_1 = arith.constant 0 : i32
    return %arg0, %arg1, %c0_i32, %c0_i32_0 : i32, i32, i32, i32
  }
  func.func @transform_4(%arg0: i32, %arg1: i32) -> (i32, i32, i32, i32) {
    %c0_i32 = arith.constant 0 : i32
    %c0_i32_0 = arith.constant 0 : i32
    %c0_i32_1 = arith.constant 0 : i32
    return %arg0, %arg1, %c0_i32, %c0_i32_0 : i32, i32, i32, i32
  }
}

module attributes {stable_mosaic.version = 11 : i64} {
  func.func @_bn_relu_conv_stats_kernel(%arg0: i32, %arg1: i32, %arg2: memref<1x16x16x128xbf16, #tpu.memory_space<vmem>>, %arg3: memref<1x128xf32, #tpu.memory_space<vmem>>, %arg4: memref<1x128xf32, #tpu.memory_space<vmem>>, %arg5: memref<1152x128xbf16, #tpu.memory_space<vmem>>, %arg6: memref<1x8x16x128xbf16, #tpu.memory_space<vmem>>, %arg7: memref<1x1x2x128xf32, #tpu.memory_space<vmem>>, %arg8: memref<18x18x128xbf16, #tpu.memory_space<vmem>>) attributes {dimension_semantics = [#tpu.dimension_semantics<parallel>, #tpu.dimension_semantics<arbitrary>], iteration_bounds = array<i64: 2, 2>, scalar_prefetch = 0 : i64, scratch_operands = 1 : i64, tpu.core_type = #tpu.core_type<tc>, window_params = [{transform_indices = @transform_0, window_bounds = array<i64: 1, 16, 16, 128>}, {pipeline_mode = #tpu.pipeline_mode<synchronous>, transform_indices = @transform_1, window_bounds = array<i64: 1, 128>}, {pipeline_mode = #tpu.pipeline_mode<synchronous>, transform_indices = @transform_2, window_bounds = array<i64: 1, 128>}, {pipeline_mode = #tpu.pipeline_mode<synchronous>, transform_indices = @transform_3, window_bounds = array<i64: 1152, 128>}, {transform_indices = @transform_4, window_bounds = array<i64: 1, 8, 16, 128>}, {transform_indices = @transform_5, window_bounds = array<i64: 1, 1, 2, 128>}]} {
    %c0_i32 = arith.constant 0 : i32
    %0 = arith.cmpi eq, %arg1, %c0_i32 : i32
    %1 = arith.extui %0 : i1 to i32
    %c0_i32_0 = arith.constant 0 : i32
    %2 = arith.cmpi ne, %1, %c0_i32_0 : i32
    scf.if %2 {
      %cst_51 = arith.constant 0.000000e+00 : bf16
      %77 = vector.broadcast %cst_51 : bf16 to vector<18x18x128xbf16>
      %c0_52 = arith.constant 0 : index
      %c0_53 = arith.constant 0 : index
      %c0_54 = arith.constant 0 : index
      %78 = vector.load %arg8[%c0_52, %c0_53, %c0_54] : memref<18x18x128xbf16, #tpu.memory_space<vmem>>, vector<18x18x128xbf16>
      tpu.vector_store %arg8[%c0_52, %c0_53, %c0_54], %77 {strides = array<i32>} : memref<18x18x128xbf16, #tpu.memory_space<vmem>>, vector<18x18x128xbf16>,
      %c0_55 = arith.constant 0 : index
      %c0_56 = arith.constant 0 : index
      %c0_57 = arith.constant 0 : index
      %c0_58 = arith.constant 0 : index
      %79 = vector.load %arg2[%c0_55, %c0_56, %c0_57, %c0_58] : memref<1x16x16x128xbf16, #tpu.memory_space<vmem>>, vector<1x16x16x128xbf16>
      %80 = vector.shape_cast %79 : vector<1x16x16x128xbf16> to vector<16x16x128xbf16>
      %81 = arith.extf %80 : vector<16x16x128xbf16> to vector<16x16x128xf32>
      %c0_59 = arith.constant 0 : index
      %c0_60 = arith.constant 0 : index
      %82 = vector.load %arg3[%c0_59, %c0_60] : memref<1x128xf32, #tpu.memory_space<vmem>>, vector<1x128xf32>
      %83 = vector.shape_cast %82 : vector<1x128xf32> to vector<1x1x128xf32>
      %84 = vector.broadcast %83 : vector<1x1x128xf32> to vector<16x16x128xf32>
      %85 = arith.mulf %81, %84 : vector<16x16x128xf32>
      %c0_61 = arith.constant 0 : index
      %c0_62 = arith.constant 0 : index
      %86 = vector.load %arg4[%c0_61, %c0_62] : memref<1x128xf32, #tpu.memory_space<vmem>>, vector<1x128xf32>
      %87 = vector.shape_cast %86 : vector<1x128xf32> to vector<1x1x128xf32>
      %88 = vector.broadcast %87 : vector<1x1x128xf32> to vector<16x16x128xf32>
      %89 = arith.addf %85, %88 : vector<16x16x128xf32>
      %cst_63 = arith.constant 0.000000e+00 : f32
      %90 = vector.broadcast %cst_63 : f32 to vector<16x16x128xf32>
      %91 = arith.maximumf %89, %90 : vector<16x16x128xf32>
      %92 = arith.truncf %91 : vector<16x16x128xf32> to vector<16x16x128xbf16>
      %c1_64 = arith.constant 1 : index
      %c1_65 = arith.constant 1 : index
      %c0_66 = arith.constant 0 : index
      %93 = vector.load %arg8[%c1_64, %c1_65, %c0_66] : memref<18x18x128xbf16, #tpu.memory_space<vmem>>, vector<16x16x128xbf16>
      tpu.vector_store %arg8[%c1_64, %c1_65, %c0_66], %92 {strides = array<i32>} : memref<18x18x128xbf16, #tpu.memory_space<vmem>>, vector<16x16x128xbf16>,
    } else {
    }
    %c8_i32 = arith.constant 8 : i32
    %3 = arith.muli %arg1, %c8_i32 : i32
    %c0_i32_1 = arith.constant 0 : i32
    %4 = arith.addi %3, %c0_i32_1 : i32
    %5 = arith.index_cast %4 : i32 to index
    %c0 = arith.constant 0 : index
    %c0_2 = arith.constant 0 : index
    %6 = vector.load %arg8[%5, %c0, %c0_2] : memref<18x18x128xbf16, #tpu.memory_space<vmem>>, vector<8x16x128xbf16>
    %7 = vector.shape_cast %6 : vector<8x16x128xbf16> to vector<128x128xbf16>
    %c0_3 = arith.constant 0 : index
    %c0_4 = arith.constant 0 : index
    %8 = vector.load %arg5[%c0_3, %c0_4] : memref<1152x128xbf16, #tpu.memory_space<vmem>>, vector<128x128xbf16>
    %cst = arith.constant dense<0.000000e+00> : vector<128x128xf32>
    %9 = tpu.matmul %7, %8, %cst {dimension_numbers = #tpu.dot_dimension_numbers<[1], [0], [0], [1], [0, 0, 1, 1], [], []>} : vector<128x128xbf16>, vector<128x128xbf16>, vector<128x128xf32> -> vector<128x128xf32>
    %c0_i32_5 = arith.constant 0 : i32
    %10 = arith.addi %3, %c0_i32_5 : i32
    %11 = arith.index_cast %10 : i32 to index
    %c1 = arith.constant 1 : index
    %c0_6 = arith.constant 0 : index
    %12 = vector.load %arg8[%11, %c1, %c0_6] : memref<18x18x128xbf16, #tpu.memory_space<vmem>>, vector<8x16x128xbf16>
    %13 = vector.shape_cast %12 : vector<8x16x128xbf16> to vector<128x128xbf16>
    %c128 = arith.constant 128 : index
    %c0_7 = arith.constant 0 : index
    %14 = vector.load %arg5[%c128, %c0_7] : memref<1152x128xbf16, #tpu.memory_space<vmem>>, vector<128x128xbf16>
    %cst_8 = arith.constant dense<0.000000e+00> : vector<128x128xf32>
    %15 = tpu.matmul %13, %14, %cst_8 {dimension_numbers = #tpu.dot_dimension_numbers<[1], [0], [0], [1], [0, 0, 1, 1], [], []>} : vector<128x128xbf16>, vector<128x128xbf16>, vector<128x128xf32> -> vector<128x128xf32>
    %16 = arith.addf %9, %15 : vector<128x128xf32>
    %c0_i32_9 = arith.constant 0 : i32
    %17 = arith.addi %3, %c0_i32_9 : i32
    %18 = arith.index_cast %17 : i32 to index
    %c2 = arith.constant 2 : index
    %c0_10 = arith.constant 0 : index
    %19 = vector.load %arg8[%18, %c2, %c0_10] : memref<18x18x128xbf16, #tpu.memory_space<vmem>>, vector<8x16x128xbf16>
    %20 = vector.shape_cast %19 : vector<8x16x128xbf16> to vector<128x128xbf16>
    %c256 = arith.constant 256 : index
    %c0_11 = arith.constant 0 : index
    %21 = vector.load %arg5[%c256, %c0_11] : memref<1152x128xbf16, #tpu.memory_space<vmem>>, vector<128x128xbf16>
    %cst_12 = arith.constant dense<0.000000e+00> : vector<128x128xf32>
    %22 = tpu.matmul %20, %21, %cst_12 {dimension_numbers = #tpu.dot_dimension_numbers<[1], [0], [0], [1], [0, 0, 1, 1], [], []>} : vector<128x128xbf16>, vector<128x128xbf16>, vector<128x128xf32> -> vector<128x128xf32>
    %23 = arith.addf %16, %22 : vector<128x128xf32>
    %c1_i32 = arith.constant 1 : i32
    %24 = arith.addi %3, %c1_i32 : i32
    %25 = arith.index_cast %24 : i32 to index
    %c0_13 = arith.constant 0 : index
    %c0_14 = arith.constant 0 : index
    %26 = vector.load %arg8[%25, %c0_13, %c0_14] : memref<18x18x128xbf16, #tpu.memory_space<vmem>>, vector<8x16x128xbf16>
    %27 = vector.shape_cast %26 : vector<8x16x128xbf16> to vector<128x128xbf16>
    %c384 = arith.constant 384 : index
    %c0_15 = arith.constant 0 : index
    %28 = vector.load %arg5[%c384, %c0_15] : memref<1152x128xbf16, #tpu.memory_space<vmem>>, vector<128x128xbf16>
    %cst_16 = arith.constant dense<0.000000e+00> : vector<128x128xf32>
    %29 = tpu.matmul %27, %28, %cst_16 {dimension_numbers = #tpu.dot_dimension_numbers<[1], [0], [0], [1], [0, 0, 1, 1], [], []>} : vector<128x128xbf16>, vector<128x128xbf16>, vector<128x128xf32> -> vector<128x128xf32>
    %30 = arith.addf %23, %29 : vector<128x128xf32>
    %c1_i32_17 = arith.constant 1 : i32
    %31 = arith.addi %3, %c1_i32_17 : i32
    %32 = arith.index_cast %31 : i32 to index
    %c1_18 = arith.constant 1 : index
    %c0_19 = arith.constant 0 : index
    %33 = vector.load %arg8[%32, %c1_18, %c0_19] : memref<18x18x128xbf16, #tpu.memory_space<vmem>>, vector<8x16x128xbf16>
    %34 = vector.shape_cast %33 : vector<8x16x128xbf16> to vector<128x128xbf16>
    %c512 = arith.constant 512 : index
    %c0_20 = arith.constant 0 : index
    %35 = vector.load %arg5[%c512, %c0_20] : memref<1152x128xbf16, #tpu.memory_space<vmem>>, vector<128x128xbf16>
    %cst_21 = arith.constant dense<0.000000e+00> : vector<128x128xf32>
    %36 = tpu.matmul %34, %35, %cst_21 {dimension_numbers = #tpu.dot_dimension_numbers<[1], [0], [0], [1], [0, 0, 1, 1], [], []>} : vector<128x128xbf16>, vector<128x128xbf16>, vector<128x128xf32> -> vector<128x128xf32>
    %37 = arith.addf %30, %36 : vector<128x128xf32>
    %c1_i32_22 = arith.constant 1 : i32
    %38 = arith.addi %3, %c1_i32_22 : i32
    %39 = arith.index_cast %38 : i32 to index
    %c2_23 = arith.constant 2 : index
    %c0_24 = arith.constant 0 : index
    %40 = vector.load %arg8[%39, %c2_23, %c0_24] : memref<18x18x128xbf16, #tpu.memory_space<vmem>>, vector<8x16x128xbf16>
    %41 = vector.shape_cast %40 : vector<8x16x128xbf16> to vector<128x128xbf16>
    %c640 = arith.constant 640 : index
    %c0_25 = arith.constant 0 : index
    %42 = vector.load %arg5[%c640, %c0_25] : memref<1152x128xbf16, #tpu.memory_space<vmem>>, vector<128x128xbf16>
    %cst_26 = arith.constant dense<0.000000e+00> : vector<128x128xf32>
    %43 = tpu.matmul %41, %42, %cst_26 {dimension_numbers = #tpu.dot_dimension_numbers<[1], [0], [0], [1], [0, 0, 1, 1], [], []>} : vector<128x128xbf16>, vector<128x128xbf16>, vector<128x128xf32> -> vector<128x128xf32>
    %44 = arith.addf %37, %43 : vector<128x128xf32>
    %c2_i32 = arith.constant 2 : i32
    %45 = arith.addi %3, %c2_i32 : i32
    %46 = arith.index_cast %45 : i32 to index
    %c0_27 = arith.constant 0 : index
    %c0_28 = arith.constant 0 : index
    %47 = vector.load %arg8[%46, %c0_27, %c0_28] : memref<18x18x128xbf16, #tpu.memory_space<vmem>>, vector<8x16x128xbf16>
    %48 = vector.shape_cast %47 : vector<8x16x128xbf16> to vector<128x128xbf16>
    %c768 = arith.constant 768 : index
    %c0_29 = arith.constant 0 : index
    %49 = vector.load %arg5[%c768, %c0_29] : memref<1152x128xbf16, #tpu.memory_space<vmem>>, vector<128x128xbf16>
    %cst_30 = arith.constant dense<0.000000e+00> : vector<128x128xf32>
    %50 = tpu.matmul %48, %49, %cst_30 {dimension_numbers = #tpu.dot_dimension_numbers<[1], [0], [0], [1], [0, 0, 1, 1], [], []>} : vector<128x128xbf16>, vector<128x128xbf16>, vector<128x128xf32> -> vector<128x128xf32>
    %51 = arith.addf %44, %50 : vector<128x128xf32>
    %c2_i32_31 = arith.constant 2 : i32
    %52 = arith.addi %3, %c2_i32_31 : i32
    %53 = arith.index_cast %52 : i32 to index
    %c1_32 = arith.constant 1 : index
    %c0_33 = arith.constant 0 : index
    %54 = vector.load %arg8[%53, %c1_32, %c0_33] : memref<18x18x128xbf16, #tpu.memory_space<vmem>>, vector<8x16x128xbf16>
    %55 = vector.shape_cast %54 : vector<8x16x128xbf16> to vector<128x128xbf16>
    %c896 = arith.constant 896 : index
    %c0_34 = arith.constant 0 : index
    %56 = vector.load %arg5[%c896, %c0_34] : memref<1152x128xbf16, #tpu.memory_space<vmem>>, vector<128x128xbf16>
    %cst_35 = arith.constant dense<0.000000e+00> : vector<128x128xf32>
    %57 = tpu.matmul %55, %56, %cst_35 {dimension_numbers = #tpu.dot_dimension_numbers<[1], [0], [0], [1], [0, 0, 1, 1], [], []>} : vector<128x128xbf16>, vector<128x128xbf16>, vector<128x128xf32> -> vector<128x128xf32>
    %58 = arith.addf %51, %57 : vector<128x128xf32>
    %c2_i32_36 = arith.constant 2 : i32
    %59 = arith.addi %3, %c2_i32_36 : i32
    %60 = arith.index_cast %59 : i32 to index
    %c2_37 = arith.constant 2 : index
    %c0_38 = arith.constant 0 : index
    %61 = vector.load %arg8[%60, %c2_37, %c0_38] : memref<18x18x128xbf16, #tpu.memory_space<vmem>>, vector<8x16x128xbf16>
    %62 = vector.shape_cast %61 : vector<8x16x128xbf16> to vector<128x128xbf16>
    %c1024 = arith.constant 1024 : index
    %c0_39 = arith.constant 0 : index
    %63 = vector.load %arg5[%c1024, %c0_39] : memref<1152x128xbf16, #tpu.memory_space<vmem>>, vector<128x128xbf16>
    %cst_40 = arith.constant dense<0.000000e+00> : vector<128x128xf32>
    %64 = tpu.matmul %62, %63, %cst_40 {dimension_numbers = #tpu.dot_dimension_numbers<[1], [0], [0], [1], [0, 0, 1, 1], [], []>} : vector<128x128xbf16>, vector<128x128xbf16>, vector<128x128xf32> -> vector<128x128xf32>
    %65 = arith.addf %58, %64 : vector<128x128xf32>
    %66 = vector.shape_cast %65 : vector<128x128xf32> to vector<1x8x16x128xf32>
    %67 = arith.truncf %66 : vector<1x8x16x128xf32> to vector<1x8x16x128xbf16>
    %c0_41 = arith.constant 0 : index
    %c0_42 = arith.constant 0 : index
    %c0_43 = arith.constant 0 : index
    %c0_44 = arith.constant 0 : index
    %68 = vector.load %arg6[%c0_41, %c0_42, %c0_43, %c0_44] : memref<1x8x16x128xbf16, #tpu.memory_space<vmem>>, vector<1x8x16x128xbf16>
    tpu.vector_store %arg6[%c0_41, %c0_42, %c0_43, %c0_44], %67 {strides = array<i32>} : memref<1x8x16x128xbf16, #tpu.memory_space<vmem>>, vector<1x8x16x128xbf16>,
    %cst_45 = arith.constant dense<0.000000e+00> : vector<128xf32>
    %69 = vector.multi_reduction <add>, %65, %cst_45 [0] : vector<128x128xf32> to vector<128xf32>
    %70 = vector.shape_cast %69 : vector<128xf32> to vector<1x128xf32>
    %71 = arith.mulf %65, %65 : vector<128x128xf32>
    %cst_46 = arith.constant dense<0.000000e+00> : vector<128xf32>
    %72 = vector.multi_reduction <add>, %71, %cst_46 [0] : vector<128x128xf32> to vector<128xf32>
    %73 = vector.shape_cast %72 : vector<128xf32> to vector<1x128xf32>
    %74 = tpu.concatenate %70, %73 in 0 : vector<1x128xf32>, vector<1x128xf32> -> vector<2x128xf32>
    %75 = vector.shape_cast %74 : vector<2x128xf32> to vector<1x1x2x128xf32>
    %c0_47 = arith.constant 0 : index
    %c0_48 = arith.constant 0 : index
    %c0_49 = arith.constant 0 : index
    %c0_50 = arith.constant 0 : index
    %76 = vector.load %arg7[%c0_47, %c0_48, %c0_49, %c0_50] : memref<1x1x2x128xf32, #tpu.memory_space<vmem>>, vector<1x1x2x128xf32>
    tpu.vector_store %arg7[%c0_47, %c0_48, %c0_49, %c0_50], %75 {strides = array<i32>} : memref<1x1x2x128xf32, #tpu.memory_space<vmem>>, vector<1x1x2x128xf32>,
    return
  }
  func.func @transform_0(%arg0: i32, %arg1: i32) -> (i32, i32, i32, i32) {
    %c0_i32 = arith.constant 0 : i32
    %c0_i32_0 = arith.constant 0 : i32
    %c0_i32_1 = arith.constant 0 : i32
    %c0_i32_2 = arith.constant 0 : i32
    return %arg0, %c0_i32, %c0_i32_0, %c0_i32_1 : i32, i32, i32, i32
  }
  func.func @transform_1(%arg0: i32, %arg1: i32) -> (i32, i32) {
    %c0_i32 = arith.constant 0 : i32
    %c0_i32_0 = arith.constant 0 : i32
    %c0_i32_1 = arith.constant 0 : i32
    return %c0_i32, %c0_i32_0 : i32, i32
  }
  func.func @transform_2(%arg0: i32, %arg1: i32) -> (i32, i32) {
    %c0_i32 = arith.constant 0 : i32
    %c0_i32_0 = arith.constant 0 : i32
    %c0_i32_1 = arith.constant 0 : i32
    return %c0_i32, %c0_i32_0 : i32, i32
  }
  func.func @transform_3(%arg0: i32, %arg1: i32) -> (i32, i32) {
    %c0_i32 = arith.constant 0 : i32
    %c0_i32_0 = arith.constant 0 : i32
    %c0_i32_1 = arith.constant 0 : i32
    return %c0_i32, %c0_i32_0 : i32, i32
  }
  func.func @transform_4(%arg0: i32, %arg1: i32) -> (i32, i32, i32, i32) {
    %c0_i32 = arith.constant 0 : i32
    %c0_i32_0 = arith.constant 0 : i32
    %c0_i32_1 = arith.constant 0 : i32
    return %arg0, %arg1, %c0_i32, %c0_i32_0 : i32, i32, i32, i32
  }
  func.func @transform_5(%arg0: i32, %arg1: i32) -> (i32, i32, i32, i32) {
    %c0_i32 = arith.constant 0 : i32
    %c0_i32_0 = arith.constant 0 : i32
    %c0_i32_1 = arith.constant 0 : i32
    return %arg0, %arg1, %c0_i32, %c0_i32_0 : i32, i32, i32, i32
  }
}

</mosaic_0001>

<bundles_post_ra>
// kernel: basic_block_forward.5
= control target key start
LH: loop header
LB: loop body
LE: loop exit
PB: predicated region body
PF: predicated region fallthrough
CT: control target
= control target key end

     0   :  { %s949_s15 = smov 0   ;;  %s951_s16 = smov 0   ;;  %s1133_s0 = inlined_call_operand.vmem [shape: bf16[2,16,16,128], index: 0, kind: input, shape index: {}]   ;;  %s1134_s1 = inlined_call_operand.vmem [shape: f32[1,128], index: 1, kind: input, shape index: {}]   ;;  %s1135_s2 = inlined_call_operand.vmem [shape: f32[1,128], index: 2, kind: input, shape index: {}]   ;;  %s1136_s3 = inlined_call_operand.vmem [shape: bf16[2,16,16,128], index: 3, kind: input, shape index: {}]   ;;  %s1137_s4 = inlined_call_operand.vmem [shape: f32[2,16,16,128], index: 4, kind: output, shape index: {}]  }
   0x1   :  { %s953_s17 = smov 0  }
   0x2 LB: > { %s26_s18 = sadd.s32 1, %s918_s16  ;;  %p704_p0 = scmp.ge.s32.totalorder %s922_s17, 1  ;;  %s922_s17 = sphi %s953_s17, %s14_s17   ;;  %s918_s16 = sphi %s951_s16, %s1139_s16   ;;  %s914_s15 = sphi %s949_s15, %s1138_s15  }
   0x3   : > { %p28_p1 = scmp.ge.s32.totalorder %s26_s18, 2  ;;  %p202_p2 = scmp.lt.s32.totalorder %s922_s17, 3 }
   0x5   : > { %s1141_s18 = smov (%p28_p1, %s26_s18), 0  ;;  %p203_p3 = pnand %p704_p0, %p202_p2 }
   0x6   : > { %p249_p4 = scmp.lt.s32.totalorder (!%p203_p3), %s914_s15, 1  ;;  %v983_v0 = vld [vmem:[%s1134_s1] ss:$0 sm:$0xff] (!%p203_p3) }
   0x7   : > { %206 = sbr.rel (%p203_p3) target bundleno = 72 (0x48), region = 36  ;;  %v994_v11 = vld [vmem:[%s1135_s2] ss:$0 sm:$0xff] (!%p203_p3) }
   0xe   : > { %s1143_s15 = smov (!%p249_p4, %s914_s15), 1 }
   0xf   : > { %s715_s19 = sshll.u32 %s1143_s15, 7  ;;  %s717_s30 = sshll.u32 %s1143_s15, 8 }
  0x10   : > { %s973_s22 = scalar_lea.vmem %s1133_s0, %s715_s19  ;;  %s978_s25 = scalar_lea.vmem %s1136_s3, %s715_s19 }
  0x11   : > { %v719_v1 = vld [vmem:[%s973_s22] sm:$0xff]   ;;  %v846_v3 = vld [vmem:[%s973_s22 + $0x8] sm:$0xff]   ;;  %v847_v9 = vld [vmem:[%s973_s22 + $0x10] sm:$0xff]   ;;  %s1014_s7 = scalar_lea.vmem %s1137_s4, %s717_s30 }
  0x12   : > { %v783_v2 = vld [vmem:[%s978_s25] sm:$0xff]   ;;  %v720_v4 = vunpack.c.l.bf16 %v719_v1  ;;  %v721_v6 = vunpack.c.h.bf16 %v719_v1  ;;  %v861_v8 = vld [vmem:[%s978_s25 + $0x8] sm:$0xff]   ;;  %v862_v10 = vld [vmem:[%s978_s25 + $0x10] sm:$0xff]   ;;  %v724_v12 = vunpack.c.l.bf16 %v846_v3  ;;  %v725_v14 = vunpack.c.h.bf16 %v846_v3 }
  0x13   : > { %v784_v5 = vunpack.c.l.bf16 %v783_v2  ;;  %v785_v7 = vunpack.c.h.bf16 %v783_v2  ;;  %v788_v13 = vunpack.c.l.bf16 %v861_v8  ;;  %v789_v15 = vunpack.c.h.bf16 %v861_v8  ;;  %v848_v16 = vld [vmem:[%s973_s22 + $0x18] sm:$0xff]   ;;  %v849_v42 = vld [vmem:[%s973_s22 + $0x20] sm:$0xff]   ;;  %v850_v52 = vld [vmem:[%s973_s22 + $0x28] sm:$0xff]  }
  0x14   : > { %v352_v17 = vmul.f32 %v720_v4, %v983_v0  ;;  %v353_v18 = vmul.f32 %v721_v6, %v983_v0  ;;  %v728_v19 = vunpack.c.l.bf16 %v847_v9  ;;  %v792_v20 = vunpack.c.l.bf16 %v862_v10  ;;  %v863_v21 = vld [vmem:[%s978_s25 + $0x18] sm:$0xff]   ;;  %v864_v47 = vld [vmem:[%s978_s25 + $0x20] sm:$0xff]   ;;  %v865_v57 = vld [vmem:[%s978_s25 + $0x28] sm:$0xff]  }
  0x15   : > { %v354_v22 = vmul.f32 %v724_v12, %v983_v0  ;;  %v355_v23 = vmul.f32 %v725_v14, %v983_v0  ;;  %v729_v24 = vunpack.c.h.bf16 %v847_v9  ;;  %v793_v25 = vunpack.c.h.bf16 %v862_v10  ;;  %v851_v62 = vld [vmem:[%s973_s22 + $0x30] sm:$0xff]   ;;  %v852_v14 = vld [vmem:[%s973_s22 + $0x38] sm:$0xff]  }
  0x16   : > { %v391_v26 = vadd.f32 %v994_v11, %v352_v17  ;;  %v392_v27 = vadd.f32 %v994_v11, %v353_v18  ;;  %v356_v28 = vmul.f32 %v728_v19, %v983_v0  ;;  %v732_v29 = vunpack.c.l.bf16 %v848_v16  ;;  %v866_v4 = vld [vmem:[%s978_s25 + $0x30] sm:$0xff]  }
  0x17   : > { %v393_v30 = vadd.f32 %v994_v11, %v354_v22  ;;  %v394_v31 = vadd.f32 %v994_v11, %v355_v23  ;;  %v357_v32 = vmul.f32 %v729_v24, %v983_v0  ;;  %v796_v33 = vunpack.c.l.bf16 %v863_v21  ;;  %v867_v23 = vld [vmem:[%s978_s25 + $0x38] sm:$0xff]  }
  0x18   : > { %v487_v34 = vadd.f32 %v784_v5, %v391_v26  ;;  %v488_v35 = vadd.f32 %v785_v7, %v392_v27  ;;  %v395_v36 = vadd.f32 %v994_v11, %v356_v28  ;;  %v358_v37 = vmul.f32 %v732_v29, %v983_v0 }
  0x19   : > { %v489_v38 = vadd.f32 %v788_v13, %v393_v30  ;;  %v490_v39 = vadd.f32 %v789_v15, %v394_v31  ;;  %v396_v40 = vadd.f32 %v994_v11, %v357_v32  ;;  %v733_v41 = vunpack.c.h.bf16 %v848_v16  ;;  %v853_v32 = vld [vmem:[%s973_s22 + $0x40] sm:$0xff]  }
  0x1a   : > { %v519_v43 = vmax.f32 %v487_v34, 0.0  ;;  %v520_v44 = vmax.f32 %v488_v35, 0.0  ;;  %v491_v45 = vadd.f32 %v792_v20, %v395_v36  ;;  %v397_v46 = vadd.f32 %v994_v11, %v358_v37  ;;  %v868_v37 = vld [vmem:[%s978_s25 + $0x40] sm:$0xff]  }
  0x1b   : > { %v521_v48 = vmax.f32 %v489_v38, 0.0  ;;  %v522_v49 = vmax.f32 %v490_v39, 0.0  ;;  %v492_v50 = vadd.f32 %v793_v25, %v396_v40  ;;  %v359_v51 = vmul.f32 %v733_v41, %v983_v0 }
  0x1c   : > { %551 = vst [vmem:[%s1014_s7] sm:$0xff] %v519_v43  ;;  %552 = vst [vmem:[%s1014_s7 + $0x8] sm:$0xff] %v520_v44  ;;  %v523_v53 = vmax.f32 %v491_v45, 0.0  ;;  %v493_v54 = vadd.f32 %v796_v33, %v397_v46  ;;  %v797_v55 = vunpack.c.h.bf16 %v863_v21  ;;  %v736_v56 = vunpack.c.l.bf16 %v849_v42  ;;  %v854_v46 = vld [vmem:[%s973_s22 + $0x48] sm:$0xff]  }
  0x1d   : > { %553 = vst [vmem:[%s1014_s7 + $0x10] sm:$0xff] %v521_v48  ;;  %554 = vst [vmem:[%s1014_s7 + $0x18] sm:$0xff] %v522_v49  ;;  %v524_v58 = vmax.f32 %v492_v50, 0.0  ;;  %v398_v59 = vadd.f32 %v994_v11, %v359_v51  ;;  %v800_v60 = vunpack.c.l.bf16 %v864_v47  ;;  %v737_v61 = vunpack.c.h.bf16 %v849_v42 }
  0x1e   : > { %555 = vst [vmem:[%s1014_s7 + $0x20] sm:$0xff] %v523_v53  ;;  %v525_v63 = vmax.f32 %v493_v54, 0.0  ;;  %v360_v1 = vmul.f32 %v736_v56, %v983_v0  ;;  %v801_v2 = vunpack.c.h.bf16 %v864_v47  ;;  %v740_v3 = vunpack.c.l.bf16 %v850_v52  ;;  %v869_v47 = vld [vmem:[%s978_s25 + $0x48] sm:$0xff]   ;;  %v855_v56 = vld [vmem:[%s973_s22 + $0x50] sm:$0xff]  }
  0x1f   : > { %556 = vst [vmem:[%s1014_s7 + $0x28] sm:$0xff] %v524_v58  ;;  %v494_v5 = vadd.f32 %v797_v55, %v398_v59  ;;  %v361_v6 = vmul.f32 %v737_v61, %v983_v0  ;;  %v804_v7 = vunpack.c.l.bf16 %v865_v57  ;;  %v741_v8 = vunpack.c.h.bf16 %v850_v52  ;;  %v870_v61 = vld [vmem:[%s978_s25 + $0x50] sm:$0xff]  }
  0x20   : > { %557 = vst [vmem:[%s1014_s7 + $0x30] sm:$0xff] %v525_v63  ;;  %v399_v9 = vadd.f32 %v994_v11, %v360_v1  ;;  %v362_v10 = vmul.f32 %v740_v3, %v983_v0  ;;  %v805_v12 = vunpack.c.h.bf16 %v865_v57  ;;  %v744_v13 = vunpack.c.l.bf16 %v851_v62 }
  0x21   : > { %v526_v15 = vmax.f32 %v494_v5, 0.0  ;;  %v400_v16 = vadd.f32 %v994_v11, %v361_v6  ;;  %v363_v17 = vmul.f32 %v741_v8, %v983_v0  ;;  %v808_v18 = vunpack.c.l.bf16 %v866_v4 }
  0x22   : > { %v495_v19 = vadd.f32 %v800_v60, %v399_v9  ;;  %v401_v20 = vadd.f32 %v994_v11, %v362_v10  ;;  %v364_v21 = vmul.f32 %v744_v13, %v983_v0  ;;  %v745_v22 = vunpack.c.h.bf16 %v851_v62 }
  0x23   : > { %558 = vst [vmem:[%s1014_s7 + $0x38] sm:$0xff] %v526_v15  ;;  %v496_v24 = vadd.f32 %v801_v2, %v400_v16  ;;  %v402_v25 = vadd.f32 %v994_v11, %v363_v17  ;;  %v809_v26 = vunpack.c.h.bf16 %v866_v4  ;;  %v748_v27 = vunpack.c.l.bf16 %v852_v14  ;;  %v871_v17 = vld [vmem:[%s978_s25 + $0x58] sm:$0xff]  }
  0x24   : > { %v527_v28 = vmax.f32 %v495_v19, 0.0  ;;  %v497_v29 = vadd.f32 %v804_v7, %v401_v20  ;;  %v403_v30 = vadd.f32 %v994_v11, %v364_v21  ;;  %v365_v31 = vmul.f32 %v745_v22, %v983_v0 }
  0x25   : > { %v528_v33 = vmax.f32 %v496_v24, 0.0  ;;  %v498_v34 = vadd.f32 %v805_v12, %v402_v25  ;;  %v366_v35 = vmul.f32 %v748_v27, %v983_v0  ;;  %v812_v36 = vunpack.c.l.bf16 %v867_v23  ;;  %v856_v12 = vld [vmem:[%s973_s22 + $0x58] sm:$0xff]  }
  0x26   : > { %559 = vst [vmem:[%s1014_s7 + $0x40] sm:$0xff] %v527_v28  ;;  %v529_v38 = vmax.f32 %v497_v29, 0.0  ;;  %v499_v39 = vadd.f32 %v808_v18, %v403_v30  ;;  %v404_v40 = vadd.f32 %v994_v11, %v365_v31  ;;  %v749_v41 = vunpack.c.h.bf16 %v852_v14  ;;  %v872_v31 = vld [vmem:[%s978_s25 + $0x60] sm:$0xff]  }
  0x27   : > { %560 = vst [vmem:[%s1014_s7 + $0x48] sm:$0xff] %v528_v33  ;;  %v530_v42 = vmax.f32 %v498_v34, 0.0  ;;  %v405_v43 = vadd.f32 %v994_v11, %v366_v35  ;;  %v813_v44 = vunpack.c.h.bf16 %v867_v23  ;;  %v752_v45 = vunpack.c.l.bf16 %v853_v32 }
  0x28   : > { %561 = vst [vmem:[%s1014_s7 + $0x50] sm:$0xff] %v529_v38  ;;  %v531_v48 = vmax.f32 %v499_v39, 0.0  ;;  %v500_v49 = vadd.f32 %v809_v26, %v404_v40  ;;  %v367_v50 = vmul.f32 %v749_v41, %v983_v0  ;;  %v816_v51 = vunpack.c.l.bf16 %v868_v37  ;;  %v857_v26 = vld [vmem:[%s973_s22 + $0x60] sm:$0xff]   ;;  %v858_v40 = vld [vmem:[%s973_s22 + $0x68] sm:$0xff]  }
  0x29   : > { %562 = vst [vmem:[%s1014_s7 + $0x58] sm:$0xff] %v530_v42  ;;  %v501_v52 = vadd.f32 %v812_v36, %v405_v43  ;;  %v368_v53 = vmul.f32 %v752_v45, %v983_v0  ;;  %v753_v54 = vunpack.c.h.bf16 %v853_v32  ;;  %v817_v55 = vunpack.c.h.bf16 %v868_v37  ;;  %v873_v41 = vld [vmem:[%s978_s25 + $0x68] sm:$0xff]  }
  0x2a   : > { %563 = vst [vmem:[%s1014_s7 + $0x60] sm:$0xff] %v531_v48  ;;  %v532_v57 = vmax.f32 %v500_v49, 0.0  ;;  %v406_v58 = vadd.f32 %v994_v11, %v367_v50  ;;  %v756_v59 = vunpack.c.l.bf16 %v854_v46  ;;  %v820_v60 = vunpack.c.l.bf16 %v869_v47  ;;  %v859_v50 = vld [vmem:[%s973_s22 + $0x70] sm:$0xff]  }
  0x2b   : > { %v533_v62 = vmax.f32 %v501_v52, 0.0  ;;  %v407_v63 = vadd.f32 %v994_v11, %v368_v53  ;;  %v369_v1 = vmul.f32 %v753_v54, %v983_v0  ;;  %v757_v2 = vunpack.c.h.bf16 %v854_v46 }
  0x2c   : > { %564 = vst [vmem:[%s1014_s7 + $0x68] sm:$0xff] %v532_v57  ;;  %v502_v3 = vadd.f32 %v813_v44, %v406_v58  ;;  %v370_v4 = vmul.f32 %v756_v59, %v983_v0  ;;  %v821_v5 = vunpack.c.h.bf16 %v869_v47  ;;  %v760_v6 = vunpack.c.l.bf16 %v855_v56  ;;  %v874_v59 = vld [vmem:[%s978_s25 + $0x70] sm:$0xff]  }
  0x2d   : > { %565 = vst [vmem:[%s1014_s7 + $0x70] sm:$0xff] %v533_v62  ;;  %v503_v7 = vadd.f32 %v816_v51, %v407_v63  ;;  %v408_v8 = vadd.f32 %v994_v11, %v369_v1  ;;  %v371_v9 = vmul.f32 %v757_v2, %v983_v0  ;;  %v824_v10 = vunpack.c.l.bf16 %v870_v61 }
  0x2e   : > { %v534_v13 = vmax.f32 %v502_v3, 0.0  ;;  %v409_v14 = vadd.f32 %v994_v11, %v370_v4  ;;  %v372_v15 = vmul.f32 %v760_v6, %v983_v0  ;;  %v761_v16 = vunpack.c.h.bf16 %v855_v56 }
  0x2f   : > { %v535_v18 = vmax.f32 %v503_v7, 0.0  ;;  %v504_v19 = vadd.f32 %v817_v55, %v408_v8  ;;  %v410_v20 = vadd.f32 %v994_v11, %v371_v9  ;;  %v825_v21 = vunpack.c.h.bf16 %v870_v61 }
  0x30   : > { %566 = vst [vmem:[%s1014_s7 + $0x78] sm:$0xff] %v534_v13  ;;  %v505_v22 = vadd.f32 %v820_v60, %v409_v14  ;;  %v411_v23 = vadd.f32 %v994_v11, %v372_v15  ;;  %v373_v24 = vmul.f32 %v761_v16, %v983_v0  ;;  %v764_v25 = vunpack.c.l.bf16 %v856_v12 }
  0x31   : > { %567 = vst [vmem:[%s1014_s7 + $0x80] sm:$0xff] %v535_v18  ;;  %v536_v27 = vmax.f32 %v504_v19, 0.0  ;;  %v506_v28 = vadd.f32 %v821_v5, %v410_v20  ;;  %v828_v29 = vunpack.c.l.bf16 %v871_v17  ;;  %v765_v30 = vunpack.c.h.bf16 %v856_v12  ;;  %v860_v5 = vld [vmem:[%s973_s22 + $0x78] sm:$0xff]  }
  0x32   : > { %v537_v32 = vmax.f32 %v505_v22, 0.0  ;;  %v507_v33 = vadd.f32 %v824_v10, %v411_v23  ;;  %v412_v34 = vadd.f32 %v994_v11, %v373_v24  ;;  %v374_v35 = vmul.f32 %v764_v25, %v983_v0  ;;  %v875_v10 = vld [vmem:[%s978_s25 + $0x78] sm:$0xff]  }
  0x33   : > { %568 = vst [vmem:[%s1014_s7 + $0x88] sm:$0xff] %v536_v27  ;;  %v538_v36 = vmax.f32 %v506_v28, 0.0  ;;  %v375_v37 = vmul.f32 %v765_v30, %v983_v0  ;;  %v829_v38 = vunpack.c.h.bf16 %v871_v17  ;;  %v768_v39 = vunpack.c.l.bf16 %v857_v26 }
  0x34   : > { %569 = vst [vmem:[%s1014_s7 + $0x90] sm:$0xff] %v537_v32  ;;  %v539_v42 = vmax.f32 %v507_v33, 0.0  ;;  %v508_v43 = vadd.f32 %v825_v21, %v412_v34  ;;  %v413_v44 = vadd.f32 %v994_v11, %v374_v35  ;;  %v832_v45 = vunpack.c.l.bf16 %v872_v31 }
  0x35   : > { %570 = vst [vmem:[%s1014_s7 + $0x98] sm:$0xff] %v538_v36  ;;  %v414_v46 = vadd.f32 %v994_v11, %v375_v37  ;;  %v376_v47 = vmul.f32 %v768_v39, %v983_v0  ;;  %v769_v48 = vunpack.c.h.bf16 %v857_v26  ;;  %v833_v49 = vunpack.c.h.bf16 %v872_v31 }
  0x36   : > { %571 = vst [vmem:[%s1014_s7 + $0xa0] sm:$0xff] %v539_v42  ;;  %v540_v51 = vmax.f32 %v508_v43, 0.0  ;;  %v509_v52 = vadd.f32 %v828_v29, %v413_v44  ;;  %v772_v53 = vunpack.c.l.bf16 %v858_v40  ;;  %v836_v54 = vunpack.c.l.bf16 %v873_v41 }
  0x37   : > { %v510_v55 = vadd.f32 %v829_v38, %v414_v46  ;;  %v415_v56 = vadd.f32 %v994_v11, %v376_v47  ;;  %v377_v57 = vmul.f32 %v769_v48, %v983_v0  ;;  %v773_v58 = vunpack.c.h.bf16 %v858_v40 }
  0x38   : > { %572 = vst [vmem:[%s1014_s7 + $0xa8] sm:$0xff] %v540_v51  ;;  %v541_v60 = vmax.f32 %v509_v52, 0.0  ;;  %v378_v61 = vmul.f32 %v772_v53, %v983_v0  ;;  %v837_v62 = vunpack.c.h.bf16 %v873_v41  ;;  %v776_v63 = vunpack.c.l.bf16 %v859_v50 }
  0x39   : > { %v542_v1 = vmax.f32 %v510_v55, 0.0  ;;  %v511_v2 = vadd.f32 %v832_v45, %v415_v56  ;;  %v416_v3 = vadd.f32 %v994_v11, %v377_v57  ;;  %v379_v4 = vmul.f32 %v773_v58, %v983_v0 }
  0x3a   : > { %573 = vst [vmem:[%s1014_s7 + $0xb0] sm:$0xff] %v541_v60  ;;  %v417_v6 = vadd.f32 %v994_v11, %v378_v61  ;;  %v380_v7 = vmul.f32 %v776_v63, %v983_v0  ;;  %v840_v8 = vunpack.c.l.bf16 %v874_v59  ;;  %v777_v9 = vunpack.c.h.bf16 %v859_v50 }
  0x3b   : > { %574 = vst [vmem:[%s1014_s7 + $0xb8] sm:$0xff] %v542_v1  ;;  %v543_v12 = vmax.f32 %v511_v2, 0.0  ;;  %v512_v13 = vadd.f32 %v833_v49, %v416_v3  ;;  %v418_v14 = vadd.f32 %v994_v11, %v379_v4  ;;  %v841_v15 = vunpack.c.h.bf16 %v874_v59 }
  0x3c   : > { %v513_v16 = vadd.f32 %v836_v54, %v417_v6  ;;  %v419_v17 = vadd.f32 %v994_v11, %v380_v7  ;;  %v381_v18 = vmul.f32 %v777_v9, %v983_v0  ;;  %v780_v19 = vunpack.c.l.bf16 %v860_v5 }
  0x3d   : > { %575 = vst [vmem:[%s1014_s7 + $0xc0] sm:$0xff] %v543_v12  ;;  %v544_v20 = vmax.f32 %v512_v13, 0.0  ;;  %v514_v21 = vadd.f32 %v837_v62, %v418_v14  ;;  %v844_v22 = vunpack.c.l.bf16 %v875_v10  ;;  %v781_v23 = vunpack.c.h.bf16 %v860_v5 }
  0x3e   : > { %v545_v24 = vmax.f32 %v513_v16, 0.0  ;;  %v515_v25 = vadd.f32 %v840_v8, %v419_v17  ;;  %v420_v26 = vadd.f32 %v994_v11, %v381_v18  ;;  %v382_v27 = vmul.f32 %v780_v19, %v983_v0 }
  0x3f   : > { %576 = vst [vmem:[%s1014_s7 + $0xc8] sm:$0xff] %v544_v20  ;;  %v546_v28 = vmax.f32 %v514_v21, 0.0  ;;  %v383_v29 = vmul.f32 %v781_v23, %v983_v0  ;;  %v845_v30 = vunpack.c.h.bf16 %v875_v10 }
  0x40   : > { %577 = vst [vmem:[%s1014_s7 + $0xd0] sm:$0xff] %v545_v24  ;;  %v547_v31 = vmax.f32 %v515_v25, 0.0  ;;  %v516_v32 = vadd.f32 %v841_v15, %v420_v26  ;;  %v421_v33 = vadd.f32 %v994_v11, %v382_v27 }
  0x41   : > { %578 = vst [vmem:[%s1014_s7 + $0xd8] sm:$0xff] %v546_v28  ;;  %v422_v34 = vadd.f32 %v994_v11, %v383_v29 }
  0x42   : > { %579 = vst [vmem:[%s1014_s7 + $0xe0] sm:$0xff] %v547_v31  ;;  %v548_v35 = vmax.f32 %v516_v32, 0.0  ;;  %v517_v36 = vadd.f32 %v844_v22, %v421_v33 }
  0x43   : > { %v518_v37 = vadd.f32 %v845_v30, %v422_v34 }
  0x44   : > { %580 = vst [vmem:[%s1014_s7 + $0xe8] sm:$0xff] %v548_v35  ;;  %v549_v38 = vmax.f32 %v517_v36, 0.0 }
  0x45   : > { %v550_v39 = vmax.f32 %v518_v37, 0.0 }
  0x46   : > { %581 = vst [vmem:[%s1014_s7 + $0xf0] sm:$0xff] %v549_v38 }
  0x47   : > { %582 = vst [vmem:[%s1014_s7 + $0xf8] sm:$0xff] %v550_v39 }
  0x48 PF: > { %s14_s17 = sadd.s32 1, %s922_s17   ;;  %s1138_s15 = smov %s918_s16 }
  0x49   : > { %p11_p5 = scmp.ge.s32.totalorder %s14_s17, 4   ;;  %s1139_s16 = smov %s1141_s18 }
  0x4b   :  { %13 = sbr.rel (!%p11_p5) target bundleno = 2 (0x2), region = 69 }

// kernel: basic_block_forward.3
= control target key start
LH: loop header
LB: loop body
LE: loop exit
PB: predicated region body
PF: predicated region fallthrough
CT: control target
= control target key end

     0   :  { %s3861_s12 = smov 0   ;;  %s3863_s13 = smov 0   ;;  %s4799_s0 = inlined_call_operand.vmem [shape: bf16[2,18,18,4], index: 0, kind: input, shape index: {}]   ;;  %s4800_s1 = inlined_call_operand.vmem [shape: bf16[36,128], index: 1, kind: input, shape index: {}]   ;;  %s4801_s2 = inlined_call_operand.vmem [shape: bf16[2,16,16,128], index: 2, kind: output, shape index: {0}]   ;;  %s4802_s3 = inlined_call_operand.vmem [shape: f32[2,2,2,128], index: 3, kind: output, shape index: {1}]  }
   0x1   :  { %s3865_s14 = smov 0   ;;  %s3867_s15 = smov 0  }
   0x2   :  { %s3869_s16 = smov 0  }
   0x3 LB: > { %s23_s17 = sadd.s32 1, %s3831_s14  ;;  %s26_s18 = sadd.s32 1, %s3835_s15  ;;  %s3839_s16 = sphi %s3869_s16, %s14_s16   ;;  %s3835_s15 = sphi %s3867_s15, %s4825_s15   ;;  %s3831_s14 = sphi %s3865_s14, %s4824_s14   ;;  %s3827_s13 = sphi %s3863_s13, %s4823_s13   ;;  %s3823_s12 = sphi %s3861_s12, %s4822_s12  }
   0x4   : > { %p24_p0 = scmp.ge.s32.totalorder %s23_s17, 2  ;;  %p2983_p1 = scmp.ge.s32.totalorder %s3839_s16, 1 }
   0x5   : > { %p156_p2 = scmp.lt.s32.totalorder %s3839_s16, 5 }
   0x6   : > { %s4827_s17 = smov (%p24_p0, %s23_s17), 0  ;;  %s4829_s18 = smov (!%p24_p0, %s26_s18), %s3835_s15 }
   0x7   : > { %p157_p3 = pnand %p2983_p1, %p156_p2  ;;  %p28_p4 = scmp.ge.s32.totalorder %s4829_s18, 2 }
   0x9   : > { %s4831_s18 = smov (%p28_p4, %s4829_s18), 0  ;;  %160 = sbr.rel (%p157_p3) target bundleno = 439 (0x1b7), region = 28 }
  0x10   : > { %v3772_v0 = vld [vmem:[%s4800_s1] ss:$0 sps:$4 sm:$0xcc]   ;;  %vm496_vm0 = vcmask 1041408   ;;  %v1430_v1 = vld [vmem:[%s4800_s1 + $0x8] sm:$0x3] }
  0x11   : > { %p193_p5 = scmp.lt.s32.totalorder %s3827_s13, 1  ;;  %v470_v2 = vrot.slane %v3772_v0, 2  ;;  %3725 = vmatprep.subr.msk.bf16.mxu0 %vm496_vm0, %v1430_v1  ;;  %v3901_v3 = vsel %vm496_vm0, %v1430_v1, 0  ;;  %v238_v4 = vld [vmem:[%s4800_s1] sm:$0x3]  ;;  %s3284_s25 = smul.u32 96, %s3823_s12 }
  0x12   : > { %3502 = vmatpush3.bf16.msra.mxu0 %v3901_v3  ;;  %v3773_v6 = vld [vmem:[%s4800_s1 + $0x8] ss:$0 sps:$4 sm:$0xcc]   ;;  %vm247_vm1 = vsmask.f32 3328  ;;  %vm471_vm3 = vcmask 31744  }
  0x13   : > { %s4833_s13 = smov (!%p193_p5, %s3827_s13), 1  ;;  %3721 = vmatprep.subr.msk.bf16.mxu1 %vm496_vm0, %v470_v2  ;;  %v498_v5 = vsel %vm496_vm0, %v470_v2, 0  ;;  %v1711_v7 = vrot.slane %v3773_v6, 2  ;;  %vm248_vm2 = vsmask.f32 7440  ;;  %v3945_v19 = vsel %vm496_vm0, %v238_v4, 0 }
  0x14   : > { %3430 = vmatpush3.bf16.msra.mxu1 %v498_v5  ;;  %s3731_s28 = smul.u32 216, %s4833_s13  ;;  %v3950_v24 = vld [vmem:[%s4800_s1 + $0xc] sm:$0x3]  ;;  %vm3960_vm4 = vmor %vm247_vm1, %vm248_vm2  ;;  %vm785_vm5 = vcmask 1042432   ;;  %vm786_vm6 = vcmask 1046532   ;;  %s2987_s27 = sshll.u32 %s4833_s13, 5 }
  0x15   : > { %3722 = vmatprep.subr.msk.bf16.mxu1 %vm496_vm0, %v238_v4  ;;  %3727 = vmatprep.subr.msk.bf16.mxu0 %vm496_vm0, %v1711_v7  ;;  %v3969_v39 = vsel %vm496_vm0, %v3950_v24, 0  ;;  %v3972_v43 = vsel %vm496_vm0, %v1711_v7, 0  ;;  %vm4115_vm7 = vmor %vm785_vm5, %vm786_vm6  ;;  %p211_p7 = scmp.lt.s32.totalorder %s3823_s12, 1  ;;  %s2989_s6 = sshll.u32 %s4833_s13, 1  ;;  %vm2829_vm8 = vcmask 1040384  }
  0x16   : > { %s197_s4 = scalar_lea.vmem %s4799_s0, %s3731_s28 }
  0x17   : > { %s3920_s5 = scalar_lea.vmem %s197_s4, %s3284_s25  ;;  %s2985_s25 = sshll.u32 %s3823_s12, 3 }
  0x18   : > { %v3924_v8 = vld [vmem:[%s3920_s5] sm:$0xf]  ;;  %v3927_v9 = vld [vmem:[%s3920_s5 + $0x4] sm:$0xf]  ;;  %v3930_v10 = vld [vmem:[%s3920_s5 + $0x8] sm:$0x1] }
  0x19   : > { %v251_v11 = vshrl.u32 %v3924_v8, 16  ;;  %v254_v12 = vshll.u32 %v3924_v8, 16  ;;  %v260_v13 = vshll.u32 %v3927_v9, 16  ;;  %v264_v14 = vshrl.u32 %v3927_v9, 16  ;;  %v3086_v15 = vld [vmem:[%s3920_s5 + $0xc] sm:$0xf] }
  0x1a   : > { %v270_v16 = vshll.u32 %v3930_v10, 16  ;;  %v3939_v17 = vld [vmem:[%s3920_s5 + $0x10] sm:$0xf]  ;;  %v3942_v18 = vld [vmem:[%s3920_s5 + $0x14] sm:$0x1]  ;;  %v1239_v26 = vshrl.u32 %v3086_v15, 16 }
  0x1b   : > { %v253_v20 = vrot.slane %v251_v11, 4  ;;  %v256_v21 = vrot.slane %v254_v12, 5  ;;  %v262_v22 = vrot.slane %v260_v13, 5  ;;  %v266_v23 = vrot.slane %v264_v14, 4  ;;  %v3956_v33 = vld [vmem:[%s3920_s5 + $0xc] sm:$0xf] }
  0x1c   : > { %v272_v25 = vrot.slane %v270_v16, 5  ;;  %v1242_v27 = vshll.u32 %v3086_v15, 16  ;;  %v1248_v28 = vshll.u32 %v3939_v17, 16  ;;  %v1252_v31 = vshrl.u32 %v3939_v17, 16  ;;  %v3965_v38 = vld [vmem:[%s3920_s5 + $0x10] sm:$0xf] }
  0x1d   : > { %v257_v29 = vor.u32 %v256_v21, %v253_v20  ;;  %v267_v30 = vor.u32 %v266_v23, %v262_v22  ;;  %v1258_v32 = vshll.u32 %v3942_v18, 16  ;;  %v1241_v35 = vrot.slane %v1239_v26, 4  ;;  %v3975_v46 = vld [vmem:[%s3920_s5 + $0x14] sm:$0x1]  ;;  %v3089_v57 = vld [vmem:[%s3920_s5 + $0x18] sm:$0xf] }
  0x1e   : > { %v1244_v36 = vrot.slane %v1242_v27, 5  ;;  %v1250_v37 = vrot.slane %v1248_v28, 5  ;;  %v1254_v42 = vrot.slane %v1252_v31, 4  ;;  %v275_v47 = vshrl.u32 %v3956_v33, 16  ;;  %v3988_v62 = vld [vmem:[%s3920_s5 + $0x1c] sm:$0xf] }
  0x1f   : > { %v258_v40 = vrot.slane %v257_v29, 4  ;;  %v268_v41 = vrot.slane %v267_v30, 4  ;;  %v1260_v45 = vrot.slane %v1258_v32, 5  ;;  %v278_v48 = vshll.u32 %v3956_v33, 16  ;;  %v3996_v4 = vld [vmem:[%s3920_s5 + $0x20] sm:$0x1] }
  0x20   : > { %v1245_v44 = vor.u32 %v1244_v36, %v1241_v35  ;;  %v1255_v51 = vor.u32 %v1254_v42, %v1250_v37  ;;  %v284_v52 = vshll.u32 %v3965_v38, 16  ;;  %v277_v55 = vrot.slane %v275_v47, 4  ;;  %v4004_v23 = vld [vmem:[%s3920_s5 + $0x18] sm:$0xf]  ;;  %v4011_v29 = vld [vmem:[%s3920_s5 + $0x1c] sm:$0xf] }
  0x21   : > { %v263_v49 = vsel %vm3960_vm4, %v258_v40, %v262_v22  ;;  %v273_v50 = vsel %vm3960_vm4, %v268_v41, %v272_v25  ;;  %v280_v56 = vrot.slane %v278_v48, 5  ;;  %v288_v60 = vshrl.u32 %v3965_v38, 16  ;;  %v4019_v40 = vld [vmem:[%s3920_s5 + $0x20] sm:$0x1]  ;;  %p201_p6 = scmp.lt.s32.totalorder %s2985_s25, 15  ;;  %s4837_s12 = smov (!%p211_p7, %s3823_s12), 1 }
  0x22   : > { %v2994_v53 = vcombine.low %v263_v49, %v273_v50  ;;  %v1246_v54 = vrot.slane %v1245_v44, 4  ;;  %v1256_v58 = vrot.slane %v1255_v51, 4  ;;  %v286_v59 = vrot.slane %v284_v52, 5  ;;  %v3092_v49 = vld [vmem:[%s3920_s5 + $0x24] sm:$0xf]  ;;  %s214_s7 = sadd.s32 %s2989_s6, %s4837_s12 }
  0x23   : > { %v294_v61 = vshll.u32 %v3975_v46, 16  ;;  %v1629_v0 = vrot.slane %v3939_v17, 5  ;;  %v1632_v1 = vrot.slane %v3942_v18, 5  ;;  %v281_v2 = vor.u32 %v280_v56, %v277_v55  ;;  %s4835_s25 = smov (!%p201_p6, %s2985_s25), 15  ;;  %s2990_s8 = sshll.u32 %s214_s7, 1 }
  0x24   : > { %3431 = vmatprep.mubr.msk.bf16.mxu1 %vm471_vm3, %v2994_v53  ;;  %v1251_v63 = vsel %vm3960_vm4, %v1246_v54, %v1250_v37  ;;  %v1261_v5 = vsel %vm3960_vm4, %v1256_v58, %v1260_v45  ;;  %v290_v6 = vrot.slane %v288_v60, 4  ;;  %v1263_v11 = vshrl.u32 %v3089_v57, 16  ;;  %v4029_v54 = vld [vmem:[%s3920_s5 + $0x28] sm:$0xf]  ;;  %s2986_s26 = sshll.u32 %s4835_s25, 1  ;;  %s216_s11 = scalar_lea.vmem %s4802_s3, %s2990_s8 }
  0x25   : > { %v296_v7 = vrot.slane %v294_v61, 5  ;;  %v3110_v12 = vcombine.low %v1251_v63, %v1261_v5  ;;  %v282_v13 = vrot.slane %v281_v2, 4  ;;  %v1266_v14 = vshll.u32 %v3089_v57, 16  ;;  %v4041_v63 = vld [vmem:[%s3920_s5 + $0x2c] sm:$0x1]  ;;  %s205_s28 = sadd.s32 %s2987_s27, %s2986_s26 }
  0x26   : > { %v1272_v15 = vshll.u32 %v3988_v62, 16  ;;  %v291_v16 = vor.u32 %v290_v6, %v286_v59  ;;  %v1265_v20 = vrot.slane %v1263_v11, 4  ;;  %v1276_v21 = vshrl.u32 %v3988_v62, 16  ;;  %s2988_s29 = sshll.u32 %s205_s28, 2 }
  0x27   : > { %v1282_v22 = vshll.u32 %v3996_v4, 16  ;;  %3503 = vmatprep.mubr.msk.bf16.mxu0 %vm471_vm3, %v3110_v12  ;;  %v287_v25 = vsel %vm3960_vm4, %v282_v13, %v286_v59  ;;  %v1268_v26 = vrot.slane %v1266_v14, 5  ;;  %v1636_v28 = vrot.slane %v3988_v62, 5  ;;  %v4035_v59 = vld [vmem:[%s4800_s1 + $0x4] sm:$0x3] }
  0x28   : > { %v1274_v27 = vrot.slane %v1272_v15, 5  ;;  %v292_v30 = vrot.slane %v291_v16, 4  ;;  %v1278_v31 = vrot.slane %v1276_v21, 4  ;;  %v1639_v35 = vrot.slane %v3996_v4, 5  ;;  %v4048_v13 = vld [vmem:[%s3920_s5 + $0x24] sm:$0xf] }
  0x29   : > { %v1284_v32 = vrot.slane %v1282_v22, 5  ;;  %v1269_v36 = vor.u32 %v1268_v26, %v1265_v20  ;;  %v4016_v37 = vrot.slane %v1636_v28, 4  ;;  %v299_v41 = vshrl.u32 %v4004_v23, 16  ;;  %v4051_v21 = vld [vmem:[%s3920_s5 + $0x28] sm:$0xf] }
  0x2a   : > { %v302_v42 = vshll.u32 %v4004_v23, 16  ;;  %v297_v44 = vsel %vm3960_vm4, %v292_v30, %v296_v7  ;;  %v1279_v45 = vor.u32 %v1278_v31, %v1274_v27  ;;  %v308_v47 = vshll.u32 %v4011_v29, 16  ;;  %v4061_v31 = vld [vmem:[%s3920_s5 + $0x2c] sm:$0x1] }
  0x2b   : > { %v312_v48 = vshrl.u32 %v4011_v29, 16  ;;  %v2995_v50 = vcombine.low %v287_v25, %v297_v44  ;;  %v1270_v51 = vrot.slane %v1269_v36, 4  ;;  %v301_v52 = vrot.slane %v299_v41, 4 }
  0x2c   : > { %v304_v53 = vrot.slane %v302_v42, 5  ;;  %v1280_v55 = vrot.slane %v1279_v45, 4  ;;  %v310_v56 = vrot.slane %v308_v47, 5  ;;  %v318_v58 = vshll.u32 %v4019_v40, 16  ;;  %v3095_v47 = vld [vmem:[%s3920_s5 + $0x30] sm:$0xf] }
  0x2d   : > { %v314_v57 = vrot.slane %v312_v48, 4  ;;  %3432 = vmatmul.mubr.msk.bf16.vlgmr.msra.gmra.mrb[0].mxu1 %vm471_vm3, %v2995_v50  ;;  %v1275_v60 = vsel %vm3960_vm4, %v1270_v51, %v1274_v27  ;;  %v1287_v2 = vshrl.u32 %v3092_v49, 16  ;;  %v1290_v5 = vshll.u32 %v3092_v49, 16 }
  0x2e   : > { %v305_v61 = vor.u32 %v304_v53, %v301_v52  ;;  %3448 = vmatpush3.bf16.msra.mxu1 %v3945_v19  ;;  %v1285_v6 = vsel %vm3960_vm4, %v1280_v55, %v1284_v32  ;;  %v320_v11 = vrot.slane %v318_v58, 5  ;;  %v1296_v12 = vshll.u32 %v4029_v54, 16  ;;  %v4071_v52 = vld [vmem:[%s3920_s5 + $0x34] sm:$0xf] }
  0x2f   : > { %v315_v7 = vor.u32 %v314_v57, %v310_v56  ;;  %v3111_v14 = vcombine.low %v1275_v60, %v1285_v6  ;;  %v1289_v16 = vrot.slane %v1287_v2, 4  ;;  %v1292_v20 = vrot.slane %v1290_v5, 5  ;;  %3723 = vmatprep.subr.msk.bf16.mxu1 %vm496_vm0, %v4035_v59  ;;  %v4081_v60 = vld [vmem:[%s3920_s5 + $0x38] sm:$0x1] }
  0x30   : > { %v306_v15 = vrot.slane %v305_v61, 4  ;;  %v1298_v22 = vrot.slane %v1296_v12, 5  ;;  %v1300_v25 = vshrl.u32 %v4029_v54, 16  ;;  %v1306_v26 = vshll.u32 %v4041_v63, 16 }
  0x31   : > { %v316_v19 = vrot.slane %v315_v7, 4  ;;  %3504 = vmatmul.mubr.msk.bf16.vlgmr.msra.gmra.mrb[0].mxu0 %vm471_vm3, %v3111_v14  ;;  %v1293_v30 = vor.u32 %v1292_v20, %v1289_v16  ;;  %v323_v32 = vshrl.u32 %v4048_v13, 16  ;;  %v326_v36 = vshll.u32 %v4048_v13, 16  ;;  %v4086_v16 = vld [vmem:[%s3920_s5 + $0x30] sm:$0xf] }
  0x32   : > { %v311_v27 = vsel %vm3960_vm4, %v306_v15, %v310_v56  ;;  %3520 = vmatpush3.bf16.msra.mxu0 %v3972_v43  ;;  %v1302_v42 = vrot.slane %v1300_v25, 4  ;;  %v1308_v44 = vrot.slane %v1306_v26, 5  ;;  %v332_v45 = vshll.u32 %v4051_v21, 16  ;;  %v4092_v26 = vld [vmem:[%s3920_s5 + $0x34] sm:$0xf] }
  0x33   : > { %v321_v41 = vsel %vm3960_vm4, %v316_v19, %v320_v11  ;;  %v1294_v49 = vrot.slane %v1293_v30, 4  ;;  %v325_v50 = vrot.slane %v323_v32, 4  ;;  %v328_v51 = vrot.slane %v326_v36, 5  ;;  %3728 = vmatprep.subr.msk.bf16.mxu0 %vm496_vm0, %v3950_v24 }
  0x34   : > { %v2996_v48 = vcombine.low %v311_v27, %v321_v41  ;;  %v1303_v43 = vor.u32 %v1302_v42, %v1298_v22  ;;  %v334_v53 = vrot.slane %v332_v45, 5  ;;  %v336_v55 = vshrl.u32 %v4051_v21, 16  ;;  %v4097_v41 = vld [vmem:[%s3920_s5 + $0x38] sm:$0x1] }
  0x35   : > { %v342_v56 = vshll.u32 %v4061_v31, 16  ;;  %v1299_v57 = vsel %vm3960_vm4, %v1294_v49, %v1298_v22  ;;  %v329_v58 = vor.u32 %v328_v51, %v325_v50  ;;  %v1311_v61 = vshrl.u32 %v3095_v47, 16 }
  0x36   : > { %3435 = vmatprep.mubr.msk.bf16.mxu1 %vm471_vm3, %v2996_v48  ;;  %v1314_v2 = vshll.u32 %v3095_v47, 16  ;;  %v1304_v5 = vrot.slane %v1303_v43, 4  ;;  %v338_v24 = vrot.slane %v336_v55, 4  ;;  %v1320_v7 = vshll.u32 %v4071_v52, 16  ;;  %v3126_v43 = vld [vmem:[%s3920_s5 + $0xc] sm:$0xe] }
  0x37   : > { %v344_v6 = vrot.slane %v342_v56, 5  ;;  %v330_v11 = vrot.slane %v329_v58, 4  ;;  %v1313_v12 = vrot.slane %v1311_v61, 4  ;;  %v1324_v15 = vshrl.u32 %v4071_v52, 16  ;;  %v4109_v58 = vld [vmem:[%s3920_s5 + $0x3c] sm:$0xf] }
  0x38   : > { %v1316_v14 = vrot.slane %v1314_v2, 5  ;;  %v1309_v20 = vsel %vm3960_vm4, %v1304_v5, %v1308_v44  ;;  %v339_v19 = vor.u32 %v338_v24, %v334_v53  ;;  %v1322_v22 = vrot.slane %v1320_v7, 5 }
  0x39   : > { %v1330_v25 = vshll.u32 %v4081_v60, 16  ;;  %v3112_v27 = vcombine.low %v1299_v57, %v1309_v20  ;;  %v335_v30 = vsel %vm3960_vm4, %v330_v11, %v334_v53  ;;  %v1326_v36 = vrot.slane %v1324_v15, 4  ;;  %v4123_v20 = vld [vmem:[%s3920_s5 + $0x44] sm:$0x1] }
  0x3a   : > { %v1317_v32 = vor.u32 %v1316_v14, %v1313_v12  ;;  %v340_v42 = vrot.slane %v339_v19, 4  ;;  %v347_v44 = vshrl.u32 %v4086_v16, 16  ;;  %v350_v47 = vshll.u32 %v4086_v16, 16  ;;  %v3127_v19 = vld [vmem:[%s3920_s5 + $0x18] sm:$0xe] }
  0x3b   : > { %v1332_v45 = vrot.slane %v1330_v25, 5  ;;  %3507 = vmatprep.mubr.msk.bf16.mxu0 %vm471_vm3, %v3112_v27  ;;  %v1327_v49 = vor.u32 %v1326_v36, %v1322_v22  ;;  %v356_v50 = vshll.u32 %v4092_v26, 16  ;;  %v360_v51 = vshrl.u32 %v4092_v26, 16 }
  0x3c   : > { %v1318_v48 = vrot.slane %v1317_v32, 4  ;;  %v345_v53 = vsel %vm3960_vm4, %v340_v42, %v344_v6  ;;  %v349_v55 = vrot.slane %v347_v44, 4  ;;  %v352_v56 = vrot.slane %v350_v47, 5  ;;  %v4120_v6 = vld [vmem:[%s3920_s5 + $0x40] sm:$0xf] }
  0x3d   : > { %v366_v57 = vshll.u32 %v4097_v41, 16  ;;  %v2997_v61 = vcombine.low %v335_v30, %v345_v53  ;;  %v1328_v5 = vrot.slane %v1327_v49, 4  ;;  %v358_v24 = vrot.slane %v356_v50, 5  ;;  %v4134_v32 = vld [vmem:[%s3920_s5 + $0x48] sm:$0xf] }
  0x3e   : > { %v1323_v2 = vsel %vm3960_vm4, %v1318_v48, %v1322_v22  ;;  %v353_v11 = vor.u32 %v352_v56, %v349_v55  ;;  %v362_v12 = vrot.slane %v360_v51, 4  ;;  %v3134_v15 = vrot.slane %v3126_v43, 9 }
  0x3f   : > { %v368_v14 = vrot.slane %v366_v57, 5  ;;  %3436 = vmatmul.mubr.msk.bf16.gmra.mrb[4].mxu1 %vm471_vm3, %v2997_v61  ;;  %v1333_v22 = vsel %vm3960_vm4, %v1328_v5, %v1332_v45  ;;  %v1631_v25 = vrot.slane %v1629_v0, 4  ;;  %v371_v27 = vshrl.u32 %v4109_v58, 16  ;;  %v4154_v57 = vld [vmem:[%s3920_s5 + $0x50] sm:$0x1] }
  0x40   : > { %v374_v30 = vshll.u32 %v4109_v58, 16  ;;  %v3113_v36 = vcombine.low %v1323_v2, %v1333_v22  ;;  %v354_v42 = vrot.slane %v353_v11, 4  ;;  %v363_v44 = vor.u32 %v362_v12, %v358_v24 }
  0x41   : > { %v1630_v47 = vsel %vm4115_vm7, %v3134_v15, %v1629_v0  ;;  %v1633_v45 = vsel %vm4115_vm7, %v1631_v25, %v1632_v1  ;;  %v373_v48 = vrot.slane %v371_v27, 4  ;;  %v380_v50 = vshll.u32 %v4120_v6, 16  ;;  %v4150_v0 = vld [vmem:[%s3920_s5 + $0x4c] sm:$0xf] }
  0x42   : > { %v376_v49 = vrot.slane %v374_v30, 5  ;;  %3508 = vmatmul.mubr.msk.bf16.gmra.mrb[4].mxu0 %vm471_vm3, %v3113_v36  ;;  %v359_v51 = vsel %vm3960_vm4, %v354_v42, %v358_v24  ;;  %v364_v43 = vrot.slane %v363_v44, 4  ;;  %v3142_v17 = vcombine.low %v1630_v47, %v1633_v45  ;;  %v4172_v30 = vld [vmem:[%s3920_s5 + $0x54] sm:$0xf] }
  0x43   : > { %v384_v53 = vshrl.u32 %v4120_v6, 16  ;;  %v382_v55 = vrot.slane %v380_v50, 5  ;;  %v390_v1 = vshll.u32 %v4123_v20, 16  ;;  %v3135_v56 = vrot.slane %v3127_v19, 9 }
  0x44   : > { %v377_v18 = vor.u32 %v376_v49, %v373_v48  ;;  %v369_v61 = vsel %vm3960_vm4, %v364_v43, %v368_v14  ;;  %3521 = vmatprep.mubr.msk.bf16.mxu0 %vm471_vm3, %v3142_v17  ;;  %v1640_v5 = vsel %vm4115_vm7, %v4016_v37, %v1639_v35  ;;  %v395_v24 = vshrl.u32 %v4134_v32, 16  ;;  %v3128_v14 = vld [vmem:[%s3920_s5 + $0x24] sm:$0xe] }
  0x45   : > { %v386_v2 = vrot.slane %v384_v53, 4  ;;  %v2998_v11 = vcombine.low %v359_v51, %v369_v61  ;;  %v392_v15 = vrot.slane %v390_v1, 5  ;;  %v1637_v19 = vsel %vm4115_vm7, %v3135_v56, %v1636_v28  ;;  %v4183_v51 = vld [vmem:[%s3920_s5 + $0x58] sm:$0xf]  ;;  %v4192_v1 = vld [vmem:[%s3920_s5 + $0x5c] sm:$0x1] }
  0x46   : > { %v378_v12 = vrot.slane %v377_v18, 4  ;;  %v3143_v25 = vcombine.low %v1637_v19, %v1640_v5  ;;  %v397_v27 = vrot.slane %v395_v24, 4  ;;  %v398_v4 = vshll.u32 %v4134_v32, 16 }
  0x47   : > { %v387_v22 = vor.u32 %v386_v2, %v382_v55  ;;  %3439 = vmatprep.mubr.msk.bf16.mxu1 %vm471_vm3, %v2998_v11  ;;  %v404_v37 = vshll.u32 %v4150_v0, 16  ;;  %v408_v62 = vshrl.u32 %v4150_v0, 16  ;;  %v414_v28 = vshll.u32 %v4154_v57, 16  ;;  %v3129_v11 = vld [vmem:[%s3920_s5 + $0x30] sm:$0xe] }
  0x48   : > { %v383_v35 = vsel %vm3960_vm4, %v378_v12, %v382_v55  ;;  %v400_v42 = vrot.slane %v398_v4, 5  ;;  %v3136_v44 = vrot.slane %v3128_v14, 9  ;;  %v1643_v47 = vrot.slane %v4029_v54, 5  ;;  %v3130_v4 = vld [vmem:[%s3920_s5 + $0x3c] sm:$0xe] }
  0x49   : > { %v388_v36 = vrot.slane %v387_v22, 4  ;;  %v406_v45 = vrot.slane %v404_v37, 5  ;;  %v410_v48 = vrot.slane %v408_v62, 4  ;;  %v416_v49 = vrot.slane %v414_v28, 5 }
  0x4a   : > { %v1646_v50 = vrot.slane %v4041_v63, 5  ;;  %3522 = vmatmul.mubr.msk.bf16.vlgmr.msra.gmra.mrb[0].mxu0 %vm471_vm3, %v3143_v25  ;;  %v401_v17 = vor.u32 %v400_v42, %v397_v27  ;;  %v1644_v53 = vsel %vm4115_vm7, %v3136_v44, %v1643_v47  ;;  %v1645_v18 = vrot.slane %v1643_v47, 4  ;;  %v4214_v42 = vld [vmem:[%s3920_s5 + $0x44] sm:$0x1] }
  0x4b   : > { %v393_v43 = vsel %vm3960_vm4, %v388_v36, %v392_v15  ;;  %3538 = vmatpush3.bf16.msra.mxu0 %v3969_v39  ;;  %v411_v54 = vor.u32 %v410_v48, %v406_v45  ;;  %v419_v63 = vshrl.u32 %v4172_v30, 16  ;;  %v422_v56 = vshll.u32 %v4172_v30, 16  ;;  %v4211_v36 = vld [vmem:[%s3920_s5 + $0x40] sm:$0xf] }
  0x4c   : > { %v2999_v55 = vcombine.low %v383_v35, %v393_v43  ;;  %v402_v61 = vrot.slane %v401_v17, 4  ;;  %v1647_v2 = vsel %vm4115_vm7, %v1645_v18, %v1646_v50  ;;  %v428_v5 = vshll.u32 %v4183_v51, 16 }
  0x4d   : > { %v432_v24 = vshrl.u32 %v4183_v51, 16  ;;  %v412_v39 = vrot.slane %v411_v54, 4  ;;  %v3144_v12 = vcombine.low %v1644_v53, %v1647_v2  ;;  %v421_v15 = vrot.slane %v419_v63, 4  ;;  %v4229_v63 = vld [vmem:[%s3920_s5 + $0x4c] sm:$0xf] }
  0x4e   : > { %3440 = vmatmul.mubr.msk.bf16.gmra.mrb[8].mxu1 %vm471_vm3, %v2999_v55  ;;  %v424_v19 = vrot.slane %v422_v56, 5  ;;  %v407_v14 = vsel %vm3960_vm4, %v402_v61, %v406_v45  ;;  %v430_v22 = vrot.slane %v428_v5, 5  ;;  %v438_v27 = vshll.u32 %v4192_v1, 16  ;;  %v4232_v56 = vld [vmem:[%s3920_s5 + $0x50] sm:$0x1] }
  0x4f   : > { %v434_v25 = vrot.slane %v432_v24, 4  ;;  %v417_v35 = vsel %vm3960_vm4, %v412_v39, %v416_v49  ;;  %3525 = vmatprep.mubr.msk.bf16.mxu0 %vm471_vm3, %v3144_v12  ;;  %v3137_v62 = vrot.slane %v3129_v11, 9  ;;  %v1650_v28 = vrot.slane %v4071_v52, 5  ;;  %v3131_v61 = vld [vmem:[%s3920_s5 + $0x48] sm:$0xe] }
  0x50   : > { %v425_v37 = vor.u32 %v424_v19, %v421_v15  ;;  %v3000_v44 = vcombine.low %v407_v14, %v417_v35  ;;  %v440_v45 = vrot.slane %v438_v27, 5  ;;  %v1653_v48 = vrot.slane %v4081_v60, 5  ;;  %v4240_v39 = vld [vmem:[%s3920_s5 + $0x58] sm:$0xf]  ;;  %v4243_v15 = vld [vmem:[%s3920_s5 + $0x5c] sm:$0x1] }
  0x51   : > { %v435_v47 = vor.u32 %v434_v25, %v430_v22  ;;  %v1651_v49 = vsel %vm4115_vm7, %v3137_v62, %v1650_v28  ;;  %v1652_v43 = vrot.slane %v1650_v28, 4  ;;  %v3138_v17 = vrot.slane %v3130_v4, 9  ;;  %4811 = vst [vmem:[#allocation2_spill] sm:$0xff] %v4243_v15  ;;  %v3133_v19 = vld [vmem:[%s3920_s5 + $0x60] sm:$0xe] }
  0x52   : > { %v426_v50 = vrot.slane %v425_v37, 4  ;;  %3443 = vmatprep.mubr.msk.bf16.mxu1 %vm471_vm3, %v3000_v44  ;;  %v1657_v53 = vrot.slane %v4211_v36, 5  ;;  %v1660_v18 = vrot.slane %v4214_v42, 5  ;;  %v3011_v54 = vcombine.low %v3924_v8, %v3927_v9  ;;  %v3132_v8 = vld [vmem:[%s3920_s5 + $0x54] sm:$0xe] }
  0x53   : > { %v436_v52 = vrot.slane %v435_v47, 4  ;;  %v1654_v55 = vsel %vm4115_vm7, %v1652_v43, %v1653_v48  ;;  %v4250_v14 = vld [vmem:[%s4800_s1 + $0xc] ss:$0 sps:$4 sm:$0xcc]   ;;  %v3139_v25 = vrot.slane %v3131_v61, 9  ;;  %v1664_v27 = vrot.slane %v4229_v63, 5 }
  0x54   : > { %v431_v60 = vsel %vm3960_vm4, %v426_v50, %v430_v22  ;;  %v3145_v5 = vcombine.low %v1651_v49, %v1654_v55  ;;  %v1658_v24 = vsel %vm4115_vm7, %v3138_v17, %v1657_v53  ;;  %v1659_v11 = vrot.slane %v1657_v53, 4  ;;  %v4259_v37 = vld [vmem:[%s3920_s5 + $0x64] sm:$0xf] }
  0x55   : > { %v441_v2 = vsel %vm3960_vm4, %v436_v52, %v440_v45  ;;  %v1667_v4 = vrot.slane %v4232_v56, 5  ;;  %4812 = vst [vmem:[#allocation3_spill] sm:$0xff] %v4259_v37  ;;  %v1665_v62 = vsel %vm4115_vm7, %v3139_v25, %v1664_v27  ;;  %v1666_v28 = vrot.slane %v1664_v27, 4  ;;  %v4266_v45 = vld [vmem:[%s3920_s5 + $0x68] sm:$0x1] }
  0x56   : > { %v3001_v12 = vcombine.low %v431_v60, %v441_v2  ;;  %3526 = vmatmul.mubr.msk.bf16.gmra.mrb[4].mxu0 %vm471_vm3, %v3145_v5  ;;  %v1661_v22 = vsel %vm4115_vm7, %v1659_v11, %v1660_v18  ;;  %v3140_v44 = vrot.slane %v3132_v8, 9  ;;  %v1671_v47 = vrot.slane %v4240_v39, 5  ;;  %4813 = vst [vmem:[#allocation4_spill] sm:$0xff] %v4266_v45  ;;  %v4274_v43 = vld [vmem:[%s4800_s1 + $0x4] ss:$0 sps:$4 sm:$0xcc]  }
  0x57   : > { %v3146_v35 = vcombine.low %v1658_v24, %v1661_v22  ;;  %v797_v48 = vrot.slane %v3965_v38, 5  ;;  %v1674_v50 = vrot.slane %v4243_v15, 5  ;;  %v3141_v49 = vrot.slane %v3133_v19, 9  ;;  %v762_v2 = vld [vmem:[%s3920_s5 + $0xc] sm:$0xe] }
  0x58   : > { %3444 = vmatmul.mubr.msk.bf16.gmra.mrb[12].mxu1 %vm471_vm3, %v3001_v12  ;;  %v1668_v17 = vsel %vm4115_vm7, %v1666_v28, %v1667_v4  ;;  %v1672_v52 = vsel %vm4115_vm7, %v3140_v44, %v1671_v47  ;;  %v1673_v53 = vrot.slane %v1671_v47, 4  ;;  %v1678_v18 = vrot.slane %v4259_v37, 5  ;;  %v763_v12 = vld [vmem:[%s3920_s5 + $0x18] sm:$0xe]  ;;  %v764_v22 = vld [vmem:[%s3920_s5 + $0x24] sm:$0xe] }
  0x59   : > { %3449 = vmatprep.mubr.msk.bf16.mxu1 %vm471_vm3, %v3011_v54  ;;  %3529 = vmatprep.mubr.msk.bf16.mxu0 %vm471_vm3, %v3146_v35  ;;  %v3012_v60 = vcombine.low %v3956_v33, %v3965_v38  ;;  %v3147_v55 = vcombine.low %v1665_v62, %v1668_v17  ;;  %v1681_v54 = vrot.slane %v4266_v45, 5  ;;  %v2297_v61 = vrot.slane %v4250_v14, 2  ;;  %v765_v35 = vld [vmem:[%s3920_s5 + $0x30] sm:$0xe] }
  0x5a   : > { %v3013_v5 = vcombine.low %v4004_v23, %v4011_v29  ;;  %v1675_v24 = vsel %vm4115_vm7, %v1673_v53, %v1674_v50  ;;  %v1680_v11 = vrot.slane %v1678_v18, 4  ;;  %v800_v8 = vrot.slane %v3975_v46, 5  ;;  %v4575_v15 = vld [vmem:[%s3920_s5 + $0x70] sm:$0xf] }
  0x5b   : > { %v894_v33 = vsel %vm496_vm0, %v4035_v59, 0  ;;  %v3148_v38 = vcombine.low %v1672_v52, %v1675_v24  ;;  %3729 = vmatprep.subr.msk.bf16.mxu0 %vm496_vm0, %v2297_v61  ;;  %v1679_v23 = vsel %vm4115_vm7, %v3141_v49, %v1678_v18  ;;  %v1073_v19 = vrot.slane %v4274_v43, 2  ;;  %v3779_v52 = vld [vmem:[%s3920_s5 + $0x18] sm:$0xff]   ;;  %v761_v24 = vld [vmem:[%s3920_s5] sm:$0xe] }
  0x5c   : > { %v1682_v46 = vsel %vm4115_vm7, %v1680_v11, %v1681_v54  ;;  %v3028_v59 = vrot.slane %v762_v2, 9  ;;  %v799_v25 = vrot.slane %v797_v48, 4  ;;  %v3029_v27 = vrot.slane %v763_v12, 9  ;;  %v3193_v11 = vld [vmem:[%s3920_s5 + $0x18] sm:$0xf] }
  0x5d   : > { %v804_v4 = vrot.slane %v4011_v29, 5  ;;  %v807_v44 = vrot.slane %v4019_v40, 5  ;;  %v3030_v47 = vrot.slane %v764_v22, 9  ;;  %v3149_v50 = vcombine.low %v1679_v23, %v1682_v46  ;;  %v4362_v12 = vld [vmem:[%s3920_s5 + $0x1c] sm:$0xf]  ;;  %v3782_v22 = vld [vmem:[%s3920_s5 + $0x24] sm:$0xff]  }
  0x5e   : > { %3530 = vmatmul.mubr.msk.bf16.gmra.mrb[8].mxu0 %vm471_vm3, %v3147_v55  ;;  %v4314_v62 = vsel %vm4115_vm7, %v3028_v59, %v797_v48  ;;  %v4318_v28 = vsel %vm4115_vm7, %v799_v25, %v800_v8  ;;  %v3014_v48 = vcombine.low %v4048_v13, %v4051_v21  ;;  %v811_v53 = vrot.slane %v4051_v21, 5 }
  0x5f   : > { %3533 = vmatprep.mubr.msk.bf16.mxu0 %vm471_vm3, %v3148_v38  ;;  %v3036_v29 = vcombine.low %v4314_v62, %v4318_v28  ;;  %v4325_v49 = vsel %vm4115_vm7, %v3029_v27, %v804_v4  ;;  %v806_v17 = vrot.slane %v804_v4, 4  ;;  %v814_v40 = vrot.slane %v4061_v31, 5 }
  0x60   : > { %3450 = vmatmul.mubr.msk.bf16.vlgmr.msra.gmra.mrb[0].mxu1 %vm471_vm3, %v3012_v60  ;;  %v3031_v18 = vrot.slane %v765_v35, 9  ;;  %v3015_v60 = vcombine.low %v4086_v16, %v4092_v26  ;;  %v818_v54 = vrot.slane %v4092_v26, 5  ;;  %v821_v2 = vrot.slane %v4097_v41, 5 }
  0x61   : > { %3466 = vmatpush3.bf16.msra.mxu1 %v894_v33  ;;  %3453 = vmatprep.mubr.msk.bf16.mxu1 %vm471_vm3, %v3013_v5  ;;  %v4336_v55 = vsel %vm4115_vm7, %v806_v17, %v807_v44  ;;  %v790_v13 = vrot.slane %v3927_v9, 5  ;;  %v4345_v31 = vsel %vm4115_vm7, %v3030_v47, %v811_v53  ;;  %v813_v16 = vrot.slane %v811_v53, 4  ;;  %v766_v5 = vld [vmem:[%s3920_s5 + $0x3c] sm:$0xe] }
  0x62   : > { %3724 = vmatprep.subr.msk.bf16.mxu1 %vm496_vm0, %v1073_v19  ;;  %v3037_v21 = vcombine.low %v4325_v49, %v4336_v55  ;;  %v4352_v26 = vsel %vm4115_vm7, %v3031_v18, %v818_v54  ;;  %v820_v41 = vrot.slane %v818_v54, 4  ;;  %v3032_v38 = vrot.slane %v766_v5, 9  ;;  %v3196_v5 = vld [vmem:[%s3920_s5 + $0x24] sm:$0xf]  ;;  %v3800_v49 = vld [vmem:[%s4800_s1 + $0x8] sm:$0x3] }
  0x63   : > { %v4358_v9 = vsel %vm4115_vm7, %v813_v16, %v814_v40  ;;  %v793_v23 = vrot.slane %v3930_v10, 5  ;;  %v3027_v46 = vrot.slane %v761_v24, 9  ;;  %v792_v59 = vrot.slane %v790_v13, 4  ;;  %v767_v40 = vld [vmem:[%s3920_s5 + $0x48] sm:$0xe] }
  0x64   : > { %v4369_v33 = vsel %vm4115_vm7, %v820_v41, %v821_v2  ;;  %v2078_v27 = vshrl.u32 %v3193_v11, 16  ;;  %v2081_v4 = vshll.u32 %v3193_v11, 16  ;;  %v825_v35 = vrot.slane %v4120_v6, 5  ;;  %v4418_v24 = vld [vmem:[%s3920_s5 + $0x28] sm:$0xf] }
  0x65   : > { %v828_v44 = vrot.slane %v4123_v20, 5  ;;  %v3016_v47 = vcombine.low %v4109_v58, %v4120_v6  ;;  %v2091_v10 = vshrl.u32 %v4362_v12, 16  ;;  %v2323_v17 = vsel %vm496_vm0, %v2297_v61, 0 }
  0x66   : > { %3534 = vmatmul.mubr.msk.bf16.gmra.mrb[12].mxu0 %vm471_vm3, %v3149_v50  ;;  %v2087_v50 = vshll.u32 %v4362_v12, 16  ;;  %v4389_v53 = vsel %vm4115_vm7, %v3032_v38, %v825_v35  ;;  %v827_v20 = vrot.slane %v825_v35, 4  ;;  %v791_v58 = vsel %vm4115_vm7, %v3027_v46, %v790_v13  ;;  %v3786_v38 = vld [vmem:[%s3920_s5 + $0x3c] sm:$0xff]   ;;  %v3199_v46 = vld [vmem:[%s3920_s5 + $0x30] sm:$0xf] }
  0x67   : > { %3539 = vmatprep.mubr.msk.bf16.mxu0 %vm471_vm3, %v3779_v52  ;;  %v3784_v52 = vld [vmem:[%s3920_s5 + $0x30] sm:$0xff]   ;;  %v794_v6 = vsel %vm4115_vm7, %v792_v59, %v793_v23  ;;  %v2080_v14 = vrot.slane %v2078_v27, 4  ;;  %v2083_v61 = vrot.slane %v2081_v4, 5  ;;  %v2093_v2 = vrot.slane %v2091_v10, 4 }
  0x68   : > { %3454 = vmatmul.mubr.msk.bf16.gmra.mrb[4].mxu1 %vm471_vm3, %v3014_v48  ;;  %v3017_v48 = vcombine.low %v4134_v32, %v4150_v0  ;;  %v4400_v32 = vld [vmem:[%s4800_s1 + $0x10] sm:$0x3]  ;;  %v4404_v18 = vsel %vm4115_vm7, %v827_v20, %v828_v44  ;;  %v4410_v54 = vrot.slane %v2087_v50, 5  ;;  %v3033_v16 = vrot.slane %v767_v40, 9  ;;  %v768_v44 = vld [vmem:[%s3920_s5 + $0x54] sm:$0xe] }
  0x69   : > { %3457 = vmatprep.mubr.msk.bf16.mxu1 %vm471_vm3, %v3015_v60  ;;  %v4408_v60 = vld [vmem:[%s3920_s5 + $0x20] sm:$0x1]  ;;  %v832_v41 = vrot.slane %v4150_v0, 5  ;;  %v3018_v11 = vcombine.low %v4172_v30, %v4183_v51  ;;  %v3035_v23 = vcombine.low %v791_v58, %v794_v6  ;;  %v2084_v59 = vor.u32 %v2083_v61, %v2080_v14  ;;  %v4434_v0 = vld [vmem:[%s3920_s5 + $0x34] sm:$0xf]  ;;  %v3788_v30 = vld [vmem:[%s3920_s5 + $0x48] sm:$0xff]  }
  0x6a   : > { %v2097_v27 = vshll.u32 %v4408_v60, 16  ;;  %v2102_v50 = vshrl.u32 %v3196_v5, 16  ;;  %v2105_v10 = vshll.u32 %v3196_v5, 16  ;;  %v2129_v20 = vshll.u32 %v3199_v46, 16 }
  0x6b   : > { %v4431_v4 = vsel %vm4115_vm7, %v3033_v16, %v832_v41  ;;  %v834_v35 = vrot.slane %v832_v41, 4  ;;  %v2135_v58 = vshll.u32 %v4434_v0, 16  ;;  %v2139_v6 = vshrl.u32 %v4434_v0, 16 }
  0x6c   : > { %v3034_v14 = vrot.slane %v768_v44, 9  ;;  %v2099_v61 = vrot.slane %v2097_v27, 5  ;;  %v842_v16 = vrot.slane %v4192_v1, 5  ;;  %v2085_v5 = vrot.slane %v2084_v59, 4  ;;  %v4465_v59 = vld [vmem:[%s3920_s5 + $0x38] sm:$0x1] }
  0x6d   : > { %v2131_v44 = vrot.slane %v2129_v20, 5  ;;  %v1372_v8 = vshrl.u32 %v4229_v63, 16 }
  0x6e   : > { %3540 = vmatmul.mubr.msk.bf16.vlgmr.msra.gmra.mrb[0].mxu0 %vm471_vm3, %v3782_v22  ;;  %v835_v22 = vrot.slane %v4154_v57, 5  ;;  %v2115_v57 = vshrl.u32 %v4418_v24, 16 }
  0x6f   : > { %3556 = vmatpush3.bf16.msra.mxu0 %v2323_v17  ;;  %3543 = vmatprep.mubr.msk.bf16.mxu0 %vm471_vm3, %v3784_v52  ;;  %v2111_v17 = vshll.u32 %v4418_v24, 16  ;;  %v2126_v52 = vshrl.u32 %v3199_v46, 16  ;;  %v2107_v46 = vrot.slane %v2105_v10, 5  ;;  %v3202_v10 = vld [vmem:[%s3920_s5 + $0x3c] sm:$0xf] }
  0x70   : > { %3458 = vmatmul.mubr.msk.bf16.gmra.mrb[8].mxu1 %vm471_vm3, %v3016_v47  ;;  %3730 = vmatprep.subr.msk.bf16.mxu0 %vm496_vm0, %v4400_v32  ;;  %v2094_v47 = vor.u32 %v2093_v2, %v4410_v54  ;;  %v839_v2 = vrot.slane %v4183_v51, 5  ;;  %v2117_v51 = vrot.slane %v2115_v57, 4  ;;  %v3790_v57 = vld [vmem:[%s3920_s5 + $0x60] sm:$0xff]  }
  0x71   : > { %3461 = vmatprep.mubr.msk.bf16.mxu1 %vm471_vm3, %v3017_v48  ;;  %v4443_v48 = vsel %vm4115_vm7, %v834_v35, %v835_v22  ;;  %v2104_v22 = vrot.slane %v2102_v50, 4  ;;  %v4458_v27 = vrot.slane %v2111_v17, 5  ;;  %v2128_v35 = vrot.slane %v2126_v52, 4 }
  0x72   : > { %v2095_v41 = vrot.slane %v2094_v47, 4  ;;  %v4462_v1 = vsel %vm4115_vm7, %v3034_v14, %v839_v2  ;;  %v3789_v47 = vld [vmem:[%s3920_s5 + $0x54] sm:$0xff]   ;;  %v1099_v17 = vsel %vm496_vm0, %v1073_v19, 0  ;;  %v2090_v52 = vsel %vm3960_vm4, %v2085_v5, %v4410_v54  ;;  %v3205_v14 = vld [vmem:[%s3920_s5 + $0x48] sm:$0xf] }
  0x73   : > { %v2108_v20 = vor.u32 %v2107_v46, %v2104_v22  ;;  %v2145_v19 = vshll.u32 %v4465_v59, 16  ;;  %v2132_v40 = vor.u32 %v2131_v44, %v2128_v35  ;;  %v2150_v5 = vshrl.u32 %v3202_v10, 16 }
  0x74   : > { %v2153_v22 = vshll.u32 %v3202_v10, 16 }
  0x75   : > { %v2109_v10 = vrot.slane %v2108_v20, 4  ;;  %v2152_v13 = vrot.slane %v2150_v5, 4 }
  0x76   : > { %3544 = vmatmul.mubr.msk.bf16.gmra.mrb[4].mxu0 %vm471_vm3, %v3786_v38  ;;  %v4456_v38 = vld [vmem:[%s3920_s5 + $0x2c] sm:$0x1]  ;;  %v2155_v25 = vrot.slane %v2153_v22, 5 }
  0x77   : > { %3547 = vmatprep.mubr.msk.bf16.mxu0 %vm471_vm3, %v3788_v30  ;;  %v4467_v30 = vrot.slane %v2135_v58, 5  ;;  %v2121_v43 = vshll.u32 %v4456_v38, 16  ;;  %v1368_v58 = vshll.u32 %v4229_v63, 16 }
  0x78   : > { %3462 = vmatmul.mubr.msk.bf16.gmra.mrb[12].mxu1 %vm471_vm3, %v3018_v11  ;;  %v841_v11 = vrot.slane %v839_v2, 4  ;;  %v2100_v2 = vsel %vm3960_vm4, %v2095_v41, %v2099_v61  ;;  %v2174_v41 = vshrl.u32 %v3205_v14, 16 }
  0x79   : > { %3467 = vmatprep.mubr.msk.bf16.mxu1 %vm471_vm3, %v3035_v23  ;;  %v2141_v23 = vrot.slane %v2139_v6, 4  ;;  %v4485_v6 = vld [vmem:[%s3920_s5 + $0x40] sm:$0xf]  ;;  %v3217_v35 = vcombine.low %v2090_v52, %v2100_v2  ;;  %v2123_v28 = vrot.slane %v2121_v43, 5  ;;  %v4515_v2 = vld [vmem:[%s3920_s5 + $0x44] sm:$0x1] }
  0x7a   : > { %v4472_v50 = vsel %vm4115_vm7, %v841_v11, %v842_v16  ;;  %v2118_v16 = vor.u32 %v2117_v51, %v4458_v27  ;;  %v4494_v11 = vld [vmem:[%s3920_s5 + $0x4c] sm:$0xf]  ;;  %v2159_v46 = vshll.u32 %v4485_v6, 16  ;;  %v2163_v61 = vshrl.u32 %v4485_v6, 16 }
  0x7b   : > { %v2142_v54 = vor.u32 %v2141_v23, %v4467_v30  ;;  %v2177_v51 = vshll.u32 %v3205_v14, 16  ;;  %v2183_v44 = vshll.u32 %v4494_v11, 16  ;;  %v2187_v23 = vshrl.u32 %v4494_v11, 16  ;;  %v3208_v14 = vld [vmem:[%s3920_s5 + $0x54] sm:$0xf] }
  0x7c   : > { %v2119_v62 = vrot.slane %v2118_v16, 4  ;;  %v4521_v55 = vrot.slane %v2159_v46, 5  ;;  %v4524_v16 = vld [vmem:[%s3920_s5 + $0x58] sm:$0xf]  ;;  %v2201_v5 = vshll.u32 %v3208_v14, 16  ;;  %v4531_v22 = vrot.slane %v1368_v58, 5 }
  0x7d   : > { %v2143_v52 = vrot.slane %v2142_v54, 4  ;;  %v2179_v20 = vrot.slane %v2177_v51, 5  ;;  %v4529_v43 = vrot.slane %v2183_v44, 5  ;;  %v2198_v54 = vshrl.u32 %v3208_v14, 16  ;;  %v4547_v14 = vld [vmem:[%s3920_s5 + $0x64] sm:$0xf] }
  0x7e   : > { %3548 = vmatmul.mubr.msk.bf16.gmra.mrb[8].mxu0 %vm471_vm3, %v3789_v47  ;;  %v3791_v47 = vld [vmem:[%s3920_s5 + $0x6c] sm:$0xff]   ;;  %v2114_v46 = vsel %vm3960_vm4, %v2109_v10, %v4458_v27  ;;  %v2169_v44 = vshll.u32 %v4515_v2, 16  ;;  %v2211_v58 = vshrl.u32 %v4524_v16, 16  ;;  %v2156_v27 = vor.u32 %v2155_v25, %v2152_v13 }
  0x7f   : > { %3551 = vmatprep.mubr.msk.bf16.mxu0 %vm471_vm3, %v3790_v57  ;;  %v2133_v57 = vrot.slane %v2132_v40, 4  ;;  %v4527_v40 = vld [vmem:[%s3920_s5 + $0x50] sm:$0x1]  ;;  %v4815_v25 = vcombine.low %v4352_v26, %v4369_v33 }
  0x80   : > { %3468 = vmatmul.mubr.msk.bf16.vlgmr.msra.gmra.mrb[0].mxu1 %vm471_vm3, %v3036_v29  ;;  %v2147_v29 = vrot.slane %v2145_v19, 5  ;;  %v2189_v19 = vrot.slane %v2187_v23, 4  ;;  %v2207_v23 = vshll.u32 %v4524_v16, 16  ;;  %v2157_v26 = vrot.slane %v2156_v27, 4 }
  0x81   : > { %3484 = vmatpush3.bf16.msra.mxu1 %v1099_v17  ;;  %3471 = vmatprep.mubr.msk.bf16.mxu1 %vm471_vm3, %v3037_v21  ;;  %v2165_v21 = vrot.slane %v2163_v61, 4  ;;  %v2176_v17 = vrot.slane %v2174_v41, 4  ;;  %v2124_v61 = vsel %vm3960_vm4, %v2119_v62, %v2123_v28  ;;  %v3211_v41 = vld [vmem:[%s3920_s5 + $0x60] sm:$0xf]  ;;  %v2138_v51 = vsel %vm3960_vm4, %v2133_v57, %v4467_v30 }
  0x82   : > { %3726 = vmatprep.subr.msk.bf16.mxu1 %vm496_vm0, %v3800_v49  ;;  %v2148_v63 = vsel %vm3960_vm4, %v2143_v52, %v2147_v29  ;;  %v2193_v62 = vshll.u32 %v4527_v40, 16  ;;  %v4814_v30 = vcombine.low %v4345_v31, %v4358_v9  ;;  %v2190_v57 = vor.u32 %v2189_v19, %v4529_v43 }
  0x83   : > { %v2166_v10 = vor.u32 %v2165_v21, %v4521_v55  ;;  %v2180_v28 = vor.u32 %v2179_v20, %v2176_v17  ;;  %v2203_v49 = vrot.slane %v2201_v5, 5  ;;  %v2222_v13 = vshrl.u32 %v3211_v41, 16  ;;  %v4569_v21 = vld [vmem:[%s3920_s5 + $0x5c] sm:$0x1]  ;;  %v3214_v5 = vld [vmem:[%s3920_s5 + $0x6c] sm:$0xf] }
  0x84   : > { %v2225_v29 = vshll.u32 %v3211_v41, 16  ;;  %v2231_v52 = vshll.u32 %v4547_v14, 16  ;;  %v2235_v31 = vshrl.u32 %v4547_v14, 16  ;;  %v3218_v9 = vcombine.low %v2114_v46, %v2124_v61 }
  0x85   : > { %v4571_v17 = vrot.slane %v2207_v23, 5  ;;  %v2213_v20 = vrot.slane %v2211_v58, 4  ;;  %v3219_v19 = vcombine.low %v2138_v51, %v2148_v63  ;;  %v2167_v33 = vrot.slane %v2166_v10, 4  ;;  %v4582_v58 = vld [vmem:[%s3920_s5 + $0x68] sm:$0x1] }
  0x86   : > { %3552 = vmatmul.mubr.msk.bf16.gmra.mrb[12].mxu0 %vm471_vm3, %v3791_v47  ;;  %v2200_v47 = vrot.slane %v2198_v54, 4  ;;  %v2171_v54 = vrot.slane %v2169_v44, 5  ;;  %v2181_v41 = vrot.slane %v2180_v28, 4  ;;  %v2224_v46 = vrot.slane %v2222_v13, 4 }
  0x87   : > { %3557 = vmatprep.mubr.msk.bf16.mxu0 %vm471_vm3, %v3217_v35  ;;  %v2576_v35 = vsel %vm496_vm0, %v4400_v32, 0  ;;  %v2227_v61 = vrot.slane %v2225_v29, 5  ;;  %v4577_v32 = vrot.slane %v2231_v52, 5  ;;  %v2237_v37 = vrot.slane %v2235_v31, 4 }
  0x88   : > { %3472 = vmatmul.mubr.msk.bf16.gmra.mrb[4].mxu1 %vm471_vm3, %v4814_v30  ;;  %v2191_v30 = vrot.slane %v2190_v57, 4  ;;  %v2204_v45 = vor.u32 %v2203_v49, %v2200_v47  ;;  %v2214_v23 = vor.u32 %v2213_v20, %v4571_v17  ;;  %v2217_v51 = vshll.u32 %v4569_v21, 16 }
  0x89   : > { %3475 = vmatprep.mubr.msk.bf16.mxu1 %vm471_vm3, %v4815_v25  ;;  %v2195_v25 = vrot.slane %v2193_v62, 5  ;;  %v2246_v63 = vshrl.u32 %v3214_v5, 16  ;;  %v2249_v44 = vshll.u32 %v3214_v5, 16  ;;  %v1374_v27 = vrot.slane %v1372_v8, 4 }
  0x8a   : > { %v1378_v10 = vshll.u32 %v4232_v56, 16  ;;  %v2255_v62 = vshll.u32 %v4575_v15, 16  ;;  %v2259_v28 = vshrl.u32 %v4575_v15, 16  ;;  %v4816_v57 = vcombine.low %v4389_v53, %v4404_v18 }
  0x8b   : > { %v2162_v47 = vsel %vm3960_vm4, %v2157_v26, %v4521_v55  ;;  %v2172_v56 = vsel %vm3960_vm4, %v2167_v33, %v2171_v54  ;;  %v2186_v8 = vsel %vm3960_vm4, %v2181_v41, %v4529_v43  ;;  %v2205_v49 = vrot.slane %v2204_v45, 4  ;;  %v4610_v43 = vld [vmem:[%s3920_s5 + $0x74] sm:$0x1]  ;;  %v3792_v26 = vld [vmem:[%s3920_s5 + $0xc] sm:$0xff]  }
  0x8c   : > { %v4817_v13 = vcombine.low %v4431_v4, %v4443_v48  ;;  %v2196_v53 = vsel %vm3960_vm4, %v2191_v30, %v2195_v25  ;;  %v2228_v18 = vor.u32 %v2227_v61, %v2224_v46  ;;  %v2238_v55 = vor.u32 %v2237_v37, %v4577_v32 }
  0x8d   : > { %v2241_v29 = vshll.u32 %v4582_v58, 16  ;;  %v2215_v52 = vrot.slane %v2214_v23, 4  ;;  %v2219_v31 = vrot.slane %v2217_v51, 5  ;;  %v2248_v45 = vrot.slane %v2246_v63, 4  ;;  %v3234_v51 = vld [vmem:[%s3920_s5 + $0x18] sm:$0xe] }
  0x8e   : > { %3558 = vmatmul.mubr.msk.bf16.vlgmr.msra.gmra.mrb[0].mxu0 %vm471_vm3, %v3218_v9  ;;  %v2251_v9 = vrot.slane %v2249_v44, 5  ;;  %v1375_v4 = vor.u32 %v1374_v27, %v4531_v22  ;;  %v3220_v48 = vcombine.low %v2162_v47, %v2172_v56  ;;  %v2261_v20 = vrot.slane %v2259_v28, 4  ;;  %v3101_v44 = vld [vmem:[%s3920_s5 + $0x48] sm:$0xf] }
  0x8f   : > { %3574 = vmatpush3.bf16.msra.mxu0 %v2576_v35  ;;  %3561 = vmatprep.mubr.msk.bf16.mxu0 %vm471_vm3, %v3219_v19  ;;  %v4613_v35 = vrot.slane %v2255_v62, 5  ;;  %v3221_v19 = vcombine.low %v2186_v8, %v2196_v53  ;;  %v2229_v33 = vrot.slane %v2228_v18, 4  ;;  %v2239_v37 = vrot.slane %v2238_v55, 4  ;;  %v3098_v53 = vld [vmem:[%s3920_s5 + $0x3c] sm:$0xf] }
  0x90   : > { %3476 = vmatmul.mubr.msk.bf16.gmra.mrb[8].mxu1 %vm471_vm3, %v4816_v57  ;;  %v2243_v54 = vrot.slane %v2241_v29, 5  ;;  %v2265_v5 = vshll.u32 %v4610_v43, 16  ;;  %v1380_v41 = vrot.slane %v1378_v10, 5  ;;  %v2210_v30 = vsel %vm3960_vm4, %v2205_v49, %v4571_v17  ;;  %v3794_v29 = vld [vmem:[%s3920_s5 + $0x24] sm:$0xff]  }
  0x91   : > { %3479 = vmatprep.mubr.msk.bf16.mxu1 %vm471_vm3, %v4817_v13  ;;  %v2220_v25 = vsel %vm3960_vm4, %v2215_v52, %v2219_v31  ;;  %v2252_v46 = vor.u32 %v2251_v9, %v2248_v45  ;;  %v1376_v61 = vrot.slane %v1375_v4, 4  ;;  %v2262_v23 = vor.u32 %v2261_v20, %v4613_v35  ;;  %v3793_v13 = vld [vmem:[%s3920_s5 + $0x18] sm:$0xff]   ;;  %v3235_v45 = vld [vmem:[%s3920_s5 + $0x24] sm:$0xe]  ;;  %v3236_v20 = vld [vmem:[%s3920_s5 + $0x30] sm:$0xe] }
  0x92   : > { %v2472_v63 = vrot.slane %v4362_v12, 5  ;;  %v4818_v27 = vcombine.low %v4462_v1, %v4472_v50  ;;  %v3222_v17 = vcombine.low %v2210_v30, %v2220_v25  ;;  %v2234_v10 = vsel %vm3960_vm4, %v2229_v33, %v4577_v32 }
  0x93   : > { %v2244_v12 = vsel %vm3960_vm4, %v2239_v37, %v2243_v54  ;;  %v2267_v62 = vrot.slane %v2265_v5, 5  ;;  %v2253_v28 = vrot.slane %v2252_v46, 4  ;;  %v3242_v1 = vrot.slane %v3234_v51, 9 }
  0x94   : > { %v1359_v50 = vshrl.u32 %v3101_v44, 16  ;;  %v1362_v57 = vshll.u32 %v3101_v44, 16  ;;  %v2263_v47 = vrot.slane %v2262_v23, 4  ;;  %v2474_v56 = vrot.slane %v2472_v63, 4  ;;  %v3795_v23 = vld [vmem:[%s3920_s5 + $0x30] sm:$0xff]  }
  0x95   : > { %v2475_v8 = vrot.slane %v4408_v60, 5  ;;  %v1381_v49 = vsel %vm3960_vm4, %v1376_v61, %v1380_v41  ;;  %v3223_v32 = vcombine.low %v2234_v10, %v2244_v12  ;;  %v2258_v52 = vsel %vm3960_vm4, %v2253_v28, %v4613_v35  ;;  %v3104_v28 = vld [vmem:[%s3920_s5 + $0x54] sm:$0xf] }
  0x96   : > { %3562 = vmatmul.mubr.msk.bf16.gmra.mrb[4].mxu0 %vm471_vm3, %v3220_v48  ;;  %v1361_v18 = vrot.slane %v1359_v50, 4  ;;  %v1364_v55 = vrot.slane %v1362_v57, 5  ;;  %v2473_v31 = vsel %vm4115_vm7, %v3242_v1, %v2472_v63  ;;  %v2479_v60 = vrot.slane %v4418_v24, 5 }
  0x97   : > { %3565 = vmatprep.mubr.msk.bf16.mxu0 %vm471_vm3, %v3221_v19  ;;  %v2268_v4 = vsel %vm3960_vm4, %v2263_v47, %v2267_v62  ;;  %v2476_v48 = vsel %vm4115_vm7, %v2474_v56, %v2475_v8  ;;  %v2486_v19 = vrot.slane %v4434_v0, 5  ;;  %v1338_v35 = vshll.u32 %v3098_v53, 16  ;;  %v3238_v47 = vld [vmem:[%s3920_s5 + $0x48] sm:$0xe] }
  0x98   : > { %3480 = vmatmul.mubr.msk.bf16.gmra.mrb[12].mxu1 %vm471_vm3, %v4818_v27  ;;  %v1365_v9 = vor.u32 %v1364_v55, %v1361_v18  ;;  %v1344_v24 = vshll.u32 %v4211_v36, 16  ;;  %v1348_v33 = vshrl.u32 %v4211_v36, 16  ;;  %v3243_v54 = vrot.slane %v3235_v45, 9  ;;  %v3796_v27 = vld [vmem:[%s3920_s5 + $0x3c] sm:$0xff]  }
  0x99   : > { %3485 = vmatprep.mubr.msk.bf16.mxu1 %vm471_vm3, %v3792_v26  ;;  %v1335_v26 = vshrl.u32 %v3098_v53, 16  ;;  %v2482_v0 = vrot.slane %v4456_v38, 5  ;;  %v2481_v5 = vrot.slane %v2479_v60, 4  ;;  %v3244_v41 = vrot.slane %v3236_v20, 9 }
  0x9a   : > { %v1366_v37 = vrot.slane %v1365_v9, 4  ;;  %v2489_v30 = vrot.slane %v4465_v59, 5  ;;  %v3224_v46 = vcombine.low %v2258_v52, %v2268_v4  ;;  %v3250_v36 = vcombine.low %v2473_v31, %v2476_v48  ;;  %v3798_v4 = vld [vmem:[%s3920_s5 + $0x54] sm:$0xff]  }
  0x9b   : > { %v2488_v61 = vrot.slane %v2486_v19, 4  ;;  %v1337_v51 = vrot.slane %v1335_v26, 4  ;;  %v1340_v63 = vrot.slane %v1338_v35, 5  ;;  %v4672_v44 = vrot.slane %v1344_v24, 5  ;;  %v3107_v26 = vld [vmem:[%s3920_s5 + $0x60] sm:$0xf] }
  0x9c   : > { %v1371_v25 = vsel %vm3960_vm4, %v1366_v37, %v4531_v22  ;;  %v1350_v38 = vrot.slane %v1348_v33, 4  ;;  %v2480_v59 = vsel %vm4115_vm7, %v3243_v54, %v2479_v60  ;;  %v2483_v22 = vsel %vm4115_vm7, %v2481_v5, %v2482_v0  ;;  %v3239_v0 = vld [vmem:[%s3920_s5 + $0x54] sm:$0xe] }
  0x9d   : > { %v2487_v10 = vsel %vm4115_vm7, %v3244_v41, %v2486_v19  ;;  %v2490_v12 = vsel %vm4115_vm7, %v2488_v61, %v2489_v30  ;;  %v2493_v62 = vrot.slane %v4485_v6, 5  ;;  %v1341_v1 = vor.u32 %v1340_v63, %v1337_v51  ;;  %v4820_v63 = vld [vmem:[#allocation2_spill] sm:$0xff] }
  0x9e   : > { %3566 = vmatmul.mubr.msk.bf16.gmra.mrb[8].mxu0 %vm471_vm3, %v3222_v17  ;;  %v3237_v17 = vld [vmem:[%s3920_s5 + $0x3c] sm:$0xe]  ;;  %v1351_v50 = vor.u32 %v1350_v38, %v4672_v44  ;;  %v1354_v57 = vshll.u32 %v4214_v42, 16  ;;  %v2500_v56 = vrot.slane %v4494_v11, 5  ;;  %v3251_v8 = vcombine.low %v2480_v59, %v2483_v22  ;;  %v3797_v11 = vld [vmem:[%s3920_s5 + $0x48] sm:$0xff]  }
  0x9f   : > { %3569 = vmatprep.mubr.msk.bf16.mxu0 %vm471_vm3, %v3223_v32  ;;  %v2496_v6 = vrot.slane %v4515_v2, 5  ;;  %v1386_v32 = vshll.u32 %v3104_v28, 16  ;;  %v1392_v53 = vshll.u32 %v4240_v39, 16  ;;  %v1396_v18 = vshrl.u32 %v4240_v39, 16 }
  0xa0   : > { %3486 = vmatmul.mubr.msk.bf16.vlgmr.msra.gmra.mrb[0].mxu1 %vm471_vm3, %v3793_v13  ;;  %v1383_v13 = vshrl.u32 %v3104_v28, 16  ;;  %v3252_v55 = vcombine.low %v2487_v10, %v2490_v12  ;;  %v3246_v42 = vrot.slane %v3238_v47, 9  ;;  %v2503_v52 = vrot.slane %v4527_v40, 5 }
  0xa1   : > { %3592 = vmatpush3.bf16.msra.mxu1 %v3901_v3  ;;  %3489 = vmatprep.mubr.msk.bf16.mxu1 %vm471_vm3, %v3794_v29  ;;  %v4669_v3 = vcombine.low %v1371_v25, %v1381_v49  ;;  %v3245_v49 = vrot.slane %v3237_v17, 9  ;;  %v2495_v29 = vrot.slane %v2493_v62, 4  ;;  %v1342_v31 = vrot.slane %v1341_v1, 4  ;;  %v4819_v25 = vld [vmem:[#allocation3_spill] sm:$0xff] }
  0xa2   : > { %v1352_v45 = vrot.slane %v1351_v50, 4  ;;  %v1356_v60 = vrot.slane %v1354_v57, 5  ;;  %v2502_v9 = vrot.slane %v2500_v56, 4  ;;  %v1385_v2 = vrot.slane %v1383_v13, 4 }
  0xa3   : > { %v1388_v48 = vrot.slane %v1386_v32, 5  ;;  %v1394_v20 = vrot.slane %v1392_v53, 5  ;;  %v1398_v19 = vrot.slane %v1396_v18, 4  ;;  %v2494_v39 = vsel %vm4115_vm7, %v3245_v49, %v2493_v62  ;;  %v4821_v18 = vld [vmem:[#allocation4_spill] sm:$0xff] }
  0xa4   : > { %v2497_v40 = vsel %vm4115_vm7, %v2495_v29, %v2496_v6  ;;  %v2501_v35 = vsel %vm4115_vm7, %v3246_v42, %v2500_v56  ;;  %v2507_v24 = vrot.slane %v4524_v16, 5  ;;  %v1347_v33 = vsel %vm3960_vm4, %v1342_v31, %v4672_v44  ;;  %v3240_v16 = vld [vmem:[%s3920_s5 + $0x60] sm:$0xe]  ;;  %v3241_v29 = vld [vmem:[%s3920_s5 + $0x6c] sm:$0xe] }
  0xa5   : > { %v1357_v37 = vsel %vm3960_vm4, %v1352_v45, %v1356_v60  ;;  %v2504_v54 = vsel %vm4115_vm7, %v2502_v9, %v2503_v52  ;;  %v2514_v5 = vrot.slane %v4547_v14, 5  ;;  %v1407_v41 = vshrl.u32 %v3107_v26, 16  ;;  %v3799_v14 = vld [vmem:[%s3920_s5 + $0x60] sm:$0xff]   ;;  %s4768_s5 = scalar_lea.vmem %s4801_s2, %s2988_s29 }
  0xa6   : > { %3570 = vmatmul.mubr.msk.bf16.gmra.mrb[12].mxu0 %vm471_vm3, %v3224_v46  ;;  %v1410_v30 = vshll.u32 %v3107_v26, 16  ;;  %v1416_v46 = vshll.u32 %v4819_v25, 16  ;;  %v3253_v61 = vcombine.low %v2494_v39, %v2497_v40  ;;  %v1399_v51 = vor.u32 %v1398_v19, %v1394_v20 }
  0xa7   : > { %3575 = vmatprep.mubr.msk.bf16.mxu0 %vm471_vm3, %v3250_v36  ;;  %v1420_v36 = vshrl.u32 %v4819_v25, 16  ;;  %v1402_v44 = vshll.u32 %v4820_v63, 16  ;;  %v3254_v38 = vcombine.low %v2501_v35, %v2504_v54  ;;  %v2509_v59 = vrot.slane %v2507_v24, 4 }
  0xa8   : > { %3490 = vmatmul.mubr.msk.bf16.gmra.mrb[4].mxu1 %vm471_vm3, %v3795_v23  ;;  %v1389_v23 = vor.u32 %v1388_v48, %v1385_v2  ;;  %v2510_v22 = vrot.slane %v4569_v21, 5  ;;  %v3114_v17 = vcombine.low %v1347_v33, %v1357_v37  ;;  %v3248_v10 = vrot.slane %v3240_v16, 9 }
  0xa9   : > { %3493 = vmatprep.mubr.msk.bf16.mxu1 %vm471_vm3, %v3796_v27  ;;  %v3247_v27 = vrot.slane %v3239_v0, 9  ;;  %v2516_v12 = vrot.slane %v2514_v5, 4  ;;  %v2517_v62 = vrot.slane %v4582_v58, 5  ;;  %v1409_v28 = vrot.slane %v1407_v41, 4 }
  0xaa   : > { %v1412_v1 = vrot.slane %v1410_v30, 5  ;;  %v1418_v50 = vrot.slane %v1416_v46, 5  ;;  %v1422_v57 = vrot.slane %v1420_v36, 4  ;;  %v1390_v47 = vrot.slane %v1389_v23, 4 }
  0xab   : > { %v1400_v56 = vrot.slane %v1399_v51, 4  ;;  %v2508_v21 = vsel %vm4115_vm7, %v3247_v27, %v2507_v24  ;;  %v2511_v58 = vsel %vm4115_vm7, %v2509_v59, %v2510_v22  ;;  %v2515_v49 = vsel %vm4115_vm7, %v3248_v10, %v2514_v5 }
  0xac   : > { %v2521_v6 = vrot.slane %v4575_v15, 5  ;;  %v2518_v13 = vsel %vm4115_vm7, %v2516_v12, %v2517_v62  ;;  %v1413_v32 = vor.u32 %v1412_v1, %v1409_v28  ;;  %v1423_v53 = vor.u32 %v1422_v57, %v1418_v50 }
  0xad   : > { %v1395_v42 = vsel %vm3960_vm4, %v1390_v47, %v1394_v20  ;;  %v3256_v31 = vcombine.low %v2515_v49, %v2518_v13  ;;  %v3249_v45 = vrot.slane %v3241_v29, 9  ;;  %v2524_v60 = vrot.slane %v4610_v43, 5 }
  0xae   : > { %3576 = vmatmul.mubr.msk.bf16.vlgmr.msra.gmra.mrb[0].mxu0 %vm471_vm3, %v3251_v8  ;;  %v1404_v8 = vrot.slane %v1402_v44, 5  ;;  %v2523_v15 = vrot.slane %v2521_v6, 4  ;;  %v1424_v2 = vrot.slane %v1423_v53, 4 }
  0xaf   : > { %3579 = vmatprep.mubr.msk.bf16.mxu0 %vm471_vm3, %v3252_v55  ;;  %v1426_v55 = vshll.u32 %v4821_v18, 16  ;;  %v2522_v20 = vsel %vm4115_vm7, %v3249_v45, %v2521_v6 }
  0xb0   : > { %3494 = vmatmul.mubr.msk.bf16.gmra.mrb[8].mxu1 %vm471_vm3, %v3797_v11  ;;  %v1405_v52 = vsel %vm3960_vm4, %v1400_v56, %v1404_v8  ;;  %v3255_v11 = vcombine.low %v2508_v21, %v2511_v58  ;;  %v2525_v19 = vsel %vm4115_vm7, %v2523_v15, %v2524_v60 }
  0xb1   : > { %3497 = vmatprep.mubr.msk.bf16.mxu1 %vm471_vm3, %v3798_v4  ;;  %v3116_v9 = vcombine.low %v1395_v42, %v1405_v52  ;;  %v1414_v4 = vrot.slane %v1413_v32, 4  ;;  %v1428_v48 = vrot.slane %v1426_v55, 5  ;;  %v3257_v39 = vcombine.low %v2522_v20, %v2525_v19 }
  0xb3   : > { %v1419_v43 = vsel %vm3960_vm4, %v1414_v4, %v1418_v50  ;;  %v1429_v26 = vsel %vm3960_vm4, %v1424_v2, %v1428_v48 }
  0xb4   : > { %v3117_v40 = vcombine.low %v1419_v43, %v1429_v26 }
  0xb6   : > { %3580 = vmatmul.mubr.msk.bf16.gmra.mrb[4].mxu0 %vm471_vm3, %v3253_v61 }
  0xb7   : > { %3583 = vmatprep.mubr.msk.bf16.mxu0 %vm471_vm3, %v3254_v38 }
  0xb8   : > { %3498 = vmatmul.mubr.msk.bf16.gmra.mrb[12].mxu1 %vm471_vm3, %v3799_v14 }
  0xb9   : > { %3511 = vmatprep.mubr.msk.bf16.mxu1 %vm471_vm3, %v3114_v17 }
  0xbe   : > { %3584 = vmatmul.mubr.msk.bf16.gmra.mrb[8].mxu0 %vm471_vm3, %v3255_v11 }
  0xbf   : > { %3587 = vmatprep.mubr.msk.bf16.mxu0 %vm471_vm3, %v3256_v31 }
  0xc0   : > { %3512 = vmatmul.mubr.msk.bf16.vlgmr.msra.gmra.mrb[8].mxu1 %vm471_vm3, %v4669_v3 }
  0xc1   : > { %3515 = vmatprep.mubr.msk.bf16.mxu1 %vm471_vm3, %v3116_v9 }
  0xc6   : > { %3588 = vmatmul.mubr.msk.bf16.gmra.mrb[12].mxu0 %vm471_vm3, %v3257_v39 }
  0xc8   : > { %3516 = vmatmul.mubr.msk.bf16.gmra.mrb[12].mxu1 %vm471_vm3, %v3117_v40 }
 0x173   : > { %v3487_v3 = vpop.f32.mrb[0].mxu1 }
 0x174   : > { %v1135_v35 = vpop.f32.mrb[1].mxu1 }
 0x175   : > { %v3488_v7 = vpop.f32.mrb[2].mxu1 }
 0x176   : > { %v1138_v24 = vpop.f32.mrb[3].mxu1 }
 0x17b   : > { %v3491_v33 = vpop.f32.mrb[4].mxu1 }
 0x17c   : > { %v1151_v37 = vpop.f32.mrb[5].mxu1 }
 0x17d   : > { %v3492_v54 = vpop.f32.mrb[6].mxu1 }
 0x17e   : > { %v1154_v34 = vpop.f32.mrb[7].mxu1 }
 0x181   : > { %v3577_v0 = vpop.f32.mrb[0].mxu0 }
 0x182   : > { %v3593_v5 = vadd.f32 %v3577_v0, %v3487_v3  ;;  %v2612_v16 = vpop.f32.mrb[1].mxu0 }
 0x183   : > { %v3594_v41 = vadd.f32 %v2612_v16, %v1135_v35  ;;  %v3578_v30 = vpop.f32.mrb[2].mxu0 }
 0x184   : > { %v3595_v25 = vadd.f32 %v3578_v30, %v3488_v7  ;;  %v2615_v46 = vpop.f32.mrb[3].mxu0  ;;  %v2794_v38 = vmul.f32 %v3593_v5, %v3593_v5 }
 0x185   : > { %v3596_v36 = vadd.f32 %v2615_v46, %v1138_v24  ;;  %v2792_v23 = vmul.f32 %v3594_v41, %v3594_v41 }
 0x186   : > { %v3309_v61 = vpack.c.bf16 %v3595_v25, %v3593_v5  ;;  %v2795_v10 = vmul.f32 %v3595_v25, %v3595_v25 }
 0x187   : > { %v3304_v51 = vpack.c.bf16 %v3596_v36, %v3594_v41  ;;  %v2771_v63 = vadd.f32 %v3596_v36, %v3594_v41  ;;  %v2793_v44 = vmul.f32 %v3596_v36, %v3596_v36 }
 0x188   : > { %3341 = vst [vmem:[%s4768_s5 + $0x8] sm:$0xff] %v3309_v61  }
 0x189   : > { %3305 = vst [vmem:[%s4768_s5] sm:$0xff] %v3304_v51   ;;  %v2772_v27 = vadd.f32 %v3593_v5, %v2771_v63  ;;  %v2808_v59 = vadd.f32 %v2793_v44, %v2792_v23  ;;  %v3581_v22 = vpop.f32.mrb[4].mxu0 }
 0x18a   : > { %v3597_v14 = vadd.f32 %v3581_v22, %v3491_v33  ;;  %v2628_v17 = vpop.f32.mrb[5].mxu0 }
 0x18b   : > { %v2809_v12 = vadd.f32 %v2808_v59, %v2794_v38  ;;  %v3598_v62 = vadd.f32 %v2628_v17, %v1151_v37  ;;  %v2773_v28 = vadd.f32 %v3595_v25, %v2772_v27  ;;  %v3582_v1 = vpop.f32.mrb[6].mxu0 }
 0x18c   : > { %v3599_v50 = vadd.f32 %v3582_v1, %v3492_v54  ;;  %v2631_v57 = vpop.f32.mrb[7].mxu0  ;;  %v2798_v53 = vmul.f32 %v3597_v14, %v3597_v14 }
 0x18d   : > { %v2774_v47 = vadd.f32 %v3598_v62, %v2773_v28  ;;  %v2796_v56 = vmul.f32 %v3598_v62, %v3598_v62  ;;  %v2810_v8 = vadd.f32 %v2809_v12, %v2795_v10  ;;  %v3600_v21 = vadd.f32 %v2631_v57, %v1154_v34 }
 0x18e   : > { %v3319_v58 = vpack.c.bf16 %v3599_v50, %v3597_v14  ;;  %v2799_v11 = vmul.f32 %v3599_v50, %v3599_v50 }
 0x18f   : > { %v2811_v49 = vadd.f32 %v2810_v8, %v2796_v56  ;;  %v3314_v6 = vpack.c.bf16 %v3600_v21, %v3598_v62  ;;  %v2775_v13 = vadd.f32 %v3600_v21, %v2774_v47  ;;  %v2797_v32 = vmul.f32 %v3600_v21, %v3600_v21 }
 0x190   : > { %3343 = vst [vmem:[%s4768_s5 + $0x18] sm:$0xff] %v3319_v58  }
 0x191   : > { %3342 = vst [vmem:[%s4768_s5 + $0x10] sm:$0xff] %v3314_v6   ;;  %v2776_v18 = vadd.f32 %v3597_v14, %v2775_v13  ;;  %v2812_v55 = vadd.f32 %v2811_v49, %v2797_v32  ;;  %v3585_v29 = vpop.f32.mrb[8].mxu0 }
 0x192   : > { %v2644_v52 = vpop.f32.mrb[9].mxu0 }
 0x193   : > { %v3513_v42 = vpop.f32.mrb[8].mxu1  ;;  %v2813_v31 = vadd.f32 %v2812_v55, %v2798_v53  ;;  %v2777_v60 = vadd.f32 %v3599_v50, %v2776_v18  ;;  %v3586_v9 = vpop.f32.mrb[10].mxu0 }
 0x194   : > { %v3601_v45 = vadd.f32 %v3585_v29, %v3513_v42  ;;  %v1548_v15 = vpop.f32.mrb[9].mxu1  ;;  %v2647_v48 = vpop.f32.mrb[11].mxu0 }
 0x195   : > { %v3602_v4 = vadd.f32 %v2644_v52, %v1548_v15  ;;  %v3514_v2 = vpop.f32.mrb[10].mxu1  ;;  %v2814_v20 = vadd.f32 %v2813_v31, %v2799_v11 }
 0x196   : > { %v3603_v19 = vadd.f32 %v3586_v9, %v3514_v2  ;;  %v1551_v43 = vpop.f32.mrb[11].mxu1  ;;  %v2802_v54 = vmul.f32 %v3601_v45, %v3601_v45 }
 0x197   : > { %v2778_v26 = vadd.f32 %v3602_v4, %v2777_v60  ;;  %v2800_v39 = vmul.f32 %v3602_v4, %v3602_v4  ;;  %v3604_v40 = vadd.f32 %v2647_v48, %v1551_v43 }
 0x198   : > { %v3329_v3 = vpack.c.bf16 %v3603_v19, %v3601_v45  ;;  %v2803_v46 = vmul.f32 %v3603_v19, %v3603_v19 }
 0x199   : > { %v2815_v35 = vadd.f32 %v2814_v20, %v2800_v39  ;;  %v3324_v7 = vpack.c.bf16 %v3604_v40, %v3602_v4  ;;  %v2779_v24 = vadd.f32 %v3604_v40, %v2778_v26  ;;  %v2801_v33 = vmul.f32 %v3604_v40, %v3604_v40  ;;  %v3589_v37 = vpop.f32.mrb[12].mxu0 }
 0x19a   : > { %3345 = vst [vmem:[%s4768_s5 + $0x28] sm:$0xff] %v3329_v3   ;;  %v2660_v16 = vpop.f32.mrb[13].mxu0 }
 0x19b   : > { %3344 = vst [vmem:[%s4768_s5 + $0x20] sm:$0xff] %v3324_v7   ;;  %v2780_v34 = vadd.f32 %v3601_v45, %v2779_v24  ;;  %v2816_v0 = vadd.f32 %v2815_v35, %v2801_v33  ;;  %v3517_v5 = vpop.f32.mrb[12].mxu1  ;;  %v3590_v25 = vpop.f32.mrb[14].mxu0 }
 0x19c   : > { %v3605_v41 = vadd.f32 %v3589_v37, %v3517_v5  ;;  %v1564_v30 = vpop.f32.mrb[13].mxu1  ;;  %v2663_v63 = vpop.f32.mrb[15].mxu0 }
 0x19d   : > { %v2817_v36 = vadd.f32 %v2816_v0, %v2802_v54  ;;  %v3606_v61 = vadd.f32 %v2660_v16, %v1564_v30  ;;  %v2781_v23 = vadd.f32 %v3603_v19, %v2780_v34  ;;  %v3518_v51 = vpop.f32.mrb[14].mxu1 }
 0x19e   : > { %v3607_v44 = vadd.f32 %v3590_v25, %v3518_v51  ;;  %v1567_v38 = vpop.f32.mrb[15].mxu1  ;;  %v2806_v1 = vmul.f32 %v3605_v41, %v3605_v41 }
 0x19f   : > { %v2782_v27 = vadd.f32 %v3606_v61, %v2781_v23  ;;  %v2804_v59 = vmul.f32 %v3606_v61, %v3606_v61  ;;  %v2818_v22 = vadd.f32 %v2817_v36, %v2803_v46  ;;  %v3608_v14 = vadd.f32 %v2663_v63, %v1567_v38 }
 0x1a0   : > { %v3339_v17 = vpack.c.bf16 %v3607_v44, %v3605_v41  ;;  %v2807_v47 = vmul.f32 %v3607_v44, %v3607_v44 }
 0x1a1   : > { %v2819_v10 = vadd.f32 %v2818_v22, %v2804_v59  ;;  %v3334_v12 = vpack.c.bf16 %v3608_v14, %v3606_v61  ;;  %v2783_v62 = vadd.f32 %v3608_v14, %v2782_v27  ;;  %v2805_v28 = vmul.f32 %v3608_v14, %v3608_v14 }
 0x1a2   : > { %3347 = vst [vmem:[%s4768_s5 + $0x38] sm:$0xff] %v3339_v17  }
 0x1a3   : > { %3346 = vst [vmem:[%s4768_s5 + $0x30] sm:$0xff] %v3334_v12   ;;  %v2784_v50 = vadd.f32 %v3605_v41, %v2783_v62  ;;  %v2820_v57 = vadd.f32 %v2819_v10, %v2805_v28 }
 0x1a5   : > { %v2785_v56 = vadd.f32 %v3607_v44, %v2784_v50  ;;  %v2821_v8 = vadd.f32 %v2820_v57, %v2806_v1 }
 0x1a7   : > { %v2786_v21 = vrot.slane %v2785_v56, 4  ;;  %v2822_v58 = vadd.f32 %v2821_v8, %v2807_v47 }
 0x1a9   : > { %v2787_v49 = vadd.f32 %v2786_v21, %v2785_v56  ;;  %v2823_v6 = vrot.slane %v2822_v58, 4 }
 0x1ab   : > { %v2788_v13 = vrot.slane %v2787_v49, 2  ;;  %v2824_v32 = vadd.f32 %v2823_v6, %v2822_v58 }
 0x1ad   : > { %v2789_v53 = vadd.f32 %v2788_v13, %v2787_v49  ;;  %v2825_v18 = vrot.slane %v2824_v32, 2 }
 0x1af   : > { %v2790_v55 = vrot.slane %v2789_v53, 1  ;;  %v2826_v29 = vadd.f32 %v2825_v18, %v2824_v32 }
 0x1b1   : > { %v2827_v42 = vrot.slane %v2826_v29, 1  ;;  %v2791_v52 = vadd.f32 %v2790_v55, %v2789_v53 }
 0x1b3   : > { %v2828_v11 = vadd.f32 %v2827_v42, %v2826_v29 }
 0x1b5   : > { %v2830_v31 = vsel %vm2829_vm8, %v2791_v52, %v2828_v11 }
 0x1b6   : > { %2831 = vst [vmem:[%s216_s11] sm:$0x3] %v2830_v31 }
 0x1b7 PF: > { %s14_s16 = sadd.s32 1, %s3839_s16   ;;  %s4822_s12 = smov %s3831_s14 }
 0x1b8   : > { %p11_p8 = scmp.ge.s32.totalorder %s14_s16, 6   ;;  %s4823_s13 = smov %s3835_s15 }
 0x1b9   : > { %s4824_s14 = smov %s4827_s17  ;;  %s4825_s15 = smov %s4831_s18 }
 0x1ba   :  { %13 = sbr.rel (!%p11_p8) target bundleno = 3 (0x3), region = 73 }

// kernel: basic_block_forward.4
= control target key start
LH: loop header
LB: loop body
LE: loop exit
PB: predicated region body
PF: predicated region fallthrough
CT: control target
= control target key end

     0   :  { %s5481_s18 = smov 0   ;;  %s5483_s19 = smov 0   ;;  %s6808_s0 = inlined_call_operand.vmem [shape: bf16[2,16,16,128], index: 0, kind: input, shape index: {}]   ;;  %s6809_s1 = inlined_call_operand.vmem [shape: f32[1,128], index: 1, kind: input, shape index: {}]   ;;  %s6810_s2 = inlined_call_operand.vmem [shape: f32[1,128], index: 2, kind: input, shape index: {}]   ;;  %s6811_s3 = inlined_call_operand.vmem [shape: bf16[1152,128], index: 3, kind: input, shape index: {}]   ;;  %s6812_s4 = inlined_call_operand.vmem [shape: bf16[2,16,16,128], index: 4, kind: output, shape index: {0}]   ;;  %s6813_s5 = inlined_call_operand.vmem [shape: f32[2,2,2,128], index: 5, kind: output, shape index: {1}]  }
   0x1   :  { %s5485_s20 = smov 0   ;;  %s5487_s21 = smov 0  }
   0x2   :  { %s5489_s22 = smov 0  }
   0x3 LB: > { %s25_s23 = sadd.s32 1, %s5440_s20  ;;  %s28_s24 = sadd.s32 1, %s5444_s21  ;;  %s5448_s22 = sphi %s5489_s22, %s16_s22   ;;  %s5444_s21 = sphi %s5487_s21, %s6838_s21   ;;  %s5440_s20 = sphi %s5485_s20, %s6837_s20   ;;  %s5436_s19 = sphi %s5483_s19, %s6836_s19   ;;  %s5432_s18 = sphi %s5481_s18, %s6835_s18  }
   0x4   : > { %p26_p0 = scmp.ge.s32.totalorder %s25_s23, 2  ;;  %p4184_p1 = scmp.ge.s32.totalorder %s5448_s22, 1 }
   0x5   : > { %p206_p2 = scmp.lt.s32.totalorder %s5448_s22, 5 }
   0x6   : > { %s6840_s23 = smov (%p26_p0, %s25_s23), 0  ;;  %s6842_s24 = smov (!%p26_p0, %s28_s24), %s5444_s21 }
   0x7   : > { %p207_p3 = pnand %p4184_p1, %p206_p2  ;;  %p30_p4 = scmp.ge.s32.totalorder %s6842_s24, 2 }
   0x9   : > { %s6844_s24 = smov (%p30_p4, %s6842_s24), 0  ;;  %210 = sbr.rel (%p207_p3) target bundleno = 580 (0x244), region = 36 }
   0xa   : > { %6816 = sst [smem:[#allocation3_spill]] %s6844_s24 }
  0x10   : > { %p247_p5 = scmp.lt.s32.totalorder %s5436_s19, 1  ;;  %s4187_s25 = sshll.u32 %s5432_s18, 3 }
  0x11   : > { %p255_p6 = scmp.lt.s32.totalorder %s4187_s25, 15  ;;  %p265_p7 = scmp.lt.s32.totalorder %s5432_s18, 1 }
  0x12   : > { %s6846_s19 = smov (!%p247_p5, %s5436_s19), 1  ;;  %p4193_p8 = scmp.ne.s32.totalorder %s5432_s18, 0 }
  0x13   : > { %s6848_s25 = smov (!%p255_p6, %s4187_s25), 15  ;;  %s4517_s26 = sshll.u32 %s6846_s19, 7  ;;  %v5538_v1 = vld [vmem:[%s6809_s1] ss:$0 sm:$0xff] (!%p4193_p8)  ;;  %v5450_v3 = vmov (!%p4193_p8), 0   ;;  %vm924_vm0 = vcmask (!%p4193_p8), 1043456  }
  0x14   : > { %s4189_s27 = sshll.u32 %s6846_s19, 5  ;;  %s5518_s30 = scalar_lea.vmem %s6808_s0, %s4517_s26  ;;  %v5543_v2 = vld [vmem:[%s6810_s2] ss:$0 sm:$0xff] (!%p4193_p8)  ;;  %279 = vst [vmem:[#allocation2 + $0xc] sm:$0xf] (!%p4193_p8), %v5450_v3  ;;  %vm931_vm4 = vcmask (!%p4193_p8), 1040384  }
  0x15   : > { %s4188_s6 = sshll.u32 %s6848_s25, 1  ;;  %s4191_s12 = sshll.u32 %s6846_s19, 1  ;;  %v5533_v0 = vld [vmem:[%s5518_s30] sm:$0xff] (!%p4193_p8)   ;;  %276 = vst [vmem:[#allocation2] sm:$0xf] (!%p4193_p8), %v5450_v3  ;;  %v4671_v6 = vld [vmem:[%s5518_s30 + $0x8] sm:$0xff] (!%p4193_p8)  }
  0x16   : > { %s259_s7 = sadd.s32 %s4189_s27, %s4188_s6  ;;  %277 = vst [vmem:[#allocation2 + $0x4] sm:$0xf] (!%p4193_p8), %v5450_v3  ;;  %278 = vst [vmem:[#allocation2 + $0x8] sm:$0x1] (!%p4193_p8), %v5450_v3  ;;  %v4569_v4 = vunpack.c.l.bf16 (!%p4193_p8), %v5533_v0  ;;  %v4570_v5 = vunpack.c.h.bf16 (!%p4193_p8), %v5533_v0  ;;  %v4672_v7 = vld [vmem:[%s5518_s30 + $0x10] sm:$0xff] (!%p4193_p8)   ;;  %v4673_v8 = vld [vmem:[%s5518_s30 + $0x18] sm:$0xff] (!%p4193_p8)   ;;  %v4573_v9 = vunpack.c.l.bf16 (!%p4193_p8), %v4671_v6  ;;  %v4574_v12 = vunpack.c.h.bf16 (!%p4193_p8), %v4671_v6 }
  0x17   : > { %s4190_s8 = sshll.u32 %s259_s7, 2  ;;  %275 = sbr.rel (%p4193_p8) target bundleno = 128 (0x80), region = 40  ;;  %280 = vst [vmem:[#allocation2 + $0x10] sm:$0xf] (!%p4193_p8), %v5450_v3  ;;  %281 = vst [vmem:[#allocation2 + $0x14] sm:$0x1] (!%p4193_p8), %v5450_v3  ;;  %v4577_v13 = vunpack.c.l.bf16 (!%p4193_p8), %v4672_v7  ;;  %v4578_v15 = vunpack.c.h.bf16 (!%p4193_p8), %v4672_v7  ;;  %v4581_v16 = vunpack.c.l.bf16 (!%p4193_p8), %v4673_v8  ;;  %v4582_v17 = vunpack.c.h.bf16 (!%p4193_p8), %v4673_v8 }
  0x18   : > { %s5523_s11 = scalar_lea.vmem %s6812_s4, %s4190_s8  ;;  %282 = vst [vmem:[#allocation2 + $0x18] sm:$0xf] (!%p4193_p8), %v5450_v3  ;;  %283 = vst [vmem:[#allocation2 + $0x1c] sm:$0xf] (!%p4193_p8), %v5450_v3  ;;  %vm925_vm1 = vsmask.f32 (!%p4193_p8), 7938  ;;  %v401_v10 = vmul.f32 (!%p4193_p8), %v4569_v4, %v5538_v1  ;;  %v402_v11 = vmul.f32 (!%p4193_p8), %v4570_v5, %v5538_v1  ;;  %v403_v14 = vmul.f32 (!%p4193_p8), %v4573_v9, %v5538_v1 }
  0x19   : > { %s266_s13 = scalar_select %p265_p7, %s5432_s18, 1 }
  0x1a   : > { %284 = vst [vmem:[#allocation2 + $0x20] sm:$0x1] (!%p4193_p8), %v5450_v3  ;;  %285 = vst [vmem:[#allocation2 + $0x24] sm:$0xf] (!%p4193_p8), %v5450_v3  ;;  %vm600_vm2 = vsmask.f32 (!%p4193_p8), 256  ;;  %v440_v18 = vadd.f32 (!%p4193_p8), %v5543_v2, %v401_v10  ;;  %v441_v19 = vadd.f32 (!%p4193_p8), %v5543_v2, %v402_v11  ;;  %v404_v20 = vmul.f32 (!%p4193_p8), %v4574_v12, %v5538_v1 }
  0x1b   : > { %s268_s14 = sadd.s32 %s4191_s12, %s266_s13  ;;  %286 = vst [vmem:[#allocation2 + $0x28] sm:$0xf] (!%p4193_p8), %v5450_v3  ;;  %287 = vst [vmem:[#allocation2 + $0x2c] sm:$0x1] (!%p4193_p8), %v5450_v3  ;;  %vm601_vm3 = vsmask.f32 (!%p4193_p8), 4368  ;;  %v405_v21 = vmul.f32 (!%p4193_p8), %v4577_v13, %v5538_v1  ;;  %v442_v22 = vadd.f32 (!%p4193_p8), %v5543_v2, %v403_v14  ;;  %v406_v23 = vmul.f32 (!%p4193_p8), %v4578_v15, %v5538_v1 }
  0x1c   : > { %s4192_s15 = sshll.u32 %s268_s14, 1  ;;  %288 = vst [vmem:[#allocation2 + $0x30] sm:$0xf] (!%p4193_p8), %v5450_v3  ;;  %289 = vst [vmem:[#allocation2 + $0x34] sm:$0xf] (!%p4193_p8), %v5450_v3  ;;  %v407_v24 = vmul.f32 (!%p4193_p8), %v4581_v16, %v5538_v1  ;;  %v408_v25 = vmul.f32 (!%p4193_p8), %v4582_v17, %v5538_v1  ;;  %v472_v26 = vmax.f32 (!%p4193_p8), %v440_v18, 0.0  ;;  %v443_v28 = vadd.f32 (!%p4193_p8), %v5543_v2, %v404_v20 }
  0x1d   : > { %s5529_s24 = scalar_lea.vmem %s6813_s5, %s4192_s15  ;;  %290 = vst [vmem:[#allocation2 + $0x38] sm:$0x1] (!%p4193_p8), %v5450_v3  ;;  %291 = vst [vmem:[#allocation2 + $0x3c] sm:$0xf] (!%p4193_p8), %v5450_v3  ;;  %v473_v27 = vmax.f32 (!%p4193_p8), %v441_v19, 0.0  ;;  %v444_v29 = vadd.f32 (!%p4193_p8), %v5543_v2, %v405_v21  ;;  %v5564_v30 = vld [vmem:[%s5518_s30 + $0x20] sm:$0xff] (!%p4193_p8)   ;;  %v445_v32 = vadd.f32 (!%p4193_p8), %v5543_v2, %v406_v23 }
  0x1e   : > { %292 = vst [vmem:[#allocation2 + $0x40] sm:$0xf] %v5450_v3  ;;  %293 = vst [vmem:[#allocation2 + $0x44] sm:$0x1] %v5450_v3  ;;  %v474_v31 = vmax.f32 %v442_v22, 0.0  ;;  %v446_v33 = vadd.f32 %v5543_v2, %v407_v24  ;;  %v5569_v34 = vadd.f32 %v5543_v2, %v408_v25  ;;  %v4518_v35 = vpack.c.bf16 %v472_v26, %v472_v26  ;;  %v4675_v25 = vld [vmem:[%s5518_s30 + $0x28] sm:$0xff]  }
  0x1f   : > { %294 = vst [vmem:[#allocation2 + $0x48] sm:$0xf] %v5450_v3  ;;  %295 = vst [vmem:[#allocation2 + $0x4c] sm:$0xf] %v5450_v3  ;;  %v4519_v36 = vpack.c.bf16 %v473_v27, %v473_v27  ;;  %v475_v37 = vmax.f32 %v443_v28, 0.0  ;;  %v476_v38 = vmax.f32 %v444_v29, 0.0  ;;  %v4585_v42 = vunpack.c.l.bf16 %v5564_v30 }
  0x20   : > { %296 = vst [vmem:[#allocation2 + $0x50] sm:$0x1] %v5450_v3  ;;  %297 = vst [vmem:[#allocation2 + $0x54] sm:$0xf] %v5450_v3  ;;  %v4520_v39 = vpack.c.bf16 %v474_v31, %v474_v31  ;;  %v477_v40 = vmax.f32 %v445_v32, 0.0  ;;  %v478_v41 = vmax.f32 %v446_v33, 0.0 }
  0x21   : > { %298 = vst [vmem:[#allocation2 + $0x58] sm:$0xf] %v5450_v3  ;;  %299 = vst [vmem:[#allocation2 + $0x5c] sm:$0x1] %v5450_v3  ;;  %v604_v43 = vshrl.u32 %v4518_v35, 16  ;;  %v607_v44 = vshll.u32 %v4518_v35, 16  ;;  %v4521_v50 = vpack.c.bf16 %v475_v37, %v475_v37  ;;  %v4522_v51 = vpack.c.bf16 %v476_v38, %v476_v38 }
  0x22   : > { %300 = vst [vmem:[#allocation2 + $0x60] sm:$0xf] %v5450_v3  ;;  %301 = vst [vmem:[#allocation2 + $0x64] sm:$0xf] %v5450_v3  ;;  %v612_v45 = vshrl.u32 %v4519_v36, 16  ;;  %v615_v46 = vshll.u32 %v4519_v36, 16  ;;  %v4523_v56 = vpack.c.bf16 %v477_v40, %v477_v40  ;;  %v4524_v57 = vpack.c.bf16 %v478_v41, %v478_v41 }
  0x23   : > { %302 = vst [vmem:[#allocation2 + $0x68] sm:$0x1] %v5450_v3  ;;  %303 = vst [vmem:[#allocation2 + $0x6c] sm:$0xf] %v5450_v3  ;;  %v621_v48 = vshrl.u32 %v4520_v39, 16  ;;  %v624_v49 = vshll.u32 %v4520_v39, 16  ;;  %v409_v35 = vmul.f32 %v4585_v42, %v5538_v1  ;;  %v4586_v39 = vunpack.c.h.bf16 %v5564_v30 }
  0x24   : > { %304 = vst [vmem:[#allocation2 + $0x70] sm:$0xf] %v5450_v3  ;;  %305 = vst [vmem:[#allocation2 + $0x74] sm:$0x1] %v5450_v3  ;;  %v606_v52 = vrot.slane %v604_v43, 7  ;;  %v614_v55 = vrot.slane %v612_v45, 7  ;;  %v4589_v40 = vunpack.c.l.bf16 %v4675_v25  ;;  %v4590_v41 = vunpack.c.h.bf16 %v4675_v25 }
  0x25   : > { %306 = vst [vmem:[#allocation2 + $0x78] sm:$0xf] %v5450_v3  ;;  %307 = vst [vmem:[#allocation2 + $0x7c] sm:$0xf] %v5450_v3  ;;  %v927_v53 = vld [vmem:[#allocation2 + $0xc] sm:$0xf]  ;;  %v410_v42 = vmul.f32 %v4586_v39, %v5538_v1 }
  0x26   : > { %308 = vst [vmem:[#allocation2 + $0x80] sm:$0x1] %v5450_v3  ;;  %309 = vst [vmem:[#allocation2 + $0x84] sm:$0xf] %v5450_v3  ;;  %v933_v59 = vld [vmem:[#allocation2 + $0x14] sm:$0x1]  ;;  %v609_v0 = vor.u32 %v607_v44, %v606_v52  ;;  %v617_v4 = vor.u32 %v615_v46, %v614_v55 }
  0x27   : > { %310 = vst [vmem:[#allocation2 + $0x88] sm:$0xf] %v5450_v3  ;;  %311 = vst [vmem:[#allocation2 + $0x8c] sm:$0x1] %v5450_v3  ;;  %v623_v60 = vrot.slane %v621_v48, 7  ;;  %v629_v61 = vshrl.u32 %v4521_v50, 16 }
  0x28   : > { %312 = vst [vmem:[#allocation2 + $0x90] sm:$0xf] %v5450_v3  ;;  %313 = vst [vmem:[#allocation2 + $0x94] sm:$0xf] %v5450_v3  ;;  %v632_v62 = vshll.u32 %v4521_v50, 16  ;;  %v638_v63 = vshrl.u32 %v4522_v51, 16 }
  0x29   : > { %314 = vst [vmem:[#allocation2 + $0x98] sm:$0x1] %v5450_v3  ;;  %315 = vst [vmem:[#allocation2 + $0x9c] sm:$0xf] %v5450_v3  ;;  %v619_v5 = vrot.slane %v614_v55, 4  ;;  %v626_v7 = vor.u32 %v624_v49, %v623_v60  ;;  %v627_v8 = vrot.slane %v623_v60, 4  ;;  %v448_v49 = vadd.f32 %v5543_v2, %v409_v35 }
  0x2a   : > { %316 = vst [vmem:[#allocation2 + $0xa0] sm:$0xf] %v5450_v3  ;;  %317 = vst [vmem:[#allocation2 + $0xa4] sm:$0x1] %v5450_v3  ;;  %v936_v6 = vld [vmem:[#allocation2 + $0x18] sm:$0xf]  ;;  %v411_v55 = vmul.f32 %v4589_v40, %v5538_v1  ;;  %v412_v60 = vmul.f32 %v4590_v41, %v5538_v1 }
  0x2b   : > { %318 = vst [vmem:[#allocation2 + $0xa8] sm:$0xf] %v5450_v3  ;;  %319 = vst [vmem:[#allocation2 + $0xac] sm:$0xf] %v5450_v3  ;;  %v631_v9 = vrot.slane %v629_v61, 7  ;;  %v640_v10 = vrot.slane %v638_v63, 7 }
  0x2c   : > { %320 = vst [vmem:[#allocation2 + $0xb0] sm:$0x1] %v5450_v3  ;;  %321 = vst [vmem:[#allocation2 + $0xb4] sm:$0xf] %v5450_v3  ;;  %v940_v14 = vld [vmem:[#allocation2 + $0x20] sm:$0x1] }
  0x2d   : > { %322 = vst [vmem:[#allocation2 + $0xb8] sm:$0xf] %v5450_v3  ;;  %323 = vst [vmem:[#allocation2 + $0xbc] sm:$0x1] %v5450_v3  ;;  %v641_v15 = vshll.u32 %v4522_v51, 16  ;;  %v634_v17 = vor.u32 %v632_v62, %v631_v9  ;;  %v636_v18 = vrot.slane %v631_v9, 4  ;;  %v450_v62 = vadd.f32 %v5543_v2, %v411_v55 }
  0x2e   : > { %324 = vst [vmem:[#allocation2 + $0xc0] sm:$0xf] %v5450_v3  ;;  %325 = vst [vmem:[#allocation2 + $0xc4] sm:$0xf] %v5450_v3  ;;  %v943_v19 = vld [vmem:[#allocation2 + $0x24] sm:$0xf]  ;;  %v451_v9 = vadd.f32 %v5543_v2, %v412_v60 }
  0x2f   : > { %326 = vst [vmem:[#allocation2 + $0xc8] sm:$0x1] %v5450_v3  ;;  %327 = vst [vmem:[#allocation2 + $0xcc] sm:$0xf] %v5450_v3  ;;  %v644_v20 = vrot.slane %v640_v10, 4  ;;  %v643_v21 = vor.u32 %v641_v15, %v640_v10  ;;  %v646_v22 = vshrl.u32 %v4523_v56, 16 }
  0x30   : > { %328 = vst [vmem:[#allocation2 + $0xd0] sm:$0xf] %v5450_v3  ;;  %329 = vst [vmem:[#allocation2 + $0xd4] sm:$0x1] %v5450_v3  ;;  %v610_v3 = vrot.slane %v606_v52, 4  ;;  %v649_v23 = vshll.u32 %v4523_v56, 16 }
  0x31   : > { %vm5574_vm5 = vmand %vm924_vm0, %vm925_vm1  ;;  %v655_v24 = vshrl.u32 %v4524_v57, 16  ;;  %v658_v28 = vshll.u32 %v4524_v57, 16  ;;  %v479_v29 = vmax.f32 %v5569_v34, 0.0  ;;  %v648_v32 = vrot.slane %v646_v22, 7  ;;  %v947_v36 = vld [vmem:[#allocation2 + $0x2c] sm:$0x1] }
  0x32   : > { %vm5580_vm6 = vmor %vm600_vm2, %vm601_vm3  ;;  %v928_v11 = vsel %vm5574_vm5, %v609_v0, %v927_v53  ;;  %v937_v16 = vsel %vm5574_vm5, %v626_v7, %v936_v6  ;;  %v944_v31 = vsel %vm5574_vm5, %v643_v21, %v943_v19  ;;  %v950_v37 = vld [vmem:[#allocation2 + $0x30] sm:$0xf]  ;;  %v5612_v51 = vld [vmem:[%s5518_s30 + $0x38] sm:$0xff]   ;;  %v480_v57 = vmax.f32 %v448_v49, 0.0 }
  0x33   : > { %vm5586_vm7 = vmand %vm931_vm4, %vm600_vm2  ;;  %v618_v12 = vsel %vm5580_vm6, %v610_v3, %v617_v4  ;;  %929 = vst [vmem:[#allocation2 + $0xc] sm:$0xf] %v928_v11  ;;  %v635_v26 = vsel %vm5580_vm6, %v627_v8, %v634_v17  ;;  %v657_v33 = vrot.slane %v655_v24, 7  ;;  %v4525_v38 = vpack.c.bf16 %v479_v29, %v479_v29  ;;  %v4676_v50 = vld [vmem:[%s5518_s30 + $0x30] sm:$0xff]   ;;  %v954_v61 = vld [vmem:[#allocation2 + $0x38] sm:$0x1] }
  0x34   : > { %v934_v13 = vsel %vm5586_vm7, %v619_v5, %v933_v59  ;;  %930 = vst [vmem:[#allocation2 + $0x10] sm:$0xf] %v618_v12  ;;  %938 = vst [vmem:[#allocation2 + $0x18] sm:$0xf] %v937_v16  ;;  %v941_v27 = vsel %vm5586_vm7, %v636_v18, %v940_v14  ;;  %v651_v34 = vor.u32 %v649_v23, %v648_v32  ;;  %v653_v43 = vrot.slane %v648_v32, 4 }
  0x35   : > { %935 = vst [vmem:[#allocation2 + $0x14] sm:$0x1] %v934_v13  ;;  %939 = vst [vmem:[#allocation2 + $0x1c] sm:$0xf] %v635_v26  ;;  %v660_v44 = vor.u32 %v658_v28, %v657_v33  ;;  %v661_v45 = vrot.slane %v657_v33, 4  ;;  %v663_v46 = vshrl.u32 %v4525_v38, 16  ;;  %v449_v59 = vadd.f32 %v5543_v2, %v410_v42 }
  0x36   : > { %942 = vst [vmem:[#allocation2 + $0x20] sm:$0x1] %v941_v27  ;;  %945 = vst [vmem:[#allocation2 + $0x24] sm:$0xf] %v944_v31  ;;  %v666_v48 = vshll.u32 %v4525_v38, 16  ;;  %v652_v52 = vsel %vm5580_vm6, %v644_v20, %v651_v34  ;;  %v948_v30 = vsel %vm5586_vm7, %v653_v43, %v947_v36  ;;  %v4593_v63 = vunpack.c.l.bf16 %v4676_v50 }
  0x37   : > { %v951_v53 = vsel %vm5574_vm5, %v660_v44, %v950_v37  ;;  %946 = vst [vmem:[#allocation2 + $0x28] sm:$0xf] %v652_v52  ;;  %949 = vst [vmem:[#allocation2 + $0x2c] sm:$0x1] %v948_v30  ;;  %v665_v56 = vrot.slane %v663_v46, 7  ;;  %v4594_v0 = vunpack.c.h.bf16 %v4676_v50  ;;  %v4597_v3 = vunpack.c.l.bf16 %v5612_v51  ;;  %v4678_v30 = vld [vmem:[%s5518_s30 + $0x40] sm:$0xff]  }
  0x38   : > { %952 = vst [vmem:[#allocation2 + $0x30] sm:$0xf] %v951_v53  ;;  %v4526_v6 = vpack.c.bf16 %v480_v57, %v480_v57  ;;  %v481_v7 = vmax.f32 %v449_v59, 0.0  ;;  %v482_v8 = vmax.f32 %v450_v62, 0.0  ;;  %v413_v10 = vmul.f32 %v4593_v63, %v5538_v1  ;;  %v957_v24 = vld [vmem:[#allocation2 + $0x3c] sm:$0xf] }
  0x39   : > { %v668_v4 = vor.u32 %v666_v48, %v665_v56  ;;  %v670_v5 = vrot.slane %v665_v56, 4  ;;  %v414_v11 = vmul.f32 %v4594_v0, %v5538_v1  ;;  %v483_v18 = vmax.f32 %v451_v9, 0.0  ;;  %v961_v40 = vld [vmem:[#allocation2 + $0x44] sm:$0x1]  ;;  %v964_v41 = vld [vmem:[#allocation2 + $0x48] sm:$0xf] }
  0x3a   : > { %v672_v14 = vshrl.u32 %v4526_v6, 16  ;;  %v675_v15 = vshll.u32 %v4526_v6, 16  ;;  %v4527_v16 = vpack.c.bf16 %v481_v7, %v481_v7  ;;  %v4528_v17 = vpack.c.bf16 %v482_v8, %v482_v8  ;;  %v968_v57 = vld [vmem:[#allocation2 + $0x50] sm:$0x1]  ;;  %v971_v0 = vld [vmem:[#allocation2 + $0x54] sm:$0xf] }
  0x3b   : > { %v669_v12 = vsel %vm5580_vm6, %v661_v45, %v668_v4  ;;  %v955_v13 = vsel %vm5586_vm7, %v670_v5, %v954_v61  ;;  %v452_v19 = vadd.f32 %v5543_v2, %v413_v10  ;;  %v453_v21 = vadd.f32 %v5543_v2, %v414_v11  ;;  %v4679_v7 = vld [vmem:[%s5518_s30 + $0x48] sm:$0xff]  }
  0x3c   : > { %953 = vst [vmem:[#allocation2 + $0x34] sm:$0xf] %v669_v12  ;;  %956 = vst [vmem:[#allocation2 + $0x38] sm:$0x1] %v955_v13  ;;  %v674_v20 = vrot.slane %v672_v14, 7  ;;  %v415_v22 = vmul.f32 %v4597_v3, %v5538_v1  ;;  %v4598_v23 = vunpack.c.h.bf16 %v5612_v51  ;;  %v680_v25 = vshrl.u32 %v4527_v16, 16 }
  0x3d   : > { %v683_v26 = vshll.u32 %v4527_v16, 16  ;;  %v689_v27 = vshrl.u32 %v4528_v17, 16  ;;  %v692_v28 = vshll.u32 %v4528_v17, 16  ;;  %v4529_v32 = vpack.c.bf16 %v483_v18, %v483_v18  ;;  %v975_v17 = vld [vmem:[#allocation2 + $0x5c] sm:$0x1] }
  0x3e   : > { %v677_v29 = vor.u32 %v675_v15, %v674_v20  ;;  %v678_v31 = vrot.slane %v674_v20, 4  ;;  %v484_v33 = vmax.f32 %v452_v19, 0.0  ;;  %v682_v35 = vrot.slane %v680_v25, 7  ;;  %v978_v25 = vld [vmem:[#allocation2 + $0x60] sm:$0xf] }
  0x3f   : > { %v691_v36 = vrot.slane %v689_v27, 7  ;;  %v485_v37 = vmax.f32 %v453_v21, 0.0  ;;  %v454_v38 = vadd.f32 %v5543_v2, %v415_v22  ;;  %v697_v34 = vshrl.u32 %v4529_v32, 16 }
  0x40   : > { %v958_v39 = vsel %vm5574_vm5, %v677_v29, %v957_v24  ;;  %v700_v43 = vshll.u32 %v4529_v32, 16  ;;  %v4530_v44 = vpack.c.bf16 %v484_v33, %v484_v33  ;;  %v685_v45 = vor.u32 %v683_v26, %v682_v35 }
  0x41   : > { %959 = vst [vmem:[#allocation2 + $0x3c] sm:$0xf] %v958_v39  ;;  %v687_v46 = vrot.slane %v682_v35, 4  ;;  %v694_v48 = vor.u32 %v692_v28, %v691_v36  ;;  %v695_v49 = vrot.slane %v691_v36, 4  ;;  %v699_v42 = vrot.slane %v697_v34, 7  ;;  %v4680_v36 = vld [vmem:[%s5518_s30 + $0x50] sm:$0xff]  }
  0x42   : > { %v706_v50 = vshrl.u32 %v4530_v44, 16  ;;  %v709_v51 = vshll.u32 %v4530_v44, 16  ;;  %v4531_v52 = vpack.c.bf16 %v485_v37, %v485_v37  ;;  %v686_v53 = vsel %vm5580_vm6, %v678_v31, %v685_v45 }
  0x43   : > { %v962_v55 = vsel %vm5586_vm7, %v687_v46, %v961_v40  ;;  %v965_v56 = vsel %vm5574_vm5, %v694_v48, %v964_v41  ;;  %v486_v59 = vmax.f32 %v454_v38, 0.0  ;;  %960 = vst [vmem:[#allocation2 + $0x40] sm:$0xf] %v686_v53  ;;  %v702_v60 = vor.u32 %v700_v43, %v699_v42  ;;  %v5667_v41 = vld [vmem:[%s5518_s30 + $0x58] sm:$0xff]   ;;  %v982_v53 = vld [vmem:[#allocation2 + $0x68] sm:$0x1] }
  0x44   : > { %963 = vst [vmem:[#allocation2 + $0x44] sm:$0x1] %v962_v55  ;;  %966 = vst [vmem:[#allocation2 + $0x48] sm:$0xf] %v965_v56  ;;  %v704_v61 = vrot.slane %v699_v42, 4  ;;  %v708_v62 = vrot.slane %v706_v50, 7  ;;  %v416_v5 = vmul.f32 %v4598_v23, %v5538_v1  ;;  %v4601_v6 = vunpack.c.l.bf16 %v4678_v30 }
  0x45   : > { %v714_v63 = vshrl.u32 %v4531_v52, 16  ;;  %v717_v3 = vshll.u32 %v4531_v52, 16  ;;  %v4532_v4 = vpack.c.bf16 %v486_v59, %v486_v59  ;;  %v703_v8 = vsel %vm5580_vm6, %v695_v49, %v702_v60 }
  0x46   : > { %v969_v9 = vsel %vm5586_vm7, %v704_v61, %v968_v57  ;;  %v711_v10 = vor.u32 %v709_v51, %v708_v62  ;;  %v712_v11 = vrot.slane %v708_v62, 4  ;;  %967 = vst [vmem:[#allocation2 + $0x4c] sm:$0xf] %v703_v8  ;;  %v455_v15 = vadd.f32 %v5543_v2, %v416_v5  ;;  %v985_v8 = vld [vmem:[#allocation2 + $0x6c] sm:$0xf] }
  0x47   : > { %970 = vst [vmem:[#allocation2 + $0x50] sm:$0x1] %v969_v9  ;;  %v716_v12 = vrot.slane %v714_v63, 7  ;;  %v723_v13 = vshrl.u32 %v4532_v4, 16  ;;  %v726_v14 = vshll.u32 %v4532_v4, 16  ;;  %v417_v18 = vmul.f32 %v4601_v6, %v5538_v1 }
  0x48   : > { %v972_v16 = vsel %vm5574_vm5, %v711_v10, %v971_v0  ;;  %v4602_v19 = vunpack.c.h.bf16 %v4678_v30  ;;  %v4605_v20 = vunpack.c.l.bf16 %v4679_v7  ;;  %v487_v24 = vmax.f32 %v455_v15, 0.0  ;;  %v989_v15 = vld [vmem:[#allocation2 + $0x74] sm:$0x1] }
  0x49   : > { %973 = vst [vmem:[#allocation2 + $0x54] sm:$0xf] %v972_v16  ;;  %v719_v21 = vor.u32 %v717_v3, %v716_v12  ;;  %v721_v22 = vrot.slane %v716_v12, 4  ;;  %v725_v23 = vrot.slane %v723_v13, 7  ;;  %v456_v26 = vadd.f32 %v5543_v2, %v417_v18  ;;  %v992_v16 = vld [vmem:[#allocation2 + $0x78] sm:$0xf] }
  0x4a   : > { %v418_v27 = vmul.f32 %v4602_v19, %v5538_v1  ;;  %v419_v28 = vmul.f32 %v4605_v20, %v5538_v1  ;;  %v4606_v29 = vunpack.c.h.bf16 %v4679_v7  ;;  %v4533_v35 = vpack.c.bf16 %v487_v24, %v487_v24 }
  0x4b   : > { %v720_v31 = vsel %vm5580_vm6, %v712_v11, %v719_v21  ;;  %v976_v32 = vsel %vm5586_vm7, %v721_v22, %v975_v17  ;;  %v728_v33 = vor.u32 %v726_v14, %v725_v23  ;;  %v729_v37 = vrot.slane %v725_v23, 4 }
  0x4c   : > { %974 = vst [vmem:[#allocation2 + $0x58] sm:$0xf] %v720_v31  ;;  %977 = vst [vmem:[#allocation2 + $0x5c] sm:$0x1] %v976_v32  ;;  %v488_v38 = vmax.f32 %v456_v26, 0.0  ;;  %v457_v39 = vadd.f32 %v5543_v2, %v418_v27  ;;  %v458_v40 = vadd.f32 %v5543_v2, %v419_v28  ;;  %v731_v43 = vshrl.u32 %v4533_v35, 16 }
  0x4d   : > { %v979_v34 = vsel %vm5574_vm5, %v728_v33, %v978_v25  ;;  %v734_v44 = vshll.u32 %v4533_v35, 16  ;;  %v420_v45 = vmul.f32 %v4606_v29, %v5538_v1  ;;  %v4609_v42 = vunpack.c.l.bf16 %v4680_v36  ;;  %v4682_v29 = vld [vmem:[%s5518_s30 + $0x60] sm:$0xff]  }
  0x4e   : > { %980 = vst [vmem:[#allocation2 + $0x60] sm:$0xf] %v979_v34  ;;  %v4534_v46 = vpack.c.bf16 %v488_v38, %v488_v38  ;;  %v489_v48 = vmax.f32 %v457_v39, 0.0  ;;  %v490_v49 = vmax.f32 %v458_v40, 0.0  ;;  %v733_v50 = vrot.slane %v731_v43, 7 }
  0x4f   : > { %v459_v51 = vadd.f32 %v5543_v2, %v420_v45  ;;  %v4610_v52 = vunpack.c.h.bf16 %v4680_v36  ;;  %v4613_v30 = vunpack.c.l.bf16 %v5667_v41  ;;  %v421_v63 = vmul.f32 %v4609_v42, %v5538_v1  ;;  %v996_v35 = vld [vmem:[#allocation2 + $0x80] sm:$0x1] }
  0x50   : > { %v740_v55 = vshrl.u32 %v4534_v46, 16  ;;  %v743_v56 = vshll.u32 %v4534_v46, 16  ;;  %v4535_v57 = vpack.c.bf16 %v489_v48, %v489_v48  ;;  %v4536_v59 = vpack.c.bf16 %v490_v49, %v490_v49  ;;  %v4683_v46 = vld [vmem:[%s5518_s30 + $0x68] sm:$0xff]  }
  0x51   : > { %v736_v60 = vor.u32 %v734_v44, %v733_v50  ;;  %v738_v61 = vrot.slane %v733_v50, 4  ;;  %v491_v62 = vmax.f32 %v459_v51, 0.0  ;;  %v460_v19 = vadd.f32 %v5543_v2, %v421_v63 }
  0x52   : > { %v742_v0 = vrot.slane %v740_v55, 7  ;;  %v748_v3 = vshrl.u32 %v4535_v57, 16  ;;  %v751_v4 = vshll.u32 %v4535_v57, 16  ;;  %v757_v5 = vshrl.u32 %v4536_v59, 16 }
  0x53   : > { %v737_v6 = vsel %vm5580_vm6, %v729_v37, %v736_v60  ;;  %v983_v7 = vsel %vm5586_vm7, %v738_v61, %v982_v53  ;;  %v760_v9 = vshll.u32 %v4536_v59, 16  ;;  %v4537_v10 = vpack.c.bf16 %v491_v62, %v491_v62  ;;  %v999_v59 = vld [vmem:[#allocation2 + $0x84] sm:$0xf] }
  0x54   : > { %981 = vst [vmem:[#allocation2 + $0x64] sm:$0xf] %v737_v6  ;;  %984 = vst [vmem:[#allocation2 + $0x68] sm:$0x1] %v983_v7  ;;  %v745_v11 = vor.u32 %v743_v56, %v742_v0  ;;  %v746_v12 = vrot.slane %v742_v0, 4  ;;  %v750_v13 = vrot.slane %v748_v3, 7  ;;  %v422_v20 = vmul.f32 %v4610_v52, %v5538_v1 }
  0x55   : > { %v759_v14 = vrot.slane %v757_v5, 7  ;;  %v765_v17 = vshrl.u32 %v4537_v10, 16  ;;  %v768_v18 = vshll.u32 %v4537_v10, 16  ;;  %v492_v27 = vmax.f32 %v460_v19, 0.0  ;;  %v1006_v19 = vld [vmem:[#allocation2 + $0x90] sm:$0xf] }
  0x56   : > { %v986_v21 = vsel %vm5574_vm5, %v745_v11, %v985_v8  ;;  %v753_v22 = vor.u32 %v751_v4, %v750_v13  ;;  %v755_v23 = vrot.slane %v750_v13, 4  ;;  %v461_v28 = vadd.f32 %v5543_v2, %v422_v20  ;;  %v1003_v11 = vld [vmem:[#allocation2 + $0x8c] sm:$0x1] }
  0x57   : > { %v762_v24 = vor.u32 %v760_v9, %v759_v14  ;;  %987 = vst [vmem:[#allocation2 + $0x6c] sm:$0xf] %v986_v21  ;;  %v763_v25 = vrot.slane %v759_v14, 4  ;;  %v767_v26 = vrot.slane %v765_v17, 7  ;;  %v423_v36 = vmul.f32 %v4613_v30, %v5538_v1 }
  0x58   : > { %v754_v31 = vsel %vm5580_vm6, %v746_v12, %v753_v22  ;;  %v990_v32 = vsel %vm5586_vm7, %v755_v23, %v989_v15  ;;  %v4538_v39 = vpack.c.bf16 %v492_v27, %v492_v27  ;;  %v493_v40 = vmax.f32 %v461_v28, 0.0  ;;  %v4684_v28 = vld [vmem:[%s5518_s30 + $0x70] sm:$0xff]  }
  0x59   : > { %v993_v33 = vsel %vm5574_vm5, %v762_v24, %v992_v16  ;;  %988 = vst [vmem:[#allocation2 + $0x70] sm:$0xf] %v754_v31  ;;  %991 = vst [vmem:[#allocation2 + $0x74] sm:$0x1] %v990_v32  ;;  %v770_v37 = vor.u32 %v768_v18, %v767_v26  ;;  %v772_v38 = vrot.slane %v767_v26, 4  ;;  %v462_v34 = vadd.f32 %v5543_v2, %v423_v36 }
  0x5a   : > { %994 = vst [vmem:[#allocation2 + $0x78] sm:$0xf] %v993_v33  ;;  %v4614_v43 = vunpack.c.h.bf16 %v5667_v41  ;;  %v4617_v44 = vunpack.c.l.bf16 %v4682_v29  ;;  %v4618_v45 = vunpack.c.h.bf16 %v4682_v29  ;;  %v774_v42 = vshrl.u32 %v4538_v39, 16 }
  0x5b   : > { %v771_v48 = vsel %vm5580_vm6, %v763_v25, %v770_v37  ;;  %v997_v49 = vsel %vm5586_vm7, %v772_v38, %v996_v35  ;;  %v777_v50 = vshll.u32 %v4538_v39, 16  ;;  %v4539_v51 = vpack.c.bf16 %v493_v40, %v493_v40  ;;  %v4685_v35 = vld [vmem:[%s5518_s30 + $0x78] sm:$0xff]  }
  0x5c   : > { %995 = vst [vmem:[#allocation2 + $0x7c] sm:$0xf] %v771_v48  ;;  %998 = vst [vmem:[#allocation2 + $0x80] sm:$0x1] %v997_v49  ;;  %v494_v52 = vmax.f32 %v462_v34, 0.0  ;;  %v424_v30 = vmul.f32 %v4614_v43, %v5538_v1  ;;  %v425_v53 = vmul.f32 %v4617_v44, %v5538_v1  ;;  %v776_v41 = vrot.slane %v774_v42, 7 }
  0x5d   : > { %v426_v55 = vmul.f32 %v4618_v45, %v5538_v1  ;;  %v4621_v56 = vunpack.c.l.bf16 %v4683_v46  ;;  %v4622_v57 = vunpack.c.h.bf16 %v4683_v46  ;;  %v782_v60 = vshrl.u32 %v4539_v51, 16  ;;  %v1010_v45 = vld [vmem:[#allocation2 + $0x98] sm:$0x1]  ;;  %v1013_v46 = vld [vmem:[#allocation2 + $0x9c] sm:$0xf] }
  0x5e   : > { %v785_v61 = vshll.u32 %v4539_v51, 16  ;;  %v4540_v62 = vpack.c.bf16 %v494_v52, %v494_v52  ;;  %v463_v63 = vadd.f32 %v5543_v2, %v424_v30  ;;  %v779_v0 = vor.u32 %v777_v50, %v776_v41 }
  0x5f   : > { %v780_v3 = vrot.slane %v776_v41, 4  ;;  %v464_v4 = vadd.f32 %v5543_v2, %v425_v53  ;;  %v465_v5 = vadd.f32 %v5543_v2, %v426_v55  ;;  %v784_v6 = vrot.slane %v782_v60, 7  ;;  %v1017_v41 = vld [vmem:[#allocation2 + $0xa4] sm:$0x1] }
  0x60   : > { %v791_v7 = vshrl.u32 %v4540_v62, 16  ;;  %v794_v8 = vshll.u32 %v4540_v62, 16  ;;  %v495_v9 = vmax.f32 %v463_v63, 0.0  ;;  %v1000_v10 = vsel %vm5574_vm5, %v779_v0, %v999_v59 }
  0x61   : > { %v496_v12 = vmax.f32 %v464_v4, 0.0  ;;  %v497_v13 = vmax.f32 %v465_v5, 0.0  ;;  %v427_v14 = vmul.f32 %v4621_v56, %v5538_v1  ;;  %1001 = vst [vmem:[#allocation2 + $0x84] sm:$0xf] %v1000_v10  ;;  %v787_v15 = vor.u32 %v785_v61, %v784_v6 }
  0x62   : > { %v789_v16 = vrot.slane %v784_v6, 4  ;;  %v793_v17 = vrot.slane %v791_v7, 7  ;;  %v4541_v18 = vpack.c.bf16 %v495_v9, %v495_v9  ;;  %v428_v23 = vmul.f32 %v4622_v57, %v5538_v1  ;;  %v1020_v6 = vld [vmem:[#allocation2 + $0xa8] sm:$0xf] }
  0x63   : > { %v4542_v20 = vpack.c.bf16 %v496_v12, %v496_v12  ;;  %v4543_v21 = vpack.c.bf16 %v497_v13, %v497_v13  ;;  %v466_v22 = vadd.f32 %v5543_v2, %v427_v14  ;;  %v788_v24 = vsel %vm5580_vm6, %v780_v3, %v787_v15 }
  0x64   : > { %v1004_v25 = vsel %vm5586_vm7, %v789_v16, %v1003_v11  ;;  %v796_v26 = vor.u32 %v794_v8, %v793_v17  ;;  %v797_v27 = vrot.slane %v793_v17, 4  ;;  %1002 = vst [vmem:[#allocation2 + $0x88] sm:$0xf] %v788_v24  ;;  %v799_v29 = vshrl.u32 %v4541_v18, 16  ;;  %v1024_v24 = vld [vmem:[#allocation2 + $0xb0] sm:$0x1] }
  0x65   : > { %1005 = vst [vmem:[#allocation2 + $0x8c] sm:$0x1] %v1004_v25  ;;  %v802_v31 = vshll.u32 %v4541_v18, 16  ;;  %v808_v32 = vshrl.u32 %v4542_v20, 16  ;;  %v811_v33 = vshll.u32 %v4542_v20, 16  ;;  %v816_v37 = vshrl.u32 %v4543_v21, 16 }
  0x66   : > { %v1007_v36 = vsel %vm5574_vm5, %v796_v26, %v1006_v19  ;;  %v819_v38 = vshll.u32 %v4543_v21, 16  ;;  %v498_v39 = vmax.f32 %v466_v22, 0.0  ;;  %v801_v40 = vrot.slane %v799_v29, 7 }
  0x67   : > { %1008 = vst [vmem:[#allocation2 + $0x90] sm:$0xf] %v1007_v36  ;;  %v810_v34 = vrot.slane %v808_v32, 7  ;;  %v467_v43 = vadd.f32 %v5543_v2, %v428_v23  ;;  %v4625_v44 = vunpack.c.l.bf16 %v4684_v28  ;;  %v818_v48 = vrot.slane %v816_v37, 7 }
  0x68   : > { %v4544_v49 = vpack.c.bf16 %v498_v39, %v498_v39  ;;  %v4626_v42 = vunpack.c.h.bf16 %v4684_v28  ;;  %v4629_v50 = vunpack.c.l.bf16 %v4685_v35  ;;  %v804_v51 = vor.u32 %v802_v31, %v801_v40 }
  0x69   : > { %v806_v52 = vrot.slane %v801_v40, 4  ;;  %v813_v30 = vor.u32 %v811_v33, %v810_v34  ;;  %v814_v53 = vrot.slane %v810_v34, 4  ;;  %v821_v55 = vor.u32 %v819_v38, %v818_v48 }
  0x6a   : > { %v823_v56 = vrot.slane %v818_v48, 4  ;;  %v825_v57 = vshrl.u32 %v4544_v49, 16  ;;  %v828_v59 = vshll.u32 %v4544_v49, 16  ;;  %v805_v60 = vsel %vm5580_vm6, %v797_v27, %v804_v51  ;;  %v1031_v48 = vld [vmem:[#allocation2 + $0xbc] sm:$0x1] }
  0x6b   : > { %v1011_v61 = vsel %vm5586_vm7, %v806_v52, %v1010_v45  ;;  %v1014_v62 = vsel %vm5574_vm5, %v813_v30, %v1013_v46  ;;  %v499_v63 = vmax.f32 %v467_v43, 0.0  ;;  %1009 = vst [vmem:[#allocation2 + $0x94] sm:$0xf] %v805_v60  ;;  %v822_v0 = vsel %vm5580_vm6, %v814_v53, %v821_v55  ;;  %v1027_v43 = vld [vmem:[#allocation2 + $0xb4] sm:$0xf] }
  0x6c   : > { %1012 = vst [vmem:[#allocation2 + $0x98] sm:$0x1] %v1011_v61  ;;  %1015 = vst [vmem:[#allocation2 + $0x9c] sm:$0xf] %v1014_v62  ;;  %v1018_v3 = vsel %vm5586_vm7, %v823_v56, %v1017_v41  ;;  %v827_v4 = vrot.slane %v825_v57, 7  ;;  %v429_v5 = vmul.f32 %v4625_v44, %v5538_v1  ;;  %v430_v8 = vmul.f32 %v4626_v42, %v5538_v1 }
  0x6d   : > { %1016 = vst [vmem:[#allocation2 + $0xa0] sm:$0xf] %v822_v0  ;;  %1019 = vst [vmem:[#allocation2 + $0xa4] sm:$0x1] %v1018_v3  ;;  %v4545_v7 = vpack.c.bf16 %v499_v63, %v499_v63  ;;  %v431_v9 = vmul.f32 %v4629_v50, %v5538_v1  ;;  %v4630_v10 = vunpack.c.h.bf16 %v4685_v35  ;;  %v1034_v52 = vld [vmem:[#allocation2 + $0xc0] sm:$0xf] }
  0x6e   : > { %v830_v11 = vor.u32 %v828_v59, %v827_v4  ;;  %v468_v12 = vadd.f32 %v5543_v2, %v429_v5  ;;  %v469_v15 = vadd.f32 %v5543_v2, %v430_v8  ;;  %v831_v20 = vrot.slane %v827_v4, 4  ;;  %v1038_v60 = vld [vmem:[#allocation2 + $0xc8] sm:$0x1] }
  0x6f   : > { %v833_v13 = vshrl.u32 %v4545_v7, 16  ;;  %v836_v14 = vshll.u32 %v4545_v7, 16  ;;  %v470_v16 = vadd.f32 %v5543_v2, %v431_v9  ;;  %v432_v19 = vmul.f32 %v4630_v10, %v5538_v1 }
  0x70   : > { %v1021_v17 = vsel %vm5574_vm5, %v830_v11, %v1020_v6  ;;  %v500_v18 = vmax.f32 %v468_v12, 0.0  ;;  %v501_v22 = vmax.f32 %v469_v15, 0.0 }
  0x71   : > { %1022 = vst [vmem:[#allocation2 + $0xa8] sm:$0xf] %v1021_v17  ;;  %v835_v21 = vrot.slane %v833_v13, 7  ;;  %v502_v23 = vmax.f32 %v470_v16, 0.0  ;;  %v471_v26 = vadd.f32 %v5543_v2, %v432_v19 }
  0x72   : > { %v4546_v25 = vpack.c.bf16 %v500_v18, %v500_v18  ;;  %v4547_v29 = vpack.c.bf16 %v501_v22, %v501_v22 }
  0x73   : > { %v838_v27 = vor.u32 %v836_v14, %v835_v21  ;;  %v840_v28 = vrot.slane %v835_v21, 4  ;;  %v4548_v31 = vpack.c.bf16 %v502_v23, %v502_v23  ;;  %v503_v35 = vmax.f32 %v471_v26, 0.0 }
  0x74   : > { %v842_v32 = vshrl.u32 %v4546_v25, 16  ;;  %v845_v33 = vshll.u32 %v4546_v25, 16  ;;  %v850_v37 = vshrl.u32 %v4547_v29, 16  ;;  %v853_v38 = vshll.u32 %v4547_v29, 16 }
  0x75   : > { %v839_v36 = vsel %vm5580_vm6, %v831_v20, %v838_v27  ;;  %v1025_v1 = vsel %vm5586_vm7, %v840_v28, %v1024_v24  ;;  %v859_v40 = vshrl.u32 %v4548_v31, 16  ;;  %v862_v2 = vshll.u32 %v4548_v31, 16 }
  0x76   : > { %1023 = vst [vmem:[#allocation2 + $0xac] sm:$0xf] %v839_v36  ;;  %1026 = vst [vmem:[#allocation2 + $0xb0] sm:$0x1] %v1025_v1  ;;  %v844_v39 = vrot.slane %v842_v32, 7  ;;  %v4549_v34 = vpack.c.bf16 %v503_v35, %v503_v35  ;;  %v852_v44 = vrot.slane %v850_v37, 7 }
  0x77   : > { %v861_v49 = vrot.slane %v859_v40, 7 }
  0x78   : > { %v847_v45 = vor.u32 %v845_v33, %v844_v39  ;;  %v848_v46 = vrot.slane %v844_v39, 4  ;;  %v867_v42 = vshrl.u32 %v4549_v34, 16  ;;  %v855_v50 = vor.u32 %v853_v38, %v852_v44 }
  0x79   : > { %v857_v51 = vrot.slane %v852_v44, 4  ;;  %v870_v30 = vshll.u32 %v4549_v34, 16  ;;  %v864_v41 = vor.u32 %v862_v2, %v861_v49  ;;  %v865_v55 = vrot.slane %v861_v49, 4 }
  0x7a   : > { %v1028_v53 = vsel %vm5574_vm5, %v847_v45, %v1027_v43  ;;  %v869_v56 = vrot.slane %v867_v42, 7  ;;  %v856_v57 = vsel %vm5580_vm6, %v848_v46, %v855_v50 }
  0x7b   : > { %1029 = vst [vmem:[#allocation2 + $0xb4] sm:$0xf] %v1028_v53  ;;  %v1032_v59 = vsel %vm5586_vm7, %v857_v51, %v1031_v48  ;;  %1030 = vst [vmem:[#allocation2 + $0xb8] sm:$0xf] %v856_v57  ;;  %v1035_v61 = vsel %vm5574_vm5, %v864_v41, %v1034_v52 }
  0x7c   : > { %1033 = vst [vmem:[#allocation2 + $0xbc] sm:$0x1] %v1032_v59  ;;  %v872_v62 = vor.u32 %v870_v30, %v869_v56  ;;  %v874_v63 = vrot.slane %v869_v56, 4  ;;  %1036 = vst [vmem:[#allocation2 + $0xc0] sm:$0xf] %v1035_v61 }
  0x7e   : > { %v873_v0 = vsel %vm5580_vm6, %v865_v55, %v872_v62  ;;  %v1039_v3 = vsel %vm5586_vm7, %v874_v63, %v1038_v60 }
  0x7f   : > { %1037 = vst [vmem:[#allocation2 + $0xc4] sm:$0xf] %v873_v0  ;;  %1040 = vst [vmem:[#allocation2 + $0xc8] sm:$0x1] %v1039_v3 }
  0x80 PF: > { %v5310_v4 = vld [vmem:[%s6811_s3 + $0x40] sm:$0xff]   ;;  %v5312_v54 = vld [vmem:[%s6811_s3 + $0x48] sm:$0xff]   ;;  %v5314_v5 = vld [vmem:[%s6811_s3 + $0x50] sm:$0xff]   ;;  %s4550_s19 = smul.u32 96, %s5432_s18  ;;  %vm1085_vm8 = vsmask.f32 3328 }
  0x81   : > { %v5311_v47 = vld [vmem:[%s6811_s3 + $0x100] sm:$0xff]   ;;  %4837 = vmatprep.subr.bf16.mxu1 %v5310_v4  ;;  %v5313_v58 = vld [vmem:[%s6811_s3 + $0x108] sm:$0xff]   ;;  %v5315_v6 = vld [vmem:[%s6811_s3 + $0x110] sm:$0xff]   ;;  %vm1086_vm9 = vsmask.f32 7440  ;;  %vm1690_vm11 = vcmask 1042432  }
  0x82   : > { %4965 = vmatprep.subr.bf16.mxu0 %v5311_v47  ;;  %4838 = vmatpush3.bf16.msra.mxu1 %v5310_v4  ;;  %v5316_v7 = vld [vmem:[%s6811_s3 + $0x58] sm:$0xff]   ;;  %v5318_v9 = vld [vmem:[%s6811_s3 + $0x60] sm:$0xff]   ;;  %v5320_v11 = vld [vmem:[%s6811_s3 + $0x68] sm:$0xff]   ;;  %s5792_s18 = scalar_lea.vmem [#allocation2], %s4550_s19  ;;  %vm1691_vm12 = vcmask 1046532   ;;  %vm4030_vm14 = vcmask 1040384  }
  0x83   : > { %4966 = vmatpush3.bf16.msra.mxu0 %v5311_v47  ;;  %4839 = vmatprep.subr.bf16.mxu1 %v5312_v54  ;;  %v5317_v8 = vld [vmem:[%s6811_s3 + $0x118] sm:$0xff]   ;;  %v5319_v10 = vld [vmem:[%s6811_s3 + $0x120] sm:$0xff]   ;;  %v5321_v12 = vld [vmem:[%s6811_s3 + $0x128] sm:$0xff]  }
  0x84   : > { %4967 = vmatprep.subr.bf16.mxu0 %v5313_v58  ;;  %v5322_v26 = vld [vmem:[%s6811_s3 + $0x70] sm:$0xff]   ;;  %v5324_v37 = vld [vmem:[%s6811_s3 + $0x78] sm:$0xff]   ;;  %vm5831_vm10 = vmor %vm1085_vm8, %vm1086_vm9 }
  0x85   : > { %v5323_v31 = vld [vmem:[%s6811_s3 + $0x130] sm:$0xff]   ;;  %v5325_v52 = vld [vmem:[%s6811_s3 + $0x138] sm:$0xff]   ;;  %vm6128_vm13 = vmor %vm1690_vm11, %vm1691_vm12 }
  0x86   : > { %4840 = vmatpush3.bf16.msra.mxu1 %v5312_v54  ;;  %v5795_v13 = vld [vmem:[%s5792_s18] sm:$0xf]  ;;  %v5798_v14 = vld [vmem:[%s5792_s18 + $0x4] sm:$0xf]  ;;  %v5801_v15 = vld [vmem:[%s5792_s18 + $0x8] sm:$0x1] }
  0x87   : > { %4968 = vmatpush3.bf16.msra.mxu0 %v5313_v58  ;;  %4841 = vmatprep.subr.bf16.mxu1 %v5314_v5  ;;  %v1089_v16 = vshrl.u32 %v5795_v13, 16  ;;  %v1092_v17 = vshll.u32 %v5795_v13, 16  ;;  %v1098_v18 = vshll.u32 %v5798_v14, 16  ;;  %v1102_v19 = vshrl.u32 %v5798_v14, 16  ;;  %v4321_v21 = vld [vmem:[%s5792_s18 + $0xc] sm:$0xf] }
  0x88   : > { %4969 = vmatprep.subr.bf16.mxu0 %v5315_v6  ;;  %v1108_v20 = vshll.u32 %v5801_v15, 16  ;;  %v5810_v24 = vld [vmem:[%s5792_s18 + $0x10] sm:$0xf]  ;;  %v5813_v25 = vld [vmem:[%s5792_s18 + $0x14] sm:$0x1]  ;;  %v2228_v29 = vshrl.u32 %v4321_v21, 16 }
  0x89   : > { %v1091_v22 = vrot.slane %v1089_v16, 4  ;;  %v1094_v23 = vrot.slane %v1092_v17, 5  ;;  %v1100_v27 = vrot.slane %v1098_v18, 5  ;;  %v1104_v28 = vrot.slane %v1102_v19, 4  ;;  %v5824_v1 = vld [vmem:[%s5792_s18 + $0xc] sm:$0xf] }
  0x8a   : > { %4842 = vmatpush3.bf16.msra.mxu1 %v5314_v5  ;;  %v2231_v33 = vshll.u32 %v4321_v21, 16  ;;  %v2237_v35 = vshll.u32 %v5810_v24, 16  ;;  %v2241_v36 = vshrl.u32 %v5810_v24, 16  ;;  %v1110_v40 = vrot.slane %v1108_v20, 5  ;;  %v5837_v43 = vld [vmem:[%s5792_s18 + $0x10] sm:$0xf] }
  0x8b   : > { %4970 = vmatpush3.bf16.msra.mxu0 %v5315_v6  ;;  %4843 = vmatprep.subr.bf16.mxu1 %v5316_v7  ;;  %v1095_v32 = vor.u32 %v1094_v23, %v1091_v22  ;;  %v1105_v39 = vor.u32 %v1104_v28, %v1100_v27  ;;  %v2230_v2 = vrot.slane %v2228_v29, 4  ;;  %v2247_v34 = vshll.u32 %v5813_v25, 16  ;;  %v5847_v55 = vld [vmem:[%s5792_s18 + $0x14] sm:$0x1]  ;;  %v4324_v57 = vld [vmem:[%s5792_s18 + $0x18] sm:$0xf] }
  0x8c   : > { %4971 = vmatprep.subr.bf16.mxu0 %v5317_v8  ;;  %v2233_v45 = vrot.slane %v2231_v33, 5  ;;  %v2239_v46 = vrot.slane %v2237_v35, 5  ;;  %v2243_v48 = vrot.slane %v2241_v36, 4  ;;  %v1113_v50 = vshrl.u32 %v5824_v1, 16  ;;  %v5855_v63 = vld [vmem:[%s5792_s18 + $0x1c] sm:$0xf] }
  0x8d   : > { %v1096_v44 = vrot.slane %v1095_v32, 4  ;;  %v1106_v49 = vrot.slane %v1105_v39, 4  ;;  %v2249_v42 = vrot.slane %v2247_v34, 5  ;;  %v1116_v51 = vshll.u32 %v5824_v1, 16  ;;  %v5326_v54 = vld [vmem:[%s6811_s3] sm:$0xff]  }
  0x8e   : > { %4844 = vmatpush3.bf16.msra.mxu1 %v5316_v7  ;;  %v2234_v53 = vor.u32 %v2233_v45, %v2230_v2  ;;  %v2244_v41 = vor.u32 %v2243_v48, %v2239_v46  ;;  %v1122_v56 = vshll.u32 %v5837_v43, 16  ;;  %v1115_v60 = vrot.slane %v1113_v50, 4  ;;  %v5863_v58 = vld [vmem:[%s6811_s3 + $0x140] sm:$0xff]   ;;  %v5884_v36 = vld [vmem:[%s5792_s18 + $0x1c] sm:$0xf] }
  0x8f   : > { %4972 = vmatpush3.bf16.msra.mxu0 %v5317_v8  ;;  %4845 = vmatprep.subr.bf16.mxu1 %v5318_v9  ;;  %v1101_v30 = vsel %vm5831_vm10, %v1096_v44, %v1100_v27  ;;  %v1111_v59 = vsel %vm5831_vm10, %v1106_v49, %v1110_v40  ;;  %v1118_v61 = vrot.slane %v1116_v51, 5  ;;  %v1126_v62 = vshrl.u32 %v5837_v43, 16  ;;  %v5867_v8 = vld [vmem:[%s5792_s18 + $0x20] sm:$0x1]  ;;  %v4327_v44 = vld [vmem:[%s5792_s18 + $0x24] sm:$0xf] }
  0x90   : > { %4973 = vmatprep.subr.bf16.mxu0 %v5319_v10  ;;  %v4231_v0 = vcombine.low %v1101_v30, %v1111_v59  ;;  %v2235_v3 = vrot.slane %v2234_v53, 4  ;;  %v2245_v4 = vrot.slane %v2244_v41, 4  ;;  %v1124_v47 = vrot.slane %v1122_v56, 5  ;;  %v5328_v49 = vld [vmem:[%s6811_s3 + $0x8] sm:$0xff]  }
  0x91   : > { %v1119_v5 = vor.u32 %v1118_v61, %v1115_v60  ;;  %v1128_v6 = vrot.slane %v1126_v62, 4  ;;  %v1132_v7 = vshll.u32 %v5847_v55, 16  ;;  %v2261_v22 = vshll.u32 %v5855_v63, 16  ;;  %v5899_v53 = vld [vmem:[%s5792_s18 + $0x28] sm:$0xf]  ;;  %v5330_v61 = vld [vmem:[%s6811_s3 + $0x10] sm:$0xff]  }
  0x92   : > { %4846 = vmatpush3.bf16.msra.mxu1 %v5318_v9  ;;  %4853 = vmatprep.mubr.bf16.mxu1 %v4231_v0  ;;  %v2240_v9 = vsel %vm5831_vm10, %v2235_v3, %v2239_v46  ;;  %v2265_v23 = vshrl.u32 %v5855_v63, 16  ;;  %v1146_v51 = vshll.u32 %v5884_v36, 16  ;;  %v5904_v59 = vld [vmem:[%s5792_s18 + $0x2c] sm:$0x1]  ;;  %v2276_v60 = vshrl.u32 %v4327_v44, 16 }
  0x93   : > { %4974 = vmatpush3.bf16.msra.mxu0 %v5319_v10  ;;  %4847 = vmatprep.subr.bf16.mxu1 %v5320_v11  ;;  %v2250_v10 = vsel %vm5831_vm10, %v2245_v4, %v2249_v42  ;;  %v1120_v17 = vrot.slane %v1119_v5, 4  ;;  %v1129_v18 = vor.u32 %v1128_v6, %v1124_v47  ;;  %v1134_v19 = vrot.slane %v1132_v7, 5  ;;  %v5329_v62 = vld [vmem:[%s6811_s3 + $0x148] sm:$0xff]   ;;  %v5913_v5 = vld [vmem:[%s5792_s18 + $0x24] sm:$0xf] }
  0x94   : > { %4975 = vmatprep.subr.bf16.mxu0 %v5321_v12  ;;  %v4345_v16 = vcombine.low %v2240_v9, %v2250_v10  ;;  %v2263_v33 = vrot.slane %v2261_v22, 5  ;;  %v2267_v35 = vrot.slane %v2265_v23, 4  ;;  %v1148_v0 = vrot.slane %v1146_v51, 5  ;;  %v4330_v23 = vld [vmem:[%s5792_s18 + $0x30] sm:$0xf] }
  0x95   : > { %v1125_v28 = vsel %vm5831_vm10, %v1120_v17, %v1124_v47  ;;  %v1130_v29 = vrot.slane %v1129_v18, 4  ;;  %v2279_v47 = vshll.u32 %v4327_v44, 16  ;;  %v2278_v9 = vrot.slane %v2276_v60, 4  ;;  %v5920_v17 = vld [vmem:[%s5792_s18 + $0x28] sm:$0xf]  ;;  %v5332_v44 = vld [vmem:[%s6811_s3 + $0x18] sm:$0xff]  }
  0x96   : > { %4848 = vmatpush3.bf16.msra.mxu1 %v5320_v11  ;;  %v2252_v11 = vshrl.u32 %v4324_v57, 16  ;;  %4981 = vmatprep.mubr.bf16.mxu0 %v4345_v16  ;;  %v2268_v48 = vor.u32 %v2267_v35, %v2263_v33  ;;  %v2289_v16 = vshrl.u32 %v5899_v53, 16  ;;  %v5923_v18 = vld [vmem:[%s5792_s18 + $0x2c] sm:$0x1]  ;;  %v1161_v22 = vshrl.u32 %v5913_v5, 16  ;;  %v5331_v35 = vld [vmem:[%s6811_s3 + $0x150] sm:$0xff]  }
  0x97   : > { %4976 = vmatpush3.bf16.msra.mxu0 %v5321_v12  ;;  %4849 = vmatprep.subr.bf16.mxu1 %v5322_v26  ;;  %v2255_v12 = vshll.u32 %v4324_v57, 16  ;;  %v1135_v39 = vsel %vm5831_vm10, %v1130_v29, %v1134_v19  ;;  %v1180_v51 = vshll.u32 %v5923_v18, 16  ;;  %v5333_v60 = vld [vmem:[%s6811_s3 + $0x158] sm:$0xff]  }
  0x98   : > { %4977 = vmatprep.subr.bf16.mxu0 %v5323_v31  ;;  %v2254_v20 = vrot.slane %v2252_v11, 4  ;;  %v4232_v45 = vcombine.low %v1125_v28, %v1135_v39  ;;  %v2269_v56 = vrot.slane %v2268_v48, 4 }
  0x99   : > { %v2257_v21 = vrot.slane %v2255_v12, 5  ;;  %v2281_v12 = vrot.slane %v2279_v47, 5 }
  0x9a   : > { %4850 = vmatpush3.bf16.msra.mxu1 %v5322_v26  ;;  %v5876_v26 = vld [vmem:[%s5792_s18 + $0x18] sm:$0xf] }
  0x9b   : > { %4978 = vmatpush3.bf16.msra.mxu0 %v5323_v31  ;;  %4851 = vmatprep.subr.bf16.mxu1 %v5324_v37  ;;  %v2271_v31 = vshll.u32 %v5867_v8, 16  ;;  %v2258_v32 = vor.u32 %v2257_v21, %v2254_v20  ;;  %v1137_v34 = vshrl.u32 %v5876_v26, 16  ;;  %v1140_v42 = vshll.u32 %v5876_v26, 16 }
  0x9c   : > { %4979 = vmatprep.subr.bf16.mxu0 %v5325_v52  ;;  %v2295_v21 = vshll.u32 %v5904_v59, 16  ;;  %v2282_v29 = vor.u32 %v2281_v12, %v2278_v9 }
  0x9d   : > { %v2273_v40 = vrot.slane %v2271_v31, 5  ;;  %v2259_v46 = vrot.slane %v2258_v32, 4  ;;  %v1139_v50 = vrot.slane %v1137_v34, 4  ;;  %v1142_v57 = vrot.slane %v1140_v42, 5 }
  0x9e   : > { %4852 = vmatpush3.bf16.msra.mxu1 %v5324_v37  ;;  %v1079_v37 = vld [vmem:[%s5792_s18 + $0x20] sm:$0x1]  ;;  %v2291_v31 = vrot.slane %v2289_v16, 4  ;;  %v1164_v32 = vshll.u32 %v5913_v5, 16  ;;  %v2297_v39 = vrot.slane %v2295_v21, 5  ;;  %v1170_v34 = vshll.u32 %v5920_v17, 16 }
  0x9f   : > { %4980 = vmatpush3.bf16.msra.mxu0 %v5325_v52  ;;  %4869 = vmatprep.subr.bf16.mxu1 %v5326_v54  ;;  %v1150_v52 = vshrl.u32 %v5884_v36, 16  ;;  %v1156_v30 = vshll.u32 %v1079_v37, 16  ;;  %v2264_v41 = vsel %vm5831_vm10, %v2259_v46, %v2263_v33  ;;  %v2274_v6 = vsel %vm5831_vm10, %v2269_v56, %v2273_v40  ;;  %v5930_v33 = vld [vmem:[%s5792_s18 + $0x34] sm:$0xf]  ;;  %v5949_v56 = vld [vmem:[%s5792_s18 + $0x38] sm:$0x1] }
  0xa0   : > { %4997 = vmatprep.subr.bf16.mxu0 %v5863_v58  ;;  %v1143_v7 = vor.u32 %v1142_v57, %v1139_v50  ;;  %v4346_v10 = vcombine.low %v2264_v41, %v2274_v6  ;;  %v1163_v40 = vrot.slane %v1161_v22, 4  ;;  %v2283_v46 = vrot.slane %v2282_v29, 4  ;;  %v5956_v6 = vld [vmem:[%s5792_s18 + $0x30] sm:$0xf] }
  0xa1   : > { %4854 = vmatmul.mubr.bf16.vlgmr.msra.gmra.mrb[0].mxu1 %v4232_v45  ;;  %v1152_v3 = vrot.slane %v1150_v52, 4  ;;  %v1158_v4 = vrot.slane %v1156_v30, 5  ;;  %v1172_v42 = vrot.slane %v1170_v34, 5  ;;  %v1174_v50 = vshrl.u32 %v5920_v17, 16 }
  0xa2   : > { %4870 = vmatpush3.bf16.msra.mxu1 %v5326_v54  ;;  %v2285_v54 = vshll.u32 %v5899_v53, 16  ;;  %v1144_v19 = vrot.slane %v1143_v7, 4  ;;  %4982 = vmatmul.mubr.bf16.vlgmr.msra.gmra.mrb[0].mxu0 %v4346_v10  ;;  %v2300_v57 = vshrl.u32 %v4330_v23, 16  ;;  %v2309_v47 = vshll.u32 %v5930_v33, 16  ;;  %v5962_v10 = vld [vmem:[%s5792_s18 + $0x34] sm:$0xf] }
  0xa3   : > { %4871 = vmatprep.subr.bf16.mxu1 %v5328_v49  ;;  %v1153_v11 = vor.u32 %v1152_v3, %v1148_v0  ;;  %4998 = vmatpush3.bf16.msra.mxu0 %v5863_v58  ;;  %v1166_v58 = vrot.slane %v1164_v32, 5  ;;  %v1182_v3 = vrot.slane %v1180_v51, 5  ;;  %v2319_v22 = vshll.u32 %v5949_v56, 16 }
  0xa4   : > { %v2287_v20 = vrot.slane %v2285_v54, 5  ;;  %v1149_v37 = vsel %vm5831_vm10, %v1144_v19, %v1148_v0  ;;  %4999 = vmatprep.subr.bf16.mxu0 %v5329_v62  ;;  %v1176_v0 = vrot.slane %v1174_v50, 4  ;;  %v2302_v54 = vrot.slane %v2300_v57, 4  ;;  %v5987_v50 = vld [vmem:[%s5792_s18 + $0x40] sm:$0xf]  ;;  %v5338_v57 = vld [vmem:[%s6811_s3 + $0x30] sm:$0xff]  }
  0xa5   : > { %v1154_v28 = vrot.slane %v1153_v11, 4  ;;  %v1167_v41 = vor.u32 %v1166_v58, %v1163_v40  ;;  %v2311_v19 = vrot.slane %v2309_v47, 5  ;;  %v1188_v32 = vshll.u32 %v5956_v6, 16 }
  0xa6   : > { %4872 = vmatpush3.bf16.msra.mxu1 %v5328_v49  ;;  %v2292_v48 = vor.u32 %v2291_v31, %v2287_v20  ;;  %v2288_v52 = vsel %vm5831_vm10, %v2283_v46, %v2287_v20  ;;  %v1177_v12 = vor.u32 %v1176_v0, %v1172_v42  ;;  %v5972_v31 = vld [vmem:[%s5792_s18 + $0x38] sm:$0x1]  ;;  %v2321_v34 = vrot.slane %v2319_v22, 5  ;;  %v4333_v46 = vld [vmem:[%s5792_s18 + $0x3c] sm:$0xf] }
  0xa7   : > { %4873 = vmatprep.subr.bf16.mxu1 %v5330_v61  ;;  %v1159_v45 = vsel %vm5831_vm10, %v1154_v28, %v1158_v4  ;;  %5000 = vmatpush3.bf16.msra.mxu0 %v5329_v62  ;;  %v2303_v4 = vshll.u32 %v4330_v23, 16  ;;  %v1168_v9 = vrot.slane %v1167_v41, 4  ;;  %v5334_v62 = vld [vmem:[%s6811_s3 + $0x20] sm:$0xff]   ;;  %v1185_v23 = vshrl.u32 %v5956_v6, 16 }
  0xa8   : > { %v4233_v49 = vcombine.low %v1149_v37, %v1159_v45  ;;  %v2293_v30 = vrot.slane %v2292_v48, 4  ;;  %5001 = vmatprep.subr.bf16.mxu0 %v5331_v35  ;;  %v1178_v28 = vrot.slane %v1177_v12, 4  ;;  %v1194_v37 = vshll.u32 %v5962_v10, 16  ;;  %v6008_v12 = vld [vmem:[%s5792_s18 + $0x40] sm:$0xf] }
  0xa9   : > { %v2305_v16 = vrot.slane %v2303_v4, 5  ;;  %v1173_v20 = vsel %vm5831_vm10, %v1168_v9, %v1172_v42  ;;  %v1198_v45 = vshrl.u32 %v5962_v10, 16  ;;  %v1204_v41 = vshll.u32 %v5972_v31, 16  ;;  %v5996_v4 = vld [vmem:[%s5792_s18 + $0x44] sm:$0x1]  ;;  %v5337_v9 = vld [vmem:[%s6811_s3 + $0x168] sm:$0xff]  }
  0xaa   : > { %4874 = vmatpush3.bf16.msra.mxu1 %v5330_v61  ;;  %4857 = vmatprep.mubr.bf16.mxu1 %v4233_v49  ;;  %v2298_v7 = vsel %vm5831_vm10, %v2293_v30, %v2297_v39  ;;  %v2313_v61 = vshrl.u32 %v5930_v33, 16  ;;  %v5336_v39 = vld [vmem:[%s6811_s3 + $0x28] sm:$0xff]   ;;  %v1183_v48 = vsel %vm5831_vm10, %v1178_v28, %v1182_v3  ;;  %v1190_v49 = vrot.slane %v1188_v32, 5  ;;  %v6011_v22 = vld [vmem:[%s5792_s18 + $0x44] sm:$0x1] }
  0xab   : > { %4875 = vmatprep.subr.bf16.mxu1 %v5332_v44  ;;  %v4347_v11 = vcombine.low %v2288_v52, %v2298_v7  ;;  %v2306_v29 = vor.u32 %v2305_v16, %v2302_v54  ;;  %5002 = vmatpush3.bf16.msra.mxu0 %v5331_v35  ;;  %v5335_v35 = vld [vmem:[%s6811_s3 + $0x160] sm:$0xff]   ;;  %v1196_v42 = vrot.slane %v1194_v37, 5  ;;  %v4234_v51 = vcombine.low %v1173_v20, %v1183_v48  ;;  %v6024_v48 = vld [vmem:[%s5792_s18 + $0x4c] sm:$0xf] }
  0xac   : > { %v2315_v21 = vrot.slane %v2313_v61, 4  ;;  %5003 = vmatprep.subr.bf16.mxu0 %v5333_v60  ;;  %v1200_v30 = vrot.slane %v1198_v45, 4  ;;  %v2324_v47 = vshrl.u32 %v4333_v46, 16  ;;  %v2327_v7 = vshll.u32 %v4333_v46, 16  ;;  %6825 = vst [vmem:[#allocation4_spill] sm:$0xff] %v6011_v22 }
  0xad   : > { %4985 = vmatprep.mubr.bf16.mxu0 %v4347_v11  ;;  %v2307_v58 = vrot.slane %v2306_v29, 4  ;;  %4858 = vmatmul.mubr.bf16.gmra.mrb[4].mxu1 %v4234_v51  ;;  %v6005_v11 = vld [vmem:[%s5792_s18 + $0x3c] sm:$0xf]  ;;  %v2337_v32 = vshrl.u32 %v5987_v50, 16  ;;  %v2343_v37 = vshll.u32 %v5996_v4, 16 }
  0xae   : > { %4876 = vmatpush3.bf16.msra.mxu1 %v5332_v44  ;;  %v2316_v40 = vor.u32 %v2315_v21, %v2311_v19  ;;  %v1187_v44 = vrot.slane %v1185_v23, 4  ;;  %v1201_v61 = vor.u32 %v1200_v30, %v1196_v42  ;;  %v2326_v20 = vrot.slane %v2324_v47, 4  ;;  %v5340_v23 = vld [vmem:[%s6811_s3 + $0x38] sm:$0xff]  }
  0xaf   : > { %4877 = vmatprep.subr.bf16.mxu1 %v5334_v62  ;;  %v2312_v0 = vsel %vm5831_vm10, %v2307_v58, %v2311_v19  ;;  %5004 = vmatpush3.bf16.msra.mxu0 %v5333_v60  ;;  %v2333_v60 = vshll.u32 %v5987_v50, 16  ;;  %v2329_v21 = vrot.slane %v2327_v7, 5  ;;  %v1209_v45 = vshrl.u32 %v6005_v11, 16 }
  0xb0   : > { %v2317_v52 = vrot.slane %v2316_v40, 4  ;;  %v1191_v3 = vor.u32 %v1190_v49, %v1187_v44  ;;  %5005 = vmatprep.subr.bf16.mxu0 %v5335_v35  ;;  %v1202_v28 = vrot.slane %v1201_v61, 4  ;;  %v4336_v40 = vld [vmem:[%s5792_s18 + $0x48] sm:$0xf]  ;;  %v1212_v46 = vshll.u32 %v6005_v11, 16 }
  0xb1   : > { %v2335_v29 = vrot.slane %v2333_v60, 5  ;;  %v2330_v44 = vor.u32 %v2329_v21, %v2326_v20  ;;  %v2339_v49 = vrot.slane %v2337_v32, 4  ;;  %v2345_v51 = vrot.slane %v2343_v37, 5 }
  0xb2   : > { %4878 = vmatpush3.bf16.msra.mxu1 %v5334_v62  ;;  %v2322_v54 = vsel %vm5831_vm10, %v2317_v52, %v2321_v34  ;;  %v1206_v62 = vrot.slane %v1204_v41, 5  ;;  %v1192_v19 = vrot.slane %v1191_v3, 4  ;;  %v1218_v52 = vshll.u32 %v6008_v12, 16 }
  0xb3   : > { %4879 = vmatprep.subr.bf16.mxu1 %v5336_v39  ;;  %v4348_v16 = vcombine.low %v2312_v0, %v2322_v54  ;;  %5006 = vmatpush3.bf16.msra.mxu0 %v5335_v35  ;;  %v2331_v30 = vrot.slane %v2330_v44, 4  ;;  %v1214_v41 = vrot.slane %v1212_v46, 5  ;;  %v5339_v0 = vld [vmem:[%s6811_s3 + $0x170] sm:$0xff]   ;;  %v2340_v3 = vor.u32 %v2339_v49, %v2335_v29  ;;  %v6050_v44 = vld [vmem:[%s5792_s18 + $0x48] sm:$0xf] }
  0xb4   : > { %v1197_v34 = vsel %vm5831_vm10, %v1192_v19, %v1196_v42  ;;  %v1207_v58 = vsel %vm5831_vm10, %v1202_v28, %v1206_v62  ;;  %v1211_v42 = vrot.slane %v1209_v45, 4  ;;  %5007 = vmatprep.subr.bf16.mxu0 %v5337_v9  ;;  %v1220_v47 = vrot.slane %v1218_v52, 5  ;;  %v6037_v62 = vld [vmem:[%s5792_s18 + $0x50] sm:$0x1]  ;;  %v6042_v19 = vld [vmem:[%s6811_s3 + $0x80] sm:$0xff]  }
  0xb5   : > { %4986 = vmatmul.mubr.bf16.gmra.mrb[4].mxu0 %v4348_v16  ;;  %v1222_v7 = vshrl.u32 %v6008_v12, 16  ;;  %v1228_v54 = vshll.u32 %v6011_v22, 16  ;;  %v2336_v35 = vsel %vm5831_vm10, %v2331_v30, %v2335_v29  ;;  %v2348_v60 = vshrl.u32 %v4336_v40, 16  ;;  %v5341_v29 = vld [vmem:[%s6811_s3 + $0x178] sm:$0xff]   ;;  %v6056_v49 = vld [vmem:[%s5792_s18 + $0x4c] sm:$0xf] }
  0xb6   : > { %4880 = vmatpush3.bf16.msra.mxu1 %v5336_v39  ;;  %v4235_v39 = vcombine.low %v1197_v34, %v1207_v58  ;;  %v1215_v61 = vor.u32 %v1214_v41, %v1211_v42  ;;  %v2351_v16 = vshll.u32 %v4336_v40, 16  ;;  %v2341_v20 = vrot.slane %v2340_v3, 4  ;;  %v6061_v41 = vld [vmem:[%s5792_s18 + $0x50] sm:$0x1]  ;;  %v4339_v3 = vld [vmem:[%s5792_s18 + $0x54] sm:$0xf] }
  0xb7   : > { %4881 = vmatprep.subr.bf16.mxu1 %v5338_v57  ;;  %v1224_v21 = vrot.slane %v1222_v7, 4  ;;  %v2357_v28 = vshll.u32 %v6024_v48, 16  ;;  %5008 = vmatpush3.bf16.msra.mxu0 %v5337_v9  ;;  %v2350_v37 = vrot.slane %v2348_v60, 4  ;;  %v2361_v34 = vshrl.u32 %v6024_v48, 16  ;;  %6826 = vst [vmem:[#allocation5_spill] sm:$0xff] %v6061_v41 }
  0xb8   : > { %4861 = vmatprep.mubr.bf16.mxu1 %v4235_v39  ;;  %v1216_v32 = vrot.slane %v1215_v61, 4  ;;  %v2353_v40 = vrot.slane %v2351_v16, 5  ;;  %5009 = vmatprep.subr.bf16.mxu0 %v5339_v0  ;;  %v2346_v45 = vsel %vm5831_vm10, %v2341_v20, %v2345_v51  ;;  %v2367_v9 = vshll.u32 %v6037_v62, 16  ;;  %v6072_v16 = vld [vmem:[%s6811_s3 + $0x180] sm:$0xff]  }
  0xb9   : > { %v1225_v46 = vor.u32 %v1224_v21, %v1220_v47  ;;  %v2359_v58 = vrot.slane %v2357_v28, 5  ;;  %v4349_v52 = vcombine.low %v2336_v35, %v2346_v45  ;;  %v2363_v42 = vrot.slane %v2361_v34, 4 }
  0xba   : > { %4882 = vmatpush3.bf16.msra.mxu1 %v5338_v57  ;;  %v1230_v57 = vrot.slane %v1228_v54, 5  ;;  %v1221_v39 = vsel %vm5831_vm10, %v1216_v32, %v1220_v47  ;;  %v2354_v30 = vor.u32 %v2353_v40, %v2350_v37  ;;  %v2369_v51 = vrot.slane %v2367_v9, 5  ;;  %v6078_v32 = vld [vmem:[%s5792_s18 + $0x58] sm:$0xf]  ;;  %v6086_v9 = vld [vmem:[%s5792_s18 + $0x54] sm:$0xf] }
  0xbb   : > { %4883 = vmatprep.subr.bf16.mxu1 %v5340_v23  ;;  %v1226_v7 = vrot.slane %v1225_v46, 4  ;;  %v1233_v54 = vshrl.u32 %v6050_v44, 16  ;;  %v1236_v61 = vshll.u32 %v6050_v44, 16  ;;  %5010 = vmatpush3.bf16.msra.mxu0 %v5339_v0  ;;  %v2364_v47 = vor.u32 %v2363_v42, %v2359_v58  ;;  %v6083_v46 = vld [vmem:[%s5792_s18 + $0x5c] sm:$0x1] }
  0xbc   : > { %4989 = vmatprep.mubr.bf16.mxu0 %v4349_v52  ;;  %v1242_v35 = vshll.u32 %v6056_v49, 16  ;;  %v1246_v60 = vshrl.u32 %v6056_v49, 16  ;;  %5011 = vmatprep.subr.bf16.mxu0 %v5341_v29  ;;  %v1252_v28 = vshll.u32 %v6061_v41, 16  ;;  %v6113_v41 = vld [vmem:[%s5792_s18 + $0x68] sm:$0x1] }
  0xbd   : > { %v1231_v20 = vsel %vm5831_vm10, %v1226_v7, %v1230_v57  ;;  %v1235_v0 = vrot.slane %v1233_v54, 4  ;;  %v1238_v21 = vrot.slane %v1236_v61, 5  ;;  %v2365_v34 = vrot.slane %v2364_v47, 4  ;;  %v6089_v7 = vld [vmem:[%s5792_s18 + $0x58] sm:$0xf] }
  0xbe   : > { %4884 = vmatpush3.bf16.msra.mxu1 %v5340_v23  ;;  %v2355_v23 = vrot.slane %v2354_v30, 4  ;;  %v4236_v37 = vcombine.low %v1221_v39, %v1231_v20  ;;  %v1244_v45 = vrot.slane %v1242_v35, 5  ;;  %v1248_v30 = vrot.slane %v1246_v60, 4 }
  0xbf   : > { %4901 = vmatprep.subr.bf16.mxu1 %v6042_v19  ;;  %v1239_v52 = vor.u32 %v1238_v21, %v1235_v0  ;;  %v1254_v42 = vrot.slane %v1252_v28, 5  ;;  %v2372_v57 = vshrl.u32 %v4339_v3, 16  ;;  %5012 = vmatpush3.bf16.msra.mxu0 %v5341_v29  ;;  %v2370_v39 = vsel %vm5831_vm10, %v2365_v34, %v2369_v51  ;;  %v6098_v21 = vld [vmem:[%s5792_s18 + $0x5c] sm:$0x1] }
  0xc0   : > { %v2360_v40 = vsel %vm5831_vm10, %v2355_v23, %v2359_v58  ;;  %4862 = vmatmul.mubr.bf16.gmra.mrb[8].mxu1 %v4236_v37  ;;  %v2375_v58 = vshll.u32 %v4339_v3, 16  ;;  %v2381_v54 = vshll.u32 %v6078_v32, 16  ;;  %v2385_v61 = vshrl.u32 %v6078_v32, 16  ;;  %5029 = vmatprep.subr.bf16.mxu0 %v6072_v16  ;;  %v4342_v3 = vld [vmem:[%s5792_s18 + $0x60] sm:$0xf] }
  0xc1   : > { %v4350_v23 = vcombine.low %v2360_v40, %v2370_v39  ;;  %v1240_v47 = vrot.slane %v1239_v52, 4  ;;  %v1249_v35 = vor.u32 %v1248_v30, %v1244_v45  ;;  %v2374_v60 = vrot.slane %v2372_v57, 4 }
  0xc2   : > { %v2377_v29 = vrot.slane %v2375_v58, 5  ;;  %v2383_v20 = vrot.slane %v2381_v54, 5  ;;  %v2387_v0 = vrot.slane %v2385_v61, 4  ;;  %v2391_v51 = vshll.u32 %v6083_v46, 16  ;;  %v6107_v58 = vld [vmem:[%s5792_s18 + $0x64] sm:$0xf] }
  0xc3   : > { %4990 = vmatmul.mubr.bf16.gmra.mrb[8].mxu0 %v4350_v23  ;;  %v1245_v28 = vsel %vm5831_vm10, %v1240_v47, %v1244_v45  ;;  %v1250_v37 = vrot.slane %v1249_v35, 4  ;;  %v1257_v40 = vshrl.u32 %v6086_v9, 16  ;;  %v1260_v34 = vshll.u32 %v6086_v9, 16 }
  0xc4   : > { %v2378_v52 = vor.u32 %v2377_v29, %v2374_v60  ;;  %v2388_v30 = vor.u32 %v2387_v0, %v2383_v20  ;;  %v2393_v57 = vrot.slane %v2391_v51, 5  ;;  %v1266_v39 = vshll.u32 %v6089_v7, 16  ;;  %v4361_v60 = vld [vmem:[%s5792_s18 + $0xc] sm:$0xe] }
  0xc5   : > { %v1255_v54 = vsel %vm5831_vm10, %v1250_v37, %v1254_v42  ;;  %v1259_v61 = vrot.slane %v1257_v40, 4  ;;  %v1262_v23 = vrot.slane %v1260_v34, 5  ;;  %v1270_v45 = vshrl.u32 %v6089_v7, 16 }
  0xc6   : > { %v4237_v47 = vcombine.low %v1245_v28, %v1255_v54  ;;  %v2379_v35 = vrot.slane %v2378_v52, 4  ;;  %v2389_v27 = vrot.slane %v2388_v30, 4  ;;  %v1268_v2 = vrot.slane %v1266_v39, 5 }
  0xc7   : > { %v1263_v29 = vor.u32 %v1262_v23, %v1259_v61  ;;  %v1272_v0 = vrot.slane %v1270_v45, 4  ;;  %v1276_v51 = vshll.u32 %v6098_v21, 16  ;;  %v2396_v22 = vshrl.u32 %v4342_v3, 16 }
  0xc8   : > { %4865 = vmatprep.mubr.bf16.mxu1 %v4237_v47  ;;  %v2384_v42 = vsel %vm5831_vm10, %v2379_v35, %v2383_v20  ;;  %v2394_v37 = vsel %vm5831_vm10, %v2389_v27, %v2393_v57  ;;  %v2399_v40 = vshll.u32 %v4342_v3, 16  ;;  %v2405_v28 = vshll.u32 %v6107_v58, 16 }
  0xc9   : > { %v4351_v34 = vcombine.low %v2384_v42, %v2394_v37  ;;  %v1264_v52 = vrot.slane %v1263_v29, 4  ;;  %v1273_v30 = vor.u32 %v1272_v0, %v1268_v2  ;;  %v1278_v39 = vrot.slane %v1276_v51, 5  ;;  %v4362_v51 = vld [vmem:[%s5792_s18 + $0x18] sm:$0xe]  ;;  %v4363_v42 = vld [vmem:[%s5792_s18 + $0x24] sm:$0xe] }
  0xca   : > { %v2398_v54 = vrot.slane %v2396_v22, 4  ;;  %v2401_v61 = vrot.slane %v2399_v40, 5  ;;  %v2407_v23 = vrot.slane %v2405_v28, 5  ;;  %v2409_v45 = vshrl.u32 %v6107_v58, 16 }
  0xcb   : > { %4993 = vmatprep.mubr.bf16.mxu0 %v4351_v34  ;;  %v1269_v20 = vsel %vm5831_vm10, %v1264_v52, %v1268_v2  ;;  %v1274_v47 = vrot.slane %v1273_v30, 4  ;;  %v2415_v27 = vshll.u32 %v6113_v41, 16  ;;  %v4369_v3 = vrot.slane %v4361_v60, 9 }
  0xcc   : > { %v2402_v57 = vor.u32 %v2401_v61, %v2398_v54  ;;  %v2411_v35 = vrot.slane %v2409_v45, 4  ;;  %v2662_v22 = vrot.slane %v5810_v24, 5  ;;  %v4247_v2 = vcombine.low %v5795_v13, %v5798_v14 }
  0xcd   : > { %v1279_v0 = vsel %vm5831_vm10, %v1274_v47, %v1278_v39  ;;  %v2417_v28 = vrot.slane %v2415_v27, 5  ;;  %v2676_v39 = vrot.slane %v5899_v53, 5  ;;  %v6829_v13 = vrot.slane %v5855_v63, 5  ;;  %v6178_v63 = vld [vmem:[%s5792_s18 + $0x48] sm:$0xe] }
  0xce   : > { %v4238_v37 = vcombine.low %v1269_v20, %v1279_v0  ;;  %v2403_v60 = vrot.slane %v2402_v57, 4  ;;  %v2412_v40 = vor.u32 %v2411_v35, %v2407_v23  ;;  %v2663_v34 = vsel %vm6128_vm13, %v4369_v3, %v2662_v22  ;;  %v4364_v3 = vld [vmem:[%s5792_s18 + $0x30] sm:$0xe] }
  0xcf   : > { %v2664_v52 = vrot.slane %v2662_v22, 4  ;;  %v2671_v14 = vrot.slane %v6829_v13, 4  ;;  %v2672_v54 = vrot.slane %v5867_v8, 5  ;;  %v6830_v61 = vrot.slane %v5813_v25, 5 }
  0xd0   : > { %4866 = vmatmul.mubr.bf16.gmra.mrb[12].mxu1 %v4238_v37  ;;  %v2408_v24 = vsel %vm5831_vm10, %v2403_v60, %v2407_v23  ;;  %v2413_v30 = vrot.slane %v2412_v40, 4  ;;  %v4370_v23 = vrot.slane %v4362_v51, 9  ;;  %v4371_v27 = vrot.slane %v4363_v42, 9  ;;  %v4365_v51 = vld [vmem:[%s5792_s18 + $0x3c] sm:$0xe]  ;;  %v5346_v37 = vld [vmem:[%s6811_s3 + $0x88] sm:$0xff]  }
  0xd1   : > { %4885 = vmatprep.mubr.bf16.mxu1 %v4247_v2  ;;  %v2666_v45 = vsel %vm6128_vm13, %v2664_v52, %v6830_v61  ;;  %v2678_v57 = vrot.slane %v2676_v39, 4  ;;  %v2679_v35 = vrot.slane %v5904_v59, 5  ;;  %v1698_v8 = vrot.slane %v5801_v15, 5 }
  0xd2   : > { %v2418_v20 = vsel %vm5831_vm10, %v2413_v30, %v2417_v28  ;;  %v4377_v47 = vcombine.low %v2663_v34, %v2666_v45  ;;  %v1705_v25 = vrot.slane %v5847_v55, 5  ;;  %v4248_v22 = vcombine.low %v5824_v1, %v5837_v43  ;;  %v5352_v45 = vld [vmem:[%s6811_s3 + $0x98] sm:$0xff]  }
  0xd3   : > { %v4352_v53 = vcombine.low %v2408_v24, %v2418_v20  ;;  %v2673_v0 = vsel %vm6128_vm13, %v2671_v14, %v2672_v54  ;;  %v4249_v2 = vcombine.low %v5876_v26, %v5884_v36  ;;  %v6831_v42 = vmov %v6829_v13  ;;  %v6188_v24 = vld [vmem:[%s5792_s18 + $0x54] sm:$0xe] }
  0xd4   : > { %v2670_v59 = vsel %vm6128_vm13, %v4370_v23, %v6831_v42  ;;  %v4372_v1 = vrot.slane %v4364_v3, 9  ;;  %v2683_v43 = vrot.slane %v5930_v33, 5  ;;  %v2690_v60 = vrot.slane %v5987_v50, 5  ;;  %v5347_v50 = vld [vmem:[%s6811_s3 + $0x188] sm:$0xff]  }
  0xd5   : > { %4994 = vmatmul.mubr.bf16.gmra.mrb[12].mxu0 %v4352_v53  ;;  %v2677_v26 = vsel %vm6128_vm13, %v4371_v27, %v2676_v39  ;;  %v2680_v36 = vsel %vm6128_vm13, %v2678_v57, %v2679_v35  ;;  %v2686_v40 = vrot.slane %v5949_v56, 5  ;;  %v4373_v28 = vrot.slane %v4365_v51, 9  ;;  %v6191_v56 = vld [vmem:[%s5792_s18 + $0x60] sm:$0xe]  ;;  %v6218_v57 = vld [vmem:[%s5792_s18 + $0x4] sm:$0xf] }
  0xd6   : > { %5013 = vmatprep.mubr.bf16.mxu0 %v4377_v47  ;;  %v2693_v34 = vrot.slane %v5996_v4, 5  ;;  %v2697_v52 = vrot.slane %v6024_v48, 5  ;;  %v4378_v33 = vcombine.low %v2670_v59, %v2673_v0  ;;  %v4379_v30 = vcombine.low %v2677_v26, %v2680_v36  ;;  %v5356_v51 = vld [vmem:[%s6811_s3 + $0xa0] sm:$0xff]   ;;  %v6273_v48 = vld [vmem:[%s5792_s18 + $0x18] sm:$0xe] }
  0xd7   : > { %v2685_v39 = vrot.slane %v2683_v43, 4  ;;  %v2692_v13 = vrot.slane %v2690_v60, 4  ;;  %v4250_v4 = vcombine.low %v5913_v5, %v5920_v17  ;;  %v2684_v14 = vsel %vm6128_vm13, %v4372_v1, %v2683_v43  ;;  %v6241_v43 = vld [vmem:[%s5792_s18 + $0x10] sm:$0xf] }
  0xd8   : > { %4886 = vmatmul.mubr.bf16.vlgmr.msra.gmra.mrb[0].mxu1 %v4248_v22  ;;  %v4251_v54 = vcombine.low %v5956_v6, %v5962_v10  ;;  %v4374_v61 = vrot.slane %v6178_v63, 9  ;;  %v2699_v5 = vrot.slane %v2697_v52, 4  ;;  %v2700_v20 = vrot.slane %v6037_v62, 5  ;;  %v5351_v6 = vld [vmem:[%s6811_s3 + $0x190] sm:$0xff]   ;;  %v1666_v22 = vld [vmem:[%s5792_s18] sm:$0xe] }
  0xd9   : > { %4902 = vmatpush3.bf16.msra.mxu1 %v6042_v19  ;;  %4889 = vmatprep.mubr.bf16.mxu1 %v4249_v2  ;;  %v5350_v19 = vld [vmem:[%s6811_s3 + $0x90] sm:$0xff]   ;;  %v4375_v47 = vrot.slane %v6188_v24, 9  ;;  %v2704_v23 = vrot.slane %v6078_v32, 5  ;;  %v2707_v27 = vrot.slane %v6083_v46, 5  ;;  %v4376_v3 = vrot.slane %v6191_v56, 9 }
  0xda   : > { %4903 = vmatprep.subr.bf16.mxu1 %v5346_v37  ;;  %v2711_v53 = vrot.slane %v6107_v58, 5  ;;  %v1695_v62 = vrot.slane %v6218_v57, 5  ;;  %v2687_v32 = vsel %vm6128_vm13, %v2685_v39, %v2686_v40  ;;  %v2691_v35 = vsel %vm6128_vm13, %v4373_v28, %v2690_v60  ;;  %v1669_v63 = vld [vmem:[%s5792_s18 + $0x24] sm:$0xe]  ;;  %v1671_v57 = vld [vmem:[%s5792_s18 + $0x3c] sm:$0xe] }
  0xdb   : > { %v2694_v46 = vsel %vm6128_vm13, %v2692_v13, %v2693_v34  ;;  %v4380_v0 = vcombine.low %v2684_v14, %v2687_v32  ;;  %v2706_v42 = vrot.slane %v2704_v23, 4  ;;  %v2714_v59 = vrot.slane %v6113_v41, 5  ;;  %v5358_v34 = vld [vmem:[%s6811_s3 + $0xa8] sm:$0xff]   ;;  %v5408_v32 = vld [vmem:[%s5792_s18 + $0x1c] sm:$0xf]  ;;  %v5363_v41 = vld [vmem:[%s6811_s3 + $0x1b0] sm:$0xff]  }
  0xdc   : > { %v4381_v2 = vcombine.low %v2691_v35, %v2694_v46  ;;  %v4263_v1 = vrot.slane %v1666_v22, 9  ;;  %v1702_v60 = vrot.slane %v6241_v43, 5  ;;  %v1716_v26 = vrot.slane %v5920_v17, 5  ;;  %v1673_v43 = vld [vmem:[%s5792_s18 + $0x54] sm:$0xe] }
  0xdd   : > { %5014 = vmatmul.mubr.bf16.vlgmr.msra.gmra.mrb[0].mxu0 %v4378_v33  ;;  %4904 = vmatpush3.bf16.msra.mxu1 %v5346_v37  ;;  %v6238_v37 = vrot.slane %v2711_v53, 4  ;;  %v1697_v36 = vrot.slane %v1695_v62, 4  ;;  %v1719_v40 = vrot.slane %v5923_v18, 5  ;;  %v4252_v28 = vcombine.low %v6005_v11, %v6008_v12 }
  0xde   : > { %5030 = vmatpush3.bf16.msra.mxu0 %v6072_v16  ;;  %5017 = vmatprep.mubr.bf16.mxu0 %v4379_v30  ;;  %v5353_v16 = vld [vmem:[%s6811_s3 + $0x198] sm:$0xff]   ;;  %v4253_v33 = vcombine.low %v6050_v44, %v6056_v49  ;;  %v4266_v17 = vrot.slane %v1669_v63, 9  ;;  %v1718_v24 = vrot.slane %v1716_v26, 4  ;;  %v2698_v18 = vsel %vm6128_vm13, %v4374_v61, %v2697_v52  ;;  %v5357_v30 = vld [vmem:[%s6811_s3 + $0x1a0] sm:$0xff]  }
  0xdf   : > { %5031 = vmatprep.subr.bf16.mxu0 %v5347_v50  ;;  %4905 = vmatprep.subr.bf16.mxu1 %v5350_v19  ;;  %v2701_v11 = vsel %vm6128_vm13, %v2699_v5, %v2700_v20  ;;  %v2705_v44 = vsel %vm6128_vm13, %v4375_v47, %v2704_v23  ;;  %v2708_v39 = vsel %vm6128_vm13, %v2706_v42, %v2707_v27  ;;  %v1723_v14 = vrot.slane %v5962_v10, 5  ;;  %v1670_v5 = vld [vmem:[%s5792_s18 + $0x30] sm:$0xe]  ;;  %v5359_v47 = vld [vmem:[%s6811_s3 + $0x1a8] sm:$0xff]  }
  0xe0   : > { %4890 = vmatmul.mubr.bf16.gmra.mrb[4].mxu1 %v4250_v4  ;;  %v6277_v52 = vsel %vm6128_vm13, %v4266_v17, %v1716_v26  ;;  %v6281_v13 = vsel %vm6128_vm13, %v1718_v24, %v1719_v40  ;;  %v4254_v61 = vcombine.low %v6086_v9, %v6089_v7  ;;  %v1726_v20 = vrot.slane %v5972_v31, 5  ;;  %v5362_v31 = vld [vmem:[%s6811_s3 + $0xb0] sm:$0xff]   ;;  %v6833_v40 = vld [vmem:[#allocation5_spill] sm:$0xff]  ;;  %v5365_v17 = vld [vmem:[%s6811_s3 + $0x1b8] sm:$0xff]  }
  0xe1   : > { %4906 = vmatpush3.bf16.msra.mxu1 %v5350_v19  ;;  %4893 = vmatprep.mubr.bf16.mxu1 %v4251_v54  ;;  %v4274_v19 = vcombine.low %v6277_v52, %v6281_v13  ;;  %v4382_v54 = vcombine.low %v2698_v18, %v2701_v11  ;;  %v4383_v10 = vcombine.low %v2705_v44, %v2708_v39  ;;  %v4267_v9 = vrot.slane %v1670_v5, 9  ;;  %v5378_v52 = vld [vmem:[%s5792_s18 + $0x48] sm:$0xff]   ;;  %v5379_v13 = vld [vmem:[%s6811_s3 + $0xe0] sm:$0xff]  }
  0xe2   : > { %5032 = vmatpush3.bf16.msra.mxu0 %v5347_v50  ;;  %4907 = vmatprep.subr.bf16.mxu1 %v5352_v45  ;;  %v6257_v50 = vld [vmem:[%s5792_s18 + $0xc] sm:$0xe]  ;;  %v1696_v23 = vsel %vm6128_vm13, %v4263_v1, %v1695_v62  ;;  %v1699_v27 = vsel %vm6128_vm13, %v1697_v36, %v1698_v8  ;;  %v1709_v35 = vrot.slane %v5408_v32, 5  ;;  %v1730_v46 = vrot.slane %v6008_v12, 5  ;;  %v6832_v62 = vld [vmem:[#allocation4_spill] sm:$0xff] }
  0xe3   : > { %5033 = vmatprep.subr.bf16.mxu0 %v5351_v6  ;;  %v4264_v4 = vrot.slane %v6257_v50, 9  ;;  %v1733_v22 = vrot.slane %v6832_v62, 5  ;;  %v2712_v12 = vsel %vm6128_vm13, %v4376_v3, %v2711_v53  ;;  %v5364_v8 = vld [vmem:[%s6811_s3 + $0xb8] sm:$0xff]   ;;  %v2715_v58 = vsel %vm6128_vm13, %v6238_v37, %v2714_v59  ;;  %v1672_v37 = vld [vmem:[%s5792_s18 + $0x48] sm:$0xe] }
  0xe4   : > { %v1732_v26 = vrot.slane %v1730_v46, 4  ;;  %v4271_v56 = vcombine.low %v1696_v23, %v1699_v27  ;;  %v1711_v53 = vrot.slane %v1709_v35, 4  ;;  %v1737_v63 = vrot.slane %v6056_v49, 5  ;;  %v6408_v27 = vld [vmem:[%s5792_s18 + $0x20] sm:$0x1] }
  0xe5   : > { %5018 = vmatmul.mubr.bf16.gmra.mrb[4].mxu0 %v4380_v0  ;;  %4908 = vmatpush3.bf16.msra.mxu1 %v5352_v45  ;;  %v1704_v45 = vrot.slane %v1702_v60, 4  ;;  %v4265_v0 = vrot.slane %v6273_v48, 9  ;;  %v1703_v49 = vsel %vm6128_vm13, %v4264_v4, %v1702_v60  ;;  %v1744_v11 = vrot.slane %v6089_v7, 5  ;;  %v5367_v7 = vld [vmem:[%s6811_s3 + $0xc0] sm:$0xff]  }
  0xe6   : > { %5034 = vmatpush3.bf16.msra.mxu0 %v5351_v6  ;;  %5021 = vmatprep.mubr.bf16.mxu0 %v4381_v2  ;;  %v1725_v6 = vrot.slane %v1723_v14, 4  ;;  %v4268_v2 = vrot.slane %v1671_v57, 9  ;;  %v6343_v36 = vsel %vm6128_vm13, %v1732_v26, %v1733_v22  ;;  %v1739_v50 = vrot.slane %v1737_v63, 4  ;;  %v5371_v57 = vld [vmem:[%s6811_s3 + $0x1c8] sm:$0xff]  }
  0xe7   : > { %5035 = vmatprep.subr.bf16.mxu0 %v5353_v16  ;;  %4909 = vmatprep.subr.bf16.mxu1 %v5356_v51  ;;  %v1706_v24 = vsel %vm6128_vm13, %v1704_v45, %v1705_v25  ;;  %v1710_v18 = vsel %vm6128_vm13, %v4265_v0, %v1709_v35  ;;  %v1747_v60 = vrot.slane %v6098_v21, 5  ;;  %v4270_v39 = vrot.slane %v1673_v43, 9  ;;  %v5370_v45 = vld [vmem:[%s6811_s3 + $0xc8] sm:$0xff]   ;;  %v4430_v0 = vld [vmem:[%s5792_s18 + $0x24] sm:$0xf] }
  0xe8   : > { %4894 = vmatmul.mubr.bf16.gmra.mrb[8].mxu1 %v4252_v28  ;;  %v6318_v15 = vsel %vm6128_vm13, %v1725_v6, %v1726_v20  ;;  %v6339_v3 = vsel %vm6128_vm13, %v4268_v2, %v1730_v46  ;;  %v1740_v28 = vrot.slane %v6833_v40, 5  ;;  %v1746_v48 = vrot.slane %v1744_v11, 4  ;;  %v5369_v20 = vld [vmem:[%s6811_s3 + $0x1c0] sm:$0xff]   ;;  %v5373_v46 = vld [vmem:[%s6811_s3 + $0xd0] sm:$0xff]   ;;  %v6429_v26 = vld [vmem:[%s5792_s18 + $0x28] sm:$0xf] }
  0xe9   : > { %4910 = vmatpush3.bf16.msra.mxu1 %v5356_v51  ;;  %4897 = vmatprep.mubr.bf16.mxu1 %v4253_v33  ;;  %v5409_v51 = vld [vmem:[%s5792_s18 + $0x20] sm:$0x1]  ;;  %v4276_v59 = vcombine.low %v6339_v3, %v6343_v36  ;;  %v4269_v33 = vrot.slane %v1672_v37, 9  ;;  %v4272_v4 = vcombine.low %v1703_v49, %v1706_v24  ;;  %v5368_v6 = vld [vmem:[%s5792_s18 + $0x24] sm:$0xff]   ;;  %v5375_v2 = vld [vmem:[%s6811_s3 + $0x1d0] sm:$0xff]  }
  0xea   : > { %5036 = vmatpush3.bf16.msra.mxu0 %v5353_v16  ;;  %4911 = vmatprep.subr.bf16.mxu1 %v5358_v34  ;;  %v6314_v16 = vsel %vm6128_vm13, %v4267_v9, %v1723_v14  ;;  %v1712_v42 = vrot.slane %v5409_v51, 5  ;;  %v6378_v25 = vsel %vm6128_vm13, %v1739_v50, %v1740_v28  ;;  %v6387_v14 = vsel %vm6128_vm13, %v4270_v39, %v1744_v11  ;;  %v5374_v37 = vld [vmem:[%s5792_s18 + $0x3c] sm:$0xff]   ;;  %v6448_v49 = vld [vmem:[%s5792_s18 + $0x34] sm:$0xf]  ;;  %v6471_v39 = vld [vmem:[%s5792_s18 + $0x38] sm:$0x1] }
  0xeb   : > { %5037 = vmatprep.subr.bf16.mxu0 %v5357_v30  ;;  %v4275_v1 = vcombine.low %v6314_v16, %v6318_v15  ;;  %v6374_v55 = vsel %vm6128_vm13, %v4269_v33, %v1737_v63  ;;  %v5377_v40 = vld [vmem:[%s6811_s3 + $0x1d8] sm:$0xff]   ;;  %v3228_v28 = vshll.u32 %v6429_v26, 16  ;;  %v3252_v43 = vshll.u32 %v6448_v49, 16 }
  0xec   : > { %v1713_v44 = vsel %vm6128_vm13, %v1711_v53, %v1712_v42  ;;  %v4277_v21 = vcombine.low %v6374_v55, %v6378_v25  ;;  %v3222_v53 = vshll.u32 %v4430_v0, 16  ;;  %v3256_v11 = vshrl.u32 %v6448_v49, 16  ;;  %v5383_v55 = vld [vmem:[%s6811_s3 + $0x1e8] sm:$0xff]   ;;  %v5385_v25 = vld [vmem:[%s6811_s3 + $0xf0] sm:$0xff]  }
  0xed   : > { %5022 = vmatmul.mubr.bf16.gmra.mrb[8].mxu0 %v4382_v54  ;;  %4912 = vmatpush3.bf16.msra.mxu1 %v5358_v34  ;;  %v4384_v34 = vcombine.low %v2712_v12, %v2715_v58  ;;  %v4273_v54 = vcombine.low %v1710_v18, %v1713_v44  ;;  %v5376_v12 = vld [vmem:[%s6811_s3 + $0xd8] sm:$0xff]   ;;  %v6432_v58 = vld [vmem:[%s5792_s18 + $0x2c] sm:$0x1]  ;;  %v3643_v38 = vrot.slane %v6448_v49, 5 }
  0xee   : > { %5038 = vmatpush3.bf16.msra.mxu0 %v5357_v30  ;;  %5025 = vmatprep.mubr.bf16.mxu0 %v4383_v10  ;;  %v5366_v30 = vld [vmem:[%s5792_s18 + $0x18] sm:$0xff]   ;;  %v3238_v50 = vshll.u32 %v6432_v58, 16  ;;  %v3639_v49 = vrot.slane %v6432_v58, 5 }
  0xef   : > { %5039 = vmatprep.subr.bf16.mxu0 %v5359_v47  ;;  %4913 = vmatprep.subr.bf16.mxu1 %v5362_v31  ;;  %v6403_v10 = vld [vmem:[%s5792_s18 + $0x1c] sm:$0xf] }
  0xf0   : > { %4898 = vmatmul.mubr.bf16.gmra.mrb[12].mxu1 %v4254_v61  ;;  %v6391_v61 = vsel %vm6128_vm13, %v1746_v48, %v1747_v60  ;;  %v3204_v32 = vshll.u32 %v6403_v10, 16  ;;  %v3208_v35 = vshrl.u32 %v6403_v10, 16  ;;  %v5381_v60 = vld [vmem:[%s6811_s3 + $0x1e0] sm:$0xff]  }
  0xf1   : > { %4914 = vmatpush3.bf16.msra.mxu1 %v5362_v31  ;;  %4917 = vmatprep.mubr.bf16.mxu1 %v4271_v56  ;;  %v4278_v5 = vcombine.low %v6387_v14, %v6391_v61  ;;  %v5372_v31 = vld [vmem:[%s5792_s18 + $0x30] sm:$0xff]   ;;  %v3219_v56 = vshrl.u32 %v4430_v0, 16  ;;  %v6515_v0 = vrot.slane %v3238_v50, 5 }
  0xf2   : > { %5040 = vmatpush3.bf16.msra.mxu0 %v5359_v47  ;;  %4915 = vmatprep.subr.bf16.mxu1 %v5364_v8  ;;  %v4427_v47 = vld [vmem:[%s5792_s18 + $0x18] sm:$0xf]  ;;  %v6426_v51 = vrot.slane %v3204_v32, 5  ;;  %v3210_v42 = vrot.slane %v3208_v35, 4 }
  0xf3   : > { %5041 = vmatprep.subr.bf16.mxu0 %v5363_v41  ;;  %v3195_v23 = vshrl.u32 %v4427_v47, 16  ;;  %v3198_v9 = vshll.u32 %v4427_v47, 16  ;;  %v3221_v15 = vrot.slane %v3219_v56, 4  ;;  %v5384_v47 = vld [vmem:[%s5792_s18 + $0x60] sm:$0xff]   ;;  %v5388_v56 = vld [vmem:[%s6811_s3 + $0xf8] sm:$0xff]  }
  0xf5   : > { %5026 = vmatmul.mubr.bf16.gmra.mrb[12].mxu0 %v4384_v34  ;;  %4916 = vmatpush3.bf16.msra.mxu1 %v5364_v8  ;;  %v3197_v62 = vrot.slane %v3195_v23, 4  ;;  %v3200_v22 = vrot.slane %v3198_v9, 5  ;;  %v3214_v8 = vshll.u32 %v6408_v27, 16  ;;  %v3232_v34 = vshrl.u32 %v6429_v26, 16 }
  0xf6   : > { %5042 = vmatpush3.bf16.msra.mxu0 %v5363_v41  ;;  %5045 = vmatprep.mubr.bf16.mxu0 %v5366_v30  ;;  %v4433_v41 = vld [vmem:[%s5792_s18 + $0x30] sm:$0xf]  ;;  %v6468_v30 = vrot.slane %v3228_v28, 5  ;;  %v6486_v9 = vrot.slane %v3252_v43, 5  ;;  %v6533_v28 = vld [vmem:[%s5792_s18 + $0x44] sm:$0x1] }
  0xf7   : > { %5043 = vmatprep.subr.bf16.mxu0 %v5365_v17  ;;  %4933 = vmatprep.subr.bf16.mxu1 %v5367_v7  ;;  %v3201_v63 = vor.u32 %v3200_v22, %v3197_v62  ;;  %v3243_v33 = vshrl.u32 %v4433_v41, 16  ;;  %v6455_v16 = vrot.slane %v3214_v8, 5  ;;  %v3246_v18 = vshll.u32 %v4433_v41, 16 }
  0xf8   : > { %4918 = vmatmul.mubr.bf16.vlgmr.msra.gmra.mrb[0].mxu1 %v4272_v4  ;;  %v3234_v44 = vrot.slane %v3232_v34, 4  ;;  %v4436_v4 = vld [vmem:[%s5792_s18 + $0x3c] sm:$0xf] }
  0xf9   : > { %4934 = vmatpush3.bf16.msra.mxu1 %v5367_v7  ;;  %4921 = vmatprep.mubr.bf16.mxu1 %v4273_v54  ;;  %v6461_v24 = vrot.slane %v3201_v63, 4  ;;  %v6475_v48 = vrot.slane %v3243_v33, 4  ;;  %v3248_v23 = vrot.slane %v3246_v18, 5  ;;  %v3267_v35 = vshrl.u32 %v4436_v4, 16  ;;  %v5386_v33 = vld [vmem:[%s5792_s18 + $0x6c] sm:$0xff]  }
  0xfa   : > { %5044 = vmatpush3.bf16.msra.mxu0 %v5365_v17  ;;  %4935 = vmatprep.subr.bf16.mxu1 %v5370_v45  ;;  %v5382_v17 = vld [vmem:[%s6811_s3 + $0xe8] sm:$0xff]   ;;  %v3235_v32 = vor.u32 %v3234_v44, %v6468_v30  ;;  %v3270_v3 = vshll.u32 %v4436_v4, 16 }
  0xfb   : > { %5061 = vmatprep.subr.bf16.mxu0 %v5369_v20  ;;  %v3249_v41 = vor.u32 %v3248_v23, %v6475_v48  ;;  %v3269_v34 = vrot.slane %v3267_v35, 4  ;;  %v5391_v48 = vld [vmem:[%s5792_s18 + $0x18] sm:$0xff]   ;;  %v6571_v35 = vld [vmem:[%s5792_s18 + $0x64] sm:$0xf] }
  0xfc   : > { %v6526_v63 = vrot.slane %v3235_v32, 4  ;;  %v4445_v32 = vld [vmem:[%s5792_s18 + $0x60] sm:$0xf] }
  0xfd   : > { %5046 = vmatmul.mubr.bf16.vlgmr.msra.gmra.mrb[0].mxu0 %v5368_v6  ;;  %4936 = vmatpush3.bf16.msra.mxu1 %v5370_v45  ;;  %v6479_v45 = vld [vmem:[%s5792_s18 + $0x40] sm:$0xf]  ;;  %v3258_v6 = vrot.slane %v3256_v11, 4  ;;  %v3250_v43 = vrot.slane %v3249_v41, 4  ;;  %v3286_v11 = vshll.u32 %v6533_v28, 16 }
  0xfe   : > { %5062 = vmatpush3.bf16.msra.mxu0 %v5369_v20  ;;  %5049 = vmatprep.mubr.bf16.mxu0 %v5372_v31  ;;  %v5380_v20 = vld [vmem:[%s5792_s18 + $0x54] sm:$0xff]   ;;  %v3262_v31 = vshll.u32 %v6471_v39, 16  ;;  %v3276_v36 = vshll.u32 %v6479_v45, 16  ;;  %v6599_v41 = vld [vmem:[%s5792_s18 + $0x5c] sm:$0x1] }
  0xff   : > { %5063 = vmatprep.subr.bf16.mxu0 %v5371_v57  ;;  %4937 = vmatprep.subr.bf16.mxu1 %v5373_v46 }
 0x100   : > { %4922 = vmatmul.mubr.bf16.gmra.mrb[4].mxu1 %v4274_v19  ;;  %v3211_v19 = vor.u32 %v3210_v42, %v6426_v51 }
 0x101   : > { %4938 = vmatpush3.bf16.msra.mxu1 %v5373_v46  ;;  %4925 = vmatprep.mubr.bf16.mxu1 %v4275_v1  ;;  %v3224_v1 = vrot.slane %v3222_v53, 5  ;;  %v6497_v46 = vld [vmem:[%s5792_s18 + $0x4c] sm:$0xf] }
 0x102   : > { %5064 = vmatpush3.bf16.msra.mxu0 %v5371_v57  ;;  %4939 = vmatprep.subr.bf16.mxu1 %v5376_v12  ;;  %v6473_v7 = vrot.slane %v3211_v19, 4  ;;  %v4439_v57 = vld [vmem:[%s5792_s18 + $0x48] sm:$0xf]  ;;  %v3300_v8 = vshll.u32 %v6497_v46, 16  ;;  %v3304_v42 = vshrl.u32 %v6497_v46, 16  ;;  %v5390_v53 = vld [vmem:[%s5792_s18 + $0xc] sm:$0xff]  }
 0x103   : > { %5065 = vmatprep.subr.bf16.mxu0 %v5375_v2  ;;  %v3225_v54 = vor.u32 %v3224_v1, %v3221_v15 }
 0x104   : > { %v3217_v62 = vsel %vm5831_vm10, %v6473_v7, %v6455_v16  ;;  %v6539_v16 = vld [vmem:[%s5792_s18 + $0x50] sm:$0x1]  ;;  %v6544_v50 = vrot.slane %v3300_v8, 5  ;;  %v6554_v7 = vld [vmem:[%s5792_s18 + $0x58] sm:$0xf] }
 0x105   : > { %5050 = vmatmul.mubr.bf16.gmra.mrb[4].mxu0 %v5374_v37  ;;  %4940 = vmatpush3.bf16.msra.mxu1 %v5376_v12  ;;  %v6513_v22 = vrot.slane %v3225_v54, 4  ;;  %v3294_v12 = vshll.u32 %v4439_v57, 16  ;;  %v3259_v37 = vor.u32 %v3258_v6, %v6486_v9  ;;  %v3310_v44 = vshll.u32 %v6539_v16, 16 }
 0x106   : > { %5066 = vmatpush3.bf16.msra.mxu0 %v5375_v2  ;;  %5053 = vmatprep.mubr.bf16.mxu0 %v5378_v52  ;;  %v3291_v2 = vshrl.u32 %v4439_v57, 16  ;;  %v3272_v52 = vrot.slane %v3270_v3, 5  ;;  %v3241_v54 = vsel %vm5831_vm10, %v6526_v63, %v6515_v0  ;;  %v3255_v3 = vsel %vm5831_vm10, %v3250_v43, %v6486_v9  ;;  %v6596_v63 = vld [vmem:[%s6811_s3 + $0x210] sm:$0xff]  }
 0x107   : > { %5067 = vmatprep.subr.bf16.mxu0 %v5377_v40  ;;  %4941 = vmatprep.subr.bf16.mxu1 %v5379_v13  ;;  %v3296_v1 = vrot.slane %v3294_v12, 5  ;;  %v3260_v14 = vrot.slane %v3259_v37, 4  ;;  %v3231_v4 = vsel %vm5831_vm10, %v6513_v22, %v6468_v30  ;;  %v5394_v30 = vld [vmem:[%s5792_s18 + $0x24] sm:$0xff]   ;;  %v3328_v57 = vshrl.u32 %v6554_v7, 16 }
 0x108   : > { %4926 = vmatmul.mubr.bf16.gmra.mrb[8].mxu1 %v4276_v59  ;;  %v3280_v59 = vshrl.u32 %v6479_v45, 16  ;;  %v3293_v15 = vrot.slane %v3291_v2, 4  ;;  %v3273_v61 = vor.u32 %v3272_v52, %v3269_v34  ;;  %v6589_v9 = vrot.slane %v3310_v44, 5  ;;  %v4448_v52 = vld [vmem:[%s5792_s18 + $0x6c] sm:$0xf] }
 0x109   : > { %4942 = vmatpush3.bf16.msra.mxu1 %v5379_v13  ;;  %4929 = vmatprep.mubr.bf16.mxu1 %v4277_v21  ;;  %v3207_v21 = vsel %vm5831_vm10, %v6461_v24, %v6426_v51  ;;  %v5387_v51 = vld [vmem:[%s6811_s3 + $0x1f0] sm:$0xff]   ;;  %v6535_v13 = vrot.slane %v3276_v36, 5  ;;  %v5389_v24 = vld [vmem:[%s6811_s3 + $0x1f8] sm:$0xff]   ;;  %v6577_v36 = vrot.slane %v3286_v11, 5  ;;  %v3339_v22 = vshrl.u32 %v4445_v32, 16 }
 0x10a   : > { %5068 = vmatpush3.bf16.msra.mxu0 %v5377_v40  ;;  %4943 = vmatprep.subr.bf16.mxu1 %v5382_v17  ;;  %v6530_v40 = vrot.slane %v3262_v31, 5  ;;  %v3282_v19 = vrot.slane %v3280_v59, 4  ;;  %v4451_v18 = vcombine.low %v3207_v21, %v3217_v62  ;;  %v3324_v59 = vshll.u32 %v6554_v7, 16 }
 0x10b   : > { %5069 = vmatprep.subr.bf16.mxu0 %v5381_v60  ;;  %v3274_v21 = vrot.slane %v3273_v61, 4  ;;  %v3342_v0 = vshll.u32 %v4445_v32, 16  ;;  %v3348_v2 = vshll.u32 %v6571_v35, 16  ;;  %v3352_v12 = vshrl.u32 %v6571_v35, 16 }
 0x10c   : > { %v6601_v37 = vrot.slane %v3324_v59, 5  ;;  %v3363_v61 = vshrl.u32 %v4448_v52, 16 }
 0x10d   : > { %5054 = vmatmul.mubr.bf16.gmra.mrb[8].mxu0 %v5380_v20  ;;  %4944 = vmatpush3.bf16.msra.mxu1 %v5382_v17  ;;  %v3306_v17 = vrot.slane %v3304_v42, 4  ;;  %v5392_v20 = vld [vmem:[%s6811_s3 + $0x200] sm:$0xff]   ;;  %v3279_v43 = vsel %vm5831_vm10, %v3274_v21, %v6535_v13 }
 0x10e   : > { %5070 = vmatpush3.bf16.msra.mxu0 %v5381_v60  ;;  %5057 = vmatprep.mubr.bf16.mxu0 %v5384_v47  ;;  %v4442_v60 = vld [vmem:[%s5792_s18 + $0x54] sm:$0xf]  ;;  %v3297_v47 = vor.u32 %v3296_v1, %v3293_v15  ;;  %v3344_v15 = vrot.slane %v3342_v0, 5  ;;  %v6608_v1 = vrot.slane %v3348_v2, 5 }
 0x10f   : > { %5071 = vmatprep.subr.bf16.mxu0 %v5383_v55  ;;  %4945 = vmatprep.subr.bf16.mxu1 %v5385_v25  ;;  %v3307_v23 = vor.u32 %v3306_v17, %v6544_v50  ;;  %v3315_v6 = vshrl.u32 %v4442_v60, 16  ;;  %v3318_v31 = vshll.u32 %v4442_v60, 16  ;;  %v3354_v17 = vrot.slane %v3352_v12, 4  ;;  %v6618_v60 = vld [vmem:[%s5792_s18 + $0x68] sm:$0x1] }
 0x110   : > { %4930 = vmatmul.mubr.bf16.gmra.mrb[12].mxu1 %v4278_v5  ;;  %v3283_v5 = vor.u32 %v3282_v19, %v6535_v13  ;;  %v3298_v8 = vrot.slane %v3297_v47, 4  ;;  %v6606_v19 = vld [vmem:[%s5792_s18 + $0x70] sm:$0xf]  ;;  %v6627_v13 = vld [vmem:[%s6811_s3 + $0x218] sm:$0xff]   ;;  %v3334_v47 = vshll.u32 %v6599_v41, 16 }
 0x111   : > { %4946 = vmatpush3.bf16.msra.mxu1 %v5385_v25  ;;  %4949 = vmatprep.mubr.bf16.mxu1 %v5390_v53  ;;  %v3265_v25 = vsel %vm5831_vm10, %v3260_v14, %v6530_v40  ;;  %v3308_v42 = vrot.slane %v3307_v23, 4  ;;  %v4452_v53 = vcombine.low %v3231_v4, %v3241_v54  ;;  %v3330_v40 = vrot.slane %v3328_v57, 4  ;;  %v5398_v14 = vld [vmem:[%s5792_s18 + $0x3c] sm:$0xff]   ;;  %v4471_v12 = vld [vmem:[%s5792_s18 + $0x48] sm:$0xe] }
 0x112   : > { %5072 = vmatpush3.bf16.msra.mxu0 %v5383_v55  ;;  %4947 = vmatprep.subr.bf16.mxu1 %v5388_v56  ;;  %v6584_v55 = vld [vmem:[%s6811_s3 + $0x208] sm:$0xff]   ;;  %v3284_v62 = vrot.slane %v3283_v5, 4  ;;  %v4453_v34 = vcombine.low %v3255_v3, %v3265_v25  ;;  %v3366_v5 = vshll.u32 %v4448_v52, 16  ;;  %v3372_v44 = vshll.u32 %v6606_v19, 16 }
 0x113   : > { %5073 = vmatprep.subr.bf16.mxu0 %v5387_v51  ;;  %v3303_v4 = vsel %vm5831_vm10, %v3298_v8, %v6544_v50  ;;  %v3331_v54 = vor.u32 %v3330_v40, %v6601_v37  ;;  %v3336_v21 = vrot.slane %v3334_v47, 5  ;;  %v5399_v8 = vld [vmem:[%s5792_s18 + $0x48] sm:$0xff]  }
 0x114   : > { %v3368_v3 = vrot.slane %v3366_v5, 5  ;;  %v5401_v52 = vld [vmem:[%s6811_s3 + $0x228] sm:$0xff]  }
 0x115   : > { %5058 = vmatmul.mubr.bf16.gmra.mrb[12].mxu0 %v5386_v33  ;;  %4948 = vmatpush3.bf16.msra.mxu1 %v5388_v56  ;;  %v3320_v56 = vrot.slane %v3318_v31, 5  ;;  %v3341_v33 = vrot.slane %v3339_v22, 4  ;;  %v3358_v31 = vshll.u32 %v6618_v60, 16  ;;  %v3332_v25 = vrot.slane %v3331_v54, 4  ;;  %v5400_v22 = vld [vmem:[%s6811_s3 + $0x220] sm:$0xff]  }
 0x116   : > { %5074 = vmatpush3.bf16.msra.mxu0 %v5387_v51  ;;  %5077 = vmatprep.mubr.bf16.mxu0 %v4451_v18  ;;  %v3317_v51 = vrot.slane %v3315_v6, 4  ;;  %v5395_v18 = vld [vmem:[%s5792_s18 + $0x30] sm:$0xff]   ;;  %v3355_v6 = vor.u32 %v3354_v17, %v6608_v1  ;;  %v4473_v54 = vld [vmem:[%s5792_s18 + $0x60] sm:$0xe] }
 0x117   : > { %5075 = vmatprep.subr.bf16.mxu0 %v5389_v24  ;;  %5125 = vmatprep.subr.bf16.mxu1 %v5392_v20  ;;  %v3345_v23 = vor.u32 %v3344_v15, %v3341_v33  ;;  %v4479_v33 = vrot.slane %v4471_v12, 9 }
 0x118   : > { %4950 = vmatmul.mubr.bf16.vlgmr.msra.gmra.mrb[0].mxu1 %v5391_v48  ;;  %v3321_v11 = vor.u32 %v3320_v56, %v3317_v51  ;;  %v3376_v48 = vshrl.u32 %v6606_v19, 16  ;;  %v3356_v2 = vrot.slane %v3355_v6, 4  ;;  %v5402_v51 = vld [vmem:[%s5792_s18 + $0x54] sm:$0xff]  }
 0x119   : > { %5133 = vmatpush3.bf16.msra.mxu1 %v5392_v20  ;;  %4953 = vmatprep.mubr.bf16.mxu1 %v5394_v30  ;;  %v3365_v30 = vrot.slane %v3363_v61, 4  ;;  %v3346_v0 = vrot.slane %v3345_v23, 4 }
 0x11a   : > { %5076 = vmatpush3.bf16.msra.mxu0 %v5389_v24  ;;  %5126 = vmatprep.subr.bf16.mxu1 %v6584_v55  ;;  %v3289_v24 = vsel %vm5831_vm10, %v3284_v62, %v6577_v36  ;;  %v3322_v32 = vrot.slane %v3321_v11, 4  ;;  %v6642_v36 = vrot.slane %v3372_v44, 5  ;;  %v3378_v59 = vrot.slane %v3376_v48, 4  ;;  %v6647_v62 = vld [vmem:[%s5792_s18 + $0x74] sm:$0x1] }
 0x11b   : > { %5093 = vmatprep.subr.bf16.mxu0 %v5392_v20  ;;  %v4454_v50 = vcombine.low %v3279_v43, %v3289_v24  ;;  %v3369_v56 = vor.u32 %v3368_v3, %v3365_v30  ;;  %v3382_v40 = vshll.u32 %v6647_v62, 16  ;;  %v3351_v17 = vsel %vm5831_vm10, %v3346_v0, %v6608_v1  ;;  %v5405_v30 = vld [vmem:[%s6811_s3 + $0x238] sm:$0xff]  }
 0x11c   : > { %v3632_v11 = vrot.slane %v6408_v27, 5  ;;  %v4472_v27 = vld [vmem:[%s5792_s18 + $0x54] sm:$0xe]  ;;  %v3671_v48 = vrot.slane %v6571_v35, 5  ;;  %v3636_v3 = vrot.slane %v6429_v26, 5  ;;  %v3681_v58 = vrot.slane %v6647_v62, 5 }
 0x11d   : > { %5078 = vmatmul.mubr.bf16.vlgmr.msra.gmra.mrb[0].mxu0 %v4452_v53  ;;  %5134 = vmatpush3.bf16.msra.mxu1 %v6584_v55  ;;  %v3379_v53 = vor.u32 %v3378_v59, %v6642_v36  ;;  %v3384_v5 = vrot.slane %v3382_v40, 5  ;;  %v4481_v59 = vrot.slane %v4473_v54, 9 }
 0x11e   : > { %5094 = vmatpush3.bf16.msra.mxu0 %v5392_v20  ;;  %5081 = vmatprep.mubr.bf16.mxu0 %v4453_v34  ;;  %v3313_v20 = vsel %vm5831_vm10, %v3308_v42, %v6589_v9  ;;  %v3657_v9 = vrot.slane %v6497_v46, 5  ;;  %v3629_v42 = vrot.slane %v6403_v10, 5  ;;  %v3327_v46 = vsel %vm5831_vm10, %v3322_v32, %v6601_v37  ;;  %v4467_v34 = vld [vmem:[%s5792_s18 + $0x18] sm:$0xe]  ;;  %v4468_v32 = vld [vmem:[%s5792_s18 + $0x24] sm:$0xe] }
 0x11f   : > { %5095 = vmatprep.subr.bf16.mxu0 %v6584_v55  ;;  %5127 = vmatprep.subr.bf16.mxu1 %v6596_v63  ;;  %v4455_v57 = vcombine.low %v3303_v4, %v3313_v20  ;;  %v3337_v10 = vsel %vm5831_vm10, %v3332_v25, %v3336_v21  ;;  %v3660_v37 = vrot.slane %v6539_v16, 5  ;;  %v4475_v43 = vrot.slane %v4467_v34, 9  ;;  %v5404_v4 = vld [vmem:[%s6811_s3 + $0x230] sm:$0xff]   ;;  %v5403_v20 = vld [vmem:[%s5792_s18 + $0x60] sm:$0xff]  }
 0x120   : > { %4954 = vmatmul.mubr.bf16.gmra.mrb[4].mxu1 %v5395_v18  ;;  %v3659_v15 = vrot.slane %v3657_v9, 4  ;;  %v3664_v18 = vrot.slane %v6554_v7, 5  ;;  %v3631_v24 = vrot.slane %v3629_v42, 4  ;;  %v4456_v16 = vcombine.low %v3327_v46, %v3337_v10 }
 0x121   : > { %5135 = vmatpush3.bf16.msra.mxu1 %v6596_v63  ;;  %4957 = vmatprep.mubr.bf16.mxu1 %v5398_v14  ;;  %v3370_v14 = vrot.slane %v3369_v56, 4  ;;  %v3380_v61 = vrot.slane %v3379_v53, 4  ;;  %v3658_v44 = vsel %vm6128_vm13, %v4479_v33, %v3657_v9  ;;  %v3630_v23 = vsel %vm6128_vm13, %v4475_v43, %v3629_v42  ;;  %v4469_v9 = vld [vmem:[%s5792_s18 + $0x30] sm:$0xe] }
 0x122   : > { %5096 = vmatpush3.bf16.msra.mxu0 %v6584_v55  ;;  %5128 = vmatprep.subr.bf16.mxu1 %v6627_v13  ;;  %v3360_v55 = vrot.slane %v3358_v31, 5  ;;  %v3661_v7 = vsel %vm6128_vm13, %v3659_v15, %v3660_v37  ;;  %v3666_v47 = vrot.slane %v3664_v18, 4  ;;  %v3633_v6 = vsel %vm6128_vm13, %v3631_v24, %v3632_v11  ;;  %v4470_v15 = vld [vmem:[%s5792_s18 + $0x3c] sm:$0xe] }
 0x123   : > { %5097 = vmatprep.subr.bf16.mxu0 %v6596_v63  ;;  %v3375_v35 = vsel %vm5831_vm10, %v3370_v14, %v6642_v36  ;;  %v3385_v31 = vsel %vm5831_vm10, %v3380_v61, %v3384_v5  ;;  %v3674_v25 = vrot.slane %v6618_v60, 5  ;;  %v4476_v36 = vrot.slane %v4468_v32, 9 }
 0x124   : > { %v4483_v0 = vcombine.low %v3630_v23, %v3633_v6  ;;  %v3678_v60 = vrot.slane %v6606_v19, 5  ;;  %v4477_v42 = vrot.slane %v4469_v9, 9  ;;  %v3645_v46 = vrot.slane %v3643_v38, 4 }
 0x125   : > { %5082 = vmatmul.mubr.bf16.gmra.mrb[4].mxu0 %v4454_v50  ;;  %5136 = vmatpush3.bf16.msra.mxu1 %v6627_v13  ;;  %v4487_v50 = vcombine.low %v3658_v44, %v3661_v7  ;;  %v3637_v34 = vsel %vm6128_vm13, %v4476_v36, %v3636_v3  ;;  %v3653_v43 = vrot.slane %v6533_v28, 5 }
 0x126   : > { %5098 = vmatpush3.bf16.msra.mxu0 %v6596_v63  ;;  %5085 = vmatprep.mubr.bf16.mxu0 %v4455_v57  ;;  %v3361_v63 = vsel %vm5831_vm10, %v3356_v2, %v3360_v55  ;;  %v3673_v57 = vrot.slane %v3671_v48, 4  ;;  %v3638_v2 = vrot.slane %v3636_v3, 4  ;;  %v3672_v55 = vsel %vm6128_vm13, %v4481_v59, %v3671_v48 }
 0x127   : > { %5099 = vmatprep.subr.bf16.mxu0 %v6627_v13  ;;  %5129 = vmatprep.subr.bf16.mxu1 %v5400_v22  ;;  %v4457_v1 = vcombine.low %v3351_v17, %v3361_v63  ;;  %v3680_v40 = vrot.slane %v3678_v60, 4 }
 0x128   : > { %4958 = vmatmul.mubr.bf16.gmra.mrb[8].mxu1 %v5399_v8  ;;  %v3675_v12 = vsel %vm6128_vm13, %v3673_v57, %v3674_v25  ;;  %v4474_v8 = vld [vmem:[%s5792_s18 + $0x6c] sm:$0xe]  ;;  %v3640_v10 = vsel %vm6128_vm13, %v3638_v2, %v3639_v49 }
 0x129   : > { %5137 = vmatpush3.bf16.msra.mxu1 %v5400_v22  ;;  %4961 = vmatprep.mubr.bf16.mxu1 %v5402_v51  ;;  %v3646_v51 = vrot.slane %v6471_v39, 5  ;;  %v4489_v19 = vcombine.low %v3672_v55, %v3675_v12  ;;  %v4482_v53 = vrot.slane %v4474_v8, 9  ;;  %v3644_v39 = vsel %vm6128_vm13, %v4477_v42, %v3643_v38 }
 0x12a   : > { %5100 = vmatpush3.bf16.msra.mxu0 %v6627_v13  ;;  %5130 = vmatprep.subr.bf16.mxu1 %v5401_v52  ;;  %v3667_v13 = vrot.slane %v6599_v41, 5  ;;  %v4480_v41 = vrot.slane %v4472_v27, 9  ;;  %v4484_v62 = vcombine.low %v3637_v34, %v3640_v10  ;;  %v3682_v17 = vsel %vm6128_vm13, %v3680_v40, %v3681_v58 }
 0x12b   : > { %5101 = vmatprep.subr.bf16.mxu0 %v5400_v22  ;;  %v3647_v33 = vsel %vm6128_vm13, %v3645_v46, %v3646_v51  ;;  %v3679_v37 = vsel %vm6128_vm13, %v4482_v53, %v3678_v60 }
 0x12c   : > { %v3668_v21 = vsel %vm6128_vm13, %v3666_v47, %v3667_v13  ;;  %v3665_v26 = vsel %vm6128_vm13, %v4480_v41, %v3664_v18  ;;  %v4485_v63 = vcombine.low %v3644_v39, %v3647_v33  ;;  %v4490_v24 = vcombine.low %v3679_v37, %v3682_v17 }
 0x12d   : > { %5086 = vmatmul.mubr.bf16.gmra.mrb[8].mxu0 %v4456_v16  ;;  %5138 = vmatpush3.bf16.msra.mxu1 %v5401_v52  ;;  %v4488_v56 = vcombine.low %v3665_v26, %v3668_v21 }
 0x12e   : > { %5102 = vmatpush3.bf16.msra.mxu0 %v5400_v22  ;;  %5089 = vmatprep.mubr.bf16.mxu0 %v4457_v1  ;;  %v4458_v22 = vcombine.low %v3375_v35, %v3385_v31 }
 0x12f   : > { %5103 = vmatprep.subr.bf16.mxu0 %v5401_v52  ;;  %5131 = vmatprep.subr.bf16.mxu1 %v5404_v4 }
 0x130   : > { %4962 = vmatmul.mubr.bf16.gmra.mrb[12].mxu1 %v5403_v20 }
 0x131   : > { %5139 = vmatpush3.bf16.msra.mxu1 %v5404_v4  ;;  %5117 = vmatprep.mubr.bf16.mxu1 %v4487_v50 }
 0x132   : > { %5104 = vmatpush3.bf16.msra.mxu0 %v5401_v52  ;;  %5132 = vmatprep.subr.bf16.mxu1 %v5405_v30  ;;  %v3650_v52 = vrot.slane %v6479_v45, 5  ;;  %v4478_v45 = vrot.slane %v4470_v15, 9 }
 0x133   : > { %5105 = vmatprep.subr.bf16.mxu0 %v5404_v4 }
 0x134   : > { %v3652_v18 = vrot.slane %v3650_v52, 4  ;;  %v3651_v11 = vsel %vm6128_vm13, %v4478_v45, %v3650_v52 }
 0x135   : > { %5090 = vmatmul.mubr.bf16.gmra.mrb[12].mxu0 %v4458_v22  ;;  %5140 = vmatpush3.bf16.msra.mxu1 %v5405_v30 }
 0x136   : > { %5106 = vmatpush3.bf16.msra.mxu0 %v5404_v4  ;;  %5109 = vmatprep.mubr.bf16.mxu0 %v4483_v0  ;;  %v3654_v16 = vsel %vm6128_vm13, %v3652_v18, %v3653_v43 }
 0x137   : > { %5107 = vmatprep.subr.bf16.mxu0 %v5405_v30  ;;  %v4486_v14 = vcombine.low %v3651_v11, %v3654_v16 }
 0x138   : > { %5118 = vmatmul.mubr.bf16.vlgmr.msra.gmra.mrb[16].mxu1 %v4488_v56 }
 0x139   : > { %5121 = vmatprep.mubr.bf16.mxu1 %v4489_v19 }
 0x13a   : > { %5108 = vmatpush3.bf16.msra.mxu0 %v5405_v30 }
 0x13d   : > { %5110 = vmatmul.mubr.bf16.vlgmr.msra.gmra.mrb[0].mxu0 %v4484_v62 }
 0x13e   : > { %5113 = vmatprep.mubr.bf16.mxu0 %v4485_v63 }
 0x140   : > { %5122 = vmatmul.mubr.bf16.gmra.mrb[20].mxu1 %v4490_v24 }
 0x145   : > { %5114 = vmatmul.mubr.bf16.gmra.mrb[4].mxu0 %v4486_v14 }
 0x1eb   : > { %v4951_v61 = vpop.f32.mrb[0].mxu1 }
 0x1ec   : > { %v2124_v5 = vpop.f32.mrb[1].mxu1 }
 0x1ed   : > { %v4952_v1 = vpop.f32.mrb[2].mxu1 }
 0x1ee   : > { %v2127_v44 = vpop.f32.mrb[3].mxu1 }
 0x1f3   : > { %v6742_v7 = vpop.f32.mrb[4].mxu1 }
 0x1f4   : > { %v6744_v27 = vpop.f32.mrb[5].mxu1 }
 0x1f5   : > { %v6746_v28 = vpop.f32.mrb[6].mxu1 }
 0x1f6   : > { %v6748_v48 = vpop.f32.mrb[7].mxu1 }
 0x1fb   : > { %v4959_v4 = vpop.f32.mrb[8].mxu1 }
 0x1fc   : > { %v2156_v54 = vpop.f32.mrb[9].mxu1 }
 0x1fd   : > { %v4960_v47 = vpop.f32.mrb[10].mxu1 }
 0x1fe   : > { %v2159_v29 = vpop.f32.mrb[11].mxu1 }
 0x200   : > { %v5087_v13 = vpop.f32.mrb[8].mxu0 }
 0x201   : > { %v5149_v20 = vadd.f32 %v5087_v13, %v4959_v4  ;;  %v3548_v23 = vpop.f32.mrb[9].mxu0 }
 0x202   : > { %v5151_v6 = vadd.f32 %v3548_v23, %v2156_v54  ;;  %v5088_v35 = vpop.f32.mrb[10].mxu0 }
 0x203   : > { %v5153_v31 = vadd.f32 %v5088_v35, %v4960_v47  ;;  %v3551_v50 = vpop.f32.mrb[11].mxu0  ;;  %v4963_v32 = vpop.f32.mrb[12].mxu1 }
 0x204   : > { %v5155_v41 = vadd.f32 %v3551_v50, %v2159_v29  ;;  %v2172_v30 = vpop.f32.mrb[13].mxu1 }
 0x205   : > { %v4964_v3 = vpop.f32.mrb[14].mxu1 }
 0x206   : > { %v2175_v59 = vpop.f32.mrb[15].mxu1 }
 0x208   : > { %v5091_v57 = vpop.f32.mrb[12].mxu0 }
 0x209   : > { %v5157_v25 = vadd.f32 %v5091_v57, %v4963_v32  ;;  %v3564_v38 = vpop.f32.mrb[13].mxu0 }
 0x20a   : > { %v5159_v36 = vadd.f32 %v3564_v38, %v2172_v30  ;;  %v5092_v21 = vpop.f32.mrb[14].mxu0 }
 0x20b   : > { %v5161_v9 = vadd.f32 %v5092_v21, %v4964_v3  ;;  %v3567_v22 = vpop.f32.mrb[15].mxu0  ;;  %v5119_v0 = vpop.f32.mrb[16].mxu1 }
 0x20c   : > { %v5163_v26 = vadd.f32 %v3567_v22, %v2175_v59  ;;  %v6750_v60 = vadd.f32 %v5149_v20, %v5119_v0  ;;  %v3845_v2 = vpop.f32.mrb[17].mxu1 }
 0x20d   : > { %v6752_v49 = vadd.f32 %v5151_v6, %v3845_v2  ;;  %v5120_v55 = vpop.f32.mrb[18].mxu1 }
 0x20e   : > { %v6754_v12 = vadd.f32 %v5153_v31, %v5120_v55  ;;  %v3848_v8 = vpop.f32.mrb[19].mxu1 }
 0x20f   : > { %v6756_v42 = vadd.f32 %v5155_v41, %v3848_v8  ;;  %v4001_v22 = vmul.f32 %v6752_v49, %v6752_v49  ;;  %v4003_v8 = vmul.f32 %v6750_v60, %v6750_v60 }
 0x210   : > { %v5111_v46 = vpop.f32.mrb[0].mxu0  ;;  %v4659_v51 = vpack.c.bf16 %v6754_v12, %v6750_v60 }
 0x211   : > { %v5141_v56 = vadd.f32 %v5111_v46, %v4951_v61  ;;  %v3813_v19 = vpop.f32.mrb[1].mxu0  ;;  %v4654_v53 = vpack.c.bf16 %v6756_v42, %v6752_v49 }
 0x212   : > { %v5142_v40 = vadd.f32 %v3813_v19, %v2124_v5  ;;  %v5112_v58 = vpop.f32.mrb[2].mxu0  ;;  %4690 = vst [vmem:[%s5523_s11 + $0x28] sm:$0xff] %v4659_v51  }
 0x213   : > { %v5143_v34 = vadd.f32 %v5112_v58, %v4952_v1  ;;  %v3816_v10 = vpop.f32.mrb[3].mxu0  ;;  %4689 = vst [vmem:[%s5523_s11 + $0x20] sm:$0xff] %v4654_v53   ;;  %v5123_v52 = vpop.f32.mrb[20].mxu1  ;;  %v3995_v14 = vmul.f32 %v5141_v56, %v5141_v56 }
 0x214   : > { %v5144_v39 = vadd.f32 %v3816_v10, %v2127_v44  ;;  %v6764_v33 = vadd.f32 %v5157_v25, %v5123_v52  ;;  %v3861_v15 = vpop.f32.mrb[21].mxu1  ;;  %v3993_v63 = vmul.f32 %v5142_v40, %v5142_v40 }
 0x215   : > { %v4639_v62 = vpack.c.bf16 %v5143_v34, %v5141_v56  ;;  %v5160_v37 = vadd.f32 %v5159_v36, %v3861_v15  ;;  %v5124_v17 = vpop.f32.mrb[22].mxu1  ;;  %v3996_v29 = vmul.f32 %v5143_v34, %v5143_v34 }
 0x216   : > { %v4634_v45 = vpack.c.bf16 %v5144_v39, %v5142_v40  ;;  %v3972_v18 = vadd.f32 %v5144_v39, %v5142_v40  ;;  %v3994_v43 = vmul.f32 %v5144_v39, %v5144_v39  ;;  %v3864_v24 = vpop.f32.mrb[23].mxu1  ;;  %v5162_v11 = vadd.f32 %v5161_v9, %v5124_v17 }
 0x217   : > { %4686 = vst [vmem:[%s5523_s11 + $0x8] sm:$0xff] %v4639_v62   ;;  %v5164_v16 = vadd.f32 %v5163_v26, %v3864_v24 }
 0x218   : > { %4635 = vst [vmem:[%s5523_s11] sm:$0xff] %v4634_v45   ;;  %v3973_v61 = vadd.f32 %v5141_v56, %v3972_v18  ;;  %v4009_v5 = vadd.f32 %v3994_v43, %v3993_v63  ;;  %v5115_v1 = vpop.f32.mrb[4].mxu0  ;;  %v4669_v54 = vpack.c.bf16 %v5162_v11, %v6764_v33  ;;  %v4004_v56 = vmul.f32 %v6754_v12, %v6754_v12 }
 0x219   : > { %v5145_v44 = vadd.f32 %v5115_v1, %v6742_v7  ;;  %v3829_v4 = vpop.f32.mrb[5].mxu0  ;;  %v4664_v47 = vpack.c.bf16 %v5164_v16, %v5160_v37  ;;  %v4006_v10 = vmul.f32 %v5164_v16, %v5164_v16 }
 0x21a   : > { %v4010_v13 = vadd.f32 %v4009_v5, %v3995_v14  ;;  %v5146_v20 = vadd.f32 %v3829_v4, %v6744_v27  ;;  %v3974_v23 = vadd.f32 %v5143_v34, %v3973_v61  ;;  %v5116_v6 = vpop.f32.mrb[6].mxu0  ;;  %4692 = vst [vmem:[%s5523_s11 + $0x38] sm:$0xff] %v4669_v54  }
 0x21b   : > { %v5147_v35 = vadd.f32 %v5116_v6, %v6746_v28  ;;  %v3832_v31 = vpop.f32.mrb[7].mxu0  ;;  %4691 = vst [vmem:[%s5523_s11 + $0x30] sm:$0xff] %v4664_v47   ;;  %v3999_v27 = vmul.f32 %v5145_v44, %v5145_v44 }
 0x21c   : > { %v3975_v50 = vadd.f32 %v5146_v20, %v3974_v23  ;;  %v3997_v32 = vmul.f32 %v5146_v20, %v5146_v20  ;;  %v4011_v7 = vadd.f32 %v4010_v13, %v3996_v29  ;;  %v5148_v41 = vadd.f32 %v3832_v31, %v6748_v48 }
 0x21d   : > { %v4649_v30 = vpack.c.bf16 %v5147_v35, %v5145_v44  ;;  %v4000_v21 = vmul.f32 %v5147_v35, %v5147_v35  ;;  %v4002_v48 = vmul.f32 %v6756_v42, %v6756_v42 }
 0x21e   : > { %v4012_v3 = vadd.f32 %v4011_v7, %v3997_v32  ;;  %v4644_v59 = vpack.c.bf16 %v5148_v41, %v5146_v20  ;;  %v3976_v57 = vadd.f32 %v5148_v41, %v3975_v50  ;;  %v3998_v25 = vmul.f32 %v5148_v41, %v5148_v41 }
 0x21f   : > { %4688 = vst [vmem:[%s5523_s11 + $0x18] sm:$0xff] %v4649_v30  }
 0x220   : > { %4687 = vst [vmem:[%s5523_s11 + $0x10] sm:$0xff] %v4644_v59   ;;  %v3977_v38 = vadd.f32 %v5145_v44, %v3976_v57  ;;  %v4013_v36 = vadd.f32 %v4012_v3, %v3998_v25 }
 0x222   : > { %v3978_v28 = vadd.f32 %v5147_v35, %v3977_v38  ;;  %v4014_v9 = vadd.f32 %v4013_v36, %v3999_v27 }
 0x224   : > { %v3979_v0 = vadd.f32 %v6752_v49, %v3978_v28  ;;  %v4015_v26 = vadd.f32 %v4014_v9, %v4000_v21  ;;  %v4005_v49 = vmul.f32 %v5160_v37, %v5160_v37 }
 0x226   : > { %v4016_v2 = vadd.f32 %v4015_v26, %v4001_v22  ;;  %v3980_v55 = vadd.f32 %v6756_v42, %v3979_v0  ;;  %v4007_v42 = vmul.f32 %v6764_v33, %v6764_v33 }
 0x228   : > { %v3981_v46 = vadd.f32 %v6750_v60, %v3980_v55  ;;  %v4017_v51 = vadd.f32 %v4016_v2, %v4002_v48  ;;  %v4008_v60 = vmul.f32 %v5162_v11, %v5162_v11 }
 0x22a   : > { %v3982_v19 = vadd.f32 %v6754_v12, %v3981_v46  ;;  %v4018_v53 = vadd.f32 %v4017_v51, %v4003_v8 }
 0x22c   : > { %v3983_v40 = vadd.f32 %v5160_v37, %v3982_v19  ;;  %v4019_v58 = vadd.f32 %v4018_v53, %v4004_v56 }
 0x22e   : > { %v3984_v34 = vadd.f32 %v5164_v16, %v3983_v40  ;;  %v4020_v52 = vadd.f32 %v4019_v58, %v4005_v49 }
 0x230   : > { %v3985_v39 = vadd.f32 %v6764_v33, %v3984_v34  ;;  %v4021_v15 = vadd.f32 %v4020_v52, %v4006_v10 }
 0x232   : > { %v3986_v62 = vadd.f32 %v5162_v11, %v3985_v39  ;;  %v4022_v17 = vadd.f32 %v4021_v15, %v4007_v42 }
 0x234   : > { %v3987_v63 = vrot.slane %v3986_v62, 4  ;;  %v4023_v45 = vadd.f32 %v4022_v17, %v4008_v60 }
 0x236   : > { %v3988_v12 = vadd.f32 %v3987_v63, %v3986_v62  ;;  %v4024_v18 = vrot.slane %v4023_v45, 4 }
 0x238   : > { %v3989_v43 = vrot.slane %v3988_v12, 2  ;;  %v4025_v37 = vadd.f32 %v4024_v18, %v4023_v45 }
 0x23a   : > { %v3990_v24 = vadd.f32 %v3989_v43, %v3988_v12  ;;  %v4026_v14 = vrot.slane %v4025_v37, 2 }
 0x23c   : > { %v3991_v16 = vrot.slane %v3990_v24, 1  ;;  %v4027_v61 = vadd.f32 %v4026_v14, %v4025_v37 }
 0x23e   : > { %v4028_v5 = vrot.slane %v4027_v61, 1  ;;  %v3992_v1 = vadd.f32 %v3991_v16, %v3990_v24 }
 0x240   : > { %v4029_v44 = vadd.f32 %v4028_v5, %v4027_v61 }
 0x242   : > { %v4031_v33 = vsel %vm4030_vm14, %v3992_v1, %v4029_v44 }
 0x243   : > { %4032 = vst [vmem:[%s5529_s24] sm:$0x3] %v4031_v33 }
 0x244 PF: > { %s16_s22 = sadd.s32 1, %s5448_s22   ;;  %s6834_s11 = sld [smem:[#allocation3_spill]] }
 0x245   : > { %p13_p9 = scmp.ge.s32.totalorder %s16_s22, 6   ;;  %s6835_s18 = smov %s5440_s20 }
 0x246   : > { %s6836_s19 = smov %s5444_s21  ;;  %s6837_s20 = smov %s6840_s23 }
 0x247   :  { %15 = sbr.rel (!%p13_p9) target bundleno = 3 (0x3), region = 86 }
 0x24a   : > { %s6838_s21 = smov %s6834_s11 }

</bundles_post_ra>
